<compile_context>
chip_gen: v7x
topology: tpu7x:2x2x1
jax: 0.10.0
libtpu: 0.0.40
codegen_flags: <defaults>
</compile_context>

<pallas_src>
import jax
import jax.numpy as jnp
from jax.experimental import pallas as pl
from jax.experimental.pallas import tpu as pltpu

INPUT_SIZE = 5       # dataset[:, :5]
N = 32               # hidden width multiplier 'n'
IN_PAD = 128         # padded input feature width   (lane-dense)
OUT_PAD = 128        # padded output feature width  (lane-dense)
WIDE = 256           # padded width for the 5n = 160 activations
MID = 128            # padded width for all <=128 activations

# (in_dim, out_dim) for the 12 linear layers, in execution order.
#   encoder: inp, fc1..fc4, fc_latent   decoder: fc_latent, fc1..fc4, out
LAYER_DIMS = [
    (INPUT_SIZE, 5 * N),   # L0  enc.inp        -> silu
    (5 * N, 4 * N),        # L1  enc.fc1        -> silu
    (4 * N, 3 * N),        # L2  enc.fc2        -> silu
    (3 * N, 2 * N),        # L3  enc.fc3        -> silu
    (2 * N, 1 * N),        # L4  enc.fc4        -> silu
    (1 * N, 4),            # L5  enc.fc_latent  (decoder applies silu(z) immediately -> silu)
    (4, 1 * N),            # L6  dec.fc_latent  -> silu
    (1 * N, 2 * N),        # L7  dec.fc1        -> silu
    (2 * N, 3 * N),        # L8  dec.fc2        -> silu
    (3 * N, 4 * N),        # L9  dec.fc3        -> silu
    (4 * N, 5 * N),        # L10 dec.fc4        -> silu
    (5 * N, INPUT_SIZE),   # L11 dec.out        (no activation)
]
NUM_LAYERS = len(LAYER_DIMS)

# slab mapping
UP_LAYERS = (0, 10)        # (128 -> 256) shaped weights
DOWN_LAYERS = (1, 11)      # (256 -> 128) shaped weights
MID_LAYERS = (2, 3, 4, 5, 6, 7, 8, 9)   # (128 -> 128) shaped weights


def _silu(v):
    # x * sigmoid(x); lax.logistic keeps the transcendental on the EUP slot.
    return v * jax.nn.sigmoid(v)


# ---------------------------------------------------------------------------
# Kernel: all 12 layers fused, activations stay VMEM-resident.
# ---------------------------------------------------------------------------
def autoencoder_kernel(x_ref, w_up_ref, w_down_ref, w_mid_ref,
                       b_up_ref, b_down_ref, b_mid_ref, out_ref):
    """x_ref:      (tile_b, 128)      bf16 (zero-padded features)
       w_up_ref:   (2, 128, 256)      bf16   layers L0, L10
       w_down_ref: (2, 256, 128)      bf16   layers L1, L11
       w_mid_ref:  (8, 128, 128)      bf16   layers L2..L9
       b_*_ref:    (n, 1, width)      f32    matching biases
       out_ref:    (tile_b, 128)      f32  (only first INPUT_SIZE lanes meaningful)
    """
    def dense(h_bf16, w, b, activate):
        acc = jnp.dot(h_bf16, w, preferred_element_type=jnp.float32) + b
        if activate:
            acc = _silu(acc)
        return acc

    h = x_ref[...]                                                    # (tile_b, 128) bf16
    # L0: input -> 5n   (expand to 256-wide activation)
    h = dense(h, w_up_ref[0], b_up_ref[0], True).astype(jnp.bfloat16)   # (tile_b, 256)
    # L1: 5n -> 4n      (back to 128-wide)
    h = dense(h, w_down_ref[0], b_down_ref[0], True).astype(jnp.bfloat16)  # (tile_b, 128)
    # L2..L9 : all <=128-wide layers (incl. latent; silu(z) at decoder entry == silu after L5)
    for j in range(len(MID_LAYERS)):
        h = dense(h, w_mid_ref[j], b_mid_ref[j], True).astype(jnp.bfloat16)  # (tile_b, 128)
    # L10: 4n -> 5n     (expand to 256-wide)
    h = dense(h, w_up_ref[1], b_up_ref[1], True).astype(jnp.bfloat16)       # (tile_b, 256)
    # L11: 5n -> input_size, no activation
    out_ref[...] = dense(h, w_down_ref[1], b_down_ref[1], False)            # (tile_b, 128) f32


# ---------------------------------------------------------------------------
# Parameter init / packing
# ---------------------------------------------------------------------------
def init_params(key):
    """Deterministic PyTorch-style init: U(-1/sqrt(fan_in), 1/sqrt(fan_in)).
    Weights stored [in, out] so the kernel computes h @ W + b."""
    params = []
    for (d_in, d_out) in LAYER_DIMS:
        key, kw, kb = jax.random.split(key, 3)
        bound = 1.0 / jnp.sqrt(jnp.float32(d_in))
        w = jax.random.uniform(kw, (d_in, d_out), jnp.float32, -bound, bound)
        b = jax.random.uniform(kb, (1, d_out), jnp.float32, -bound, bound)
        params.append((w, b))
    return params


def pack_params(params):
    """Pack layers into three zero-padded, 128-aligned weight slabs (bf16) + bias slabs (f32)."""
    w_up = jnp.zeros((2, MID, WIDE), jnp.float32)
    w_down = jnp.zeros((2, WIDE, MID), jnp.float32)
    w_mid = jnp.zeros((8, MID, MID), jnp.float32)
    b_up = jnp.zeros((2, 1, WIDE), jnp.float32)
    b_down = jnp.zeros((2, 1, MID), jnp.float32)
    b_mid = jnp.zeros((8, 1, MID), jnp.float32)

    for slot, li in enumerate(UP_LAYERS):
        w, b = params[li]
        d_in, d_out = w.shape
        w_up = w_up.at[slot, :d_in, :d_out].set(w)
        b_up = b_up.at[slot, 0, :d_out].set(b.reshape(-1))
    for slot, li in enumerate(DOWN_LAYERS):
        w, b = params[li]
        d_in, d_out = w.shape
        w_down = w_down.at[slot, :d_in, :d_out].set(w)
        b_down = b_down.at[slot, 0, :d_out].set(b.reshape(-1))
    for slot, li in enumerate(MID_LAYERS):
        w, b = params[li]
        d_in, d_out = w.shape
        w_mid = w_mid.at[slot, :d_in, :d_out].set(w)
        b_mid = b_mid.at[slot, 0, :d_out].set(b.reshape(-1))

    return (w_up.astype(jnp.bfloat16), w_down.astype(jnp.bfloat16),
            w_mid.astype(jnp.bfloat16), b_up, b_down, b_mid)


# ---------------------------------------------------------------------------
# Wrapper
# ---------------------------------------------------------------------------
def _choose_tile_b(B):
    """Prefer a 2-step grid (feeds both v7x TensorCores); cap tiles at 2048 rows."""
    if B % 2 == 0 and (B // 2) % 8 == 0 and B // 2 <= 2048:
        return B // 2
    for t in range(min(B, 2048), 0, -1):
        if B % t == 0 and (t % 8 == 0 or t == B):
            return t
    return B


@jax.jit
def autoencoder_forward(x, w_up, w_down, w_mid, b_up, b_down, b_mid):
    B, F = x.shape
    assert F == INPUT_SIZE
    tile_b = _choose_tile_b(B)
    assert B % tile_b == 0
    grid = (B // tile_b,)

    # Pad features to 128 lanes, cast to bf16 (MXU-native input dtype).
    x_p = jnp.pad(x.astype(jnp.bfloat16), ((0, 0), (0, IN_PAD - F)))

    const3 = lambda i: (0, 0, 0)
    in_specs = [
        pl.BlockSpec((tile_b, IN_PAD), lambda i: (i, 0)),   # x tile
        pl.BlockSpec((2, MID, WIDE), const3),               # w_up
        pl.BlockSpec((2, WIDE, MID), const3),               # w_down
        pl.BlockSpec((8, MID, MID), const3),                # w_mid
        pl.BlockSpec((2, 1, WIDE), const3),                 # b_up
        pl.BlockSpec((2, 1, MID), const3),                  # b_down
        pl.BlockSpec((8, 1, MID), const3),                  # b_mid
    ]
    out_specs = pl.BlockSpec((tile_b, OUT_PAD), lambda i: (i, 0))

    # Advisory cost estimate (true FLOPs, not padded).
    flops = 2 * B * sum(d_in * d_out for d_in, d_out in LAYER_DIMS)
    transcendentals = B * sum(d_out for _, d_out in LAYER_DIMS[:-1])  # silu after L0..L10
    w_elems = 2 * MID * WIDE + 2 * WIDE * MID + 8 * MID * MID
    b_elems = 2 * WIDE + 2 * MID + 8 * MID
    bytes_accessed = (B * IN_PAD * 2          # x (bf16)
                      + w_elems * 2           # weights (bf16)
                      + b_elems * 4           # biases (f32)
                      + B * OUT_PAD * 4)      # output (f32)

    # Scoped-VMEM budget: double-buffered params + x/out tiles + activation temporaries.
    est_vmem = (2 * (w_elems * 2 + b_elems * 4)
                + 2 * (tile_b * IN_PAD * 2 + tile_b * OUT_PAD * 4)
                + 6 * tile_b * WIDE * 4
                + (4 << 20))
    vmem_limit = int(min(max(est_vmem, 16 << 20), 48 << 20))

    out_padded = pl.pallas_call(
        autoencoder_kernel,
        out_shape=jax.ShapeDtypeStruct((B, OUT_PAD), jnp.float32),
        grid_spec=pltpu.PrefetchScalarGridSpec(
            num_scalar_prefetch=0,
            grid=grid,
            in_specs=in_specs,
            out_specs=out_specs,
        ),
        compiler_params=pltpu.CompilerParams(
            dimension_semantics=("parallel",),
            vmem_limit_bytes=vmem_limit,
        ),
        cost_estimate=pl.CostEstimate(
            flops=flops,
            transcendentals=transcendentals,
            bytes_accessed=bytes_accessed,
        ),
    )(x_p, w_up, w_down, w_mid, b_up, b_down, b_mid)

    return out_padded[:, :INPUT_SIZE]


# ---------------------------------------------------------------------------
# Plain-JAX reference (same numerics: bf16 matmul inputs, f32 accumulate)
# ---------------------------------------------------------------------------
def reference_forward(x, params):
    def dot_bf16(h, w):
        return jnp.dot(h.astype(jnp.bfloat16), w.astype(jnp.bfloat16),
                       preferred_element_type=jnp.float32)

    h = x
    # encoder
    for li in range(6):
        w, b = params[li]
        h = dot_bf16(h, w) + b
        if li != 5:
            h = _silu(h)
    # decoder (applies silu(z) first)
    h = _silu(h)
    for li in range(6, NUM_LAYERS):
        w, b = params[li]
        h = dot_bf16(h, w) + b
        if li != NUM_LAYERS - 1:
            h = _silu(h)
    return h


if __name__ == "__main__":
    key = jax.random.PRNGKey(0)
    key, kx = jax.random.split(key)

    B = 256  # batch of samples (each sample has 5 features, like dataset[:, :5])
    x = jax.random.normal(kx, (B, INPUT_SIZE), jnp.float32)

    params = init_params(key)
    w_up, w_down, w_mid, b_up, b_down, b_mid = pack_params(params)

    out = autoencoder_forward(x, w_up, w_down, w_mid, b_up, b_down, b_mid)
    out = jax.block_until_ready(out)

    ref = reference_forward(x, params)
    assert out.shape == (B, INPUT_SIZE)
    assert jnp.allclose(out, ref, atol=2e-3, rtol=2e-3), "mismatch vs JAX reference"

    # TODO(synk): dropout layers are identity (inference only); float64 of the PyTorch
    # reference is relaxed to bf16-matmul / f32-accumulate on TPU.
    print("KERNEL_OK")
</pallas_src>

<mosaic_0001>
module attributes {stable_mosaic.version = 11 : i64} {
  func.func @autoencoder_kernel(%arg0: i32, %arg1: memref<128x128xbf16, #tpu.memory_space<vmem>>, %arg2: memref<2x128x256xbf16, #tpu.memory_space<vmem>>, %arg3: memref<2x256x128xbf16, #tpu.memory_space<vmem>>, %arg4: memref<8x128x128xbf16, #tpu.memory_space<vmem>>, %arg5: memref<2x1x256xf32, #tpu.memory_space<vmem>>, %arg6: memref<2x1x128xf32, #tpu.memory_space<vmem>>, %arg7: memref<8x1x128xf32, #tpu.memory_space<vmem>>, %arg8: memref<128x128xf32, #tpu.memory_space<vmem>>) attributes {dimension_semantics = [#tpu.dimension_semantics<parallel>], iteration_bounds = array<i64: 2>, scalar_prefetch = 0 : i64, scratch_operands = 0 : i64, tpu.core_type = #tpu.core_type<tc>, window_params = [{transform_indices = @transform_0, window_bounds = array<i64: 128, 128>}, {pipeline_mode = #tpu.pipeline_mode<synchronous>, transform_indices = @transform_1, window_bounds = array<i64: 2, 128, 256>}, {pipeline_mode = #tpu.pipeline_mode<synchronous>, transform_indices = @transform_2, window_bounds = array<i64: 2, 256, 128>}, {pipeline_mode = #tpu.pipeline_mode<synchronous>, transform_indices = @transform_3, window_bounds = array<i64: 8, 128, 128>}, {pipeline_mode = #tpu.pipeline_mode<synchronous>, transform_indices = @transform_4, window_bounds = array<i64: 2, 1, 256>}, {pipeline_mode = #tpu.pipeline_mode<synchronous>, transform_indices = @transform_5, window_bounds = array<i64: 2, 1, 128>}, {pipeline_mode = #tpu.pipeline_mode<synchronous>, transform_indices = @transform_6, window_bounds = array<i64: 8, 1, 128>}, {transform_indices = @transform_7, window_bounds = array<i64: 128, 128>}]} {
    %c0 = arith.constant 0 : index
    %c0_0 = arith.constant 0 : index
    %0 = vector.load %arg1[%c0, %c0_0] : memref<128x128xbf16, #tpu.memory_space<vmem>>, vector<128x128xbf16>
    %c0_1 = arith.constant 0 : index
    %c0_2 = arith.constant 0 : index
    %c0_3 = arith.constant 0 : index
    %1 = vector.load %arg2[%c0_1, %c0_2, %c0_3] : memref<2x128x256xbf16, #tpu.memory_space<vmem>>, vector<1x128x256xbf16>
    %2 = vector.shape_cast %1 : vector<1x128x256xbf16> to vector<128x256xbf16>
    %c0_4 = arith.constant 0 : index
    %c0_5 = arith.constant 0 : index
    %c0_6 = arith.constant 0 : index
    %3 = vector.load %arg5[%c0_4, %c0_5, %c0_6] : memref<2x1x256xf32, #tpu.memory_space<vmem>>, vector<1x1x256xf32>
    %4 = vector.shape_cast %3 : vector<1x1x256xf32> to vector<1x256xf32>
    %cst = arith.constant dense<0.000000e+00> : vector<128x256xf32>
    %5 = tpu.matmul %0, %2, %cst {dimension_numbers = #tpu.dot_dimension_numbers<[1], [0], [0], [1], [0, 0, 1, 1], [], []>} : vector<128x128xbf16>, vector<128x256xbf16>, vector<128x256xf32> -> vector<128x256xf32>
    %6 = vector.broadcast %4 : vector<1x256xf32> to vector<128x256xf32>
    %7 = arith.addf %5, %6 : vector<128x256xf32>
    %8 = arith.negf %7 : vector<128x256xf32>
    %9 = math.exp %8 : vector<128x256xf32>
    %cst_7 = arith.constant 1.000000e+00 : f32
    %10 = vector.broadcast %cst_7 : f32 to vector<128x256xf32>
    %11 = arith.addf %10, %9 : vector<128x256xf32>
    %12 = arith.divf %10, %11 : vector<128x256xf32>
    %13 = arith.mulf %7, %12 : vector<128x256xf32>
    %14 = arith.truncf %13 : vector<128x256xf32> to vector<128x256xbf16>
    %c0_8 = arith.constant 0 : index
    %c0_9 = arith.constant 0 : index
    %c0_10 = arith.constant 0 : index
    %15 = vector.load %arg3[%c0_8, %c0_9, %c0_10] : memref<2x256x128xbf16, #tpu.memory_space<vmem>>, vector<1x256x128xbf16>
    %16 = vector.shape_cast %15 : vector<1x256x128xbf16> to vector<256x128xbf16>
    %c0_11 = arith.constant 0 : index
    %c0_12 = arith.constant 0 : index
    %c0_13 = arith.constant 0 : index
    %17 = vector.load %arg6[%c0_11, %c0_12, %c0_13] : memref<2x1x128xf32, #tpu.memory_space<vmem>>, vector<1x1x128xf32>
    %18 = vector.shape_cast %17 : vector<1x1x128xf32> to vector<1x128xf32>
    %cst_14 = arith.constant dense<0.000000e+00> : vector<128x128xf32>
    %19 = tpu.matmul %14, %16, %cst_14 {dimension_numbers = #tpu.dot_dimension_numbers<[1], [0], [0], [1], [0, 0, 1, 1], [], []>} : vector<128x256xbf16>, vector<256x128xbf16>, vector<128x128xf32> -> vector<128x128xf32>
    %20 = vector.broadcast %18 : vector<1x128xf32> to vector<128x128xf32>
    %21 = arith.addf %19, %20 : vector<128x128xf32>
    %22 = arith.negf %21 : vector<128x128xf32>
    %23 = math.exp %22 : vector<128x128xf32>
    %cst_15 = arith.constant 1.000000e+00 : f32
    %24 = vector.broadcast %cst_15 : f32 to vector<128x128xf32>
    %25 = arith.addf %24, %23 : vector<128x128xf32>
    %26 = arith.divf %24, %25 : vector<128x128xf32>
    %27 = arith.mulf %21, %26 : vector<128x128xf32>
    %28 = arith.truncf %27 : vector<128x128xf32> to vector<128x128xbf16>
    %c0_16 = arith.constant 0 : index
    %c0_17 = arith.constant 0 : index
    %c0_18 = arith.constant 0 : index
    %29 = vector.load %arg4[%c0_16, %c0_17, %c0_18] : memref<8x128x128xbf16, #tpu.memory_space<vmem>>, vector<1x128x128xbf16>
    %30 = vector.shape_cast %29 : vector<1x128x128xbf16> to vector<128x128xbf16>
    %c0_19 = arith.constant 0 : index
    %c0_20 = arith.constant 0 : index
    %c0_21 = arith.constant 0 : index
    %31 = vector.load %arg7[%c0_19, %c0_20, %c0_21] : memref<8x1x128xf32, #tpu.memory_space<vmem>>, vector<1x1x128xf32>
    %32 = vector.shape_cast %31 : vector<1x1x128xf32> to vector<1x128xf32>
    %cst_22 = arith.constant dense<0.000000e+00> : vector<128x128xf32>
    %33 = tpu.matmul %28, %30, %cst_22 {dimension_numbers = #tpu.dot_dimension_numbers<[1], [0], [0], [1], [0, 0, 1, 1], [], []>} : vector<128x128xbf16>, vector<128x128xbf16>, vector<128x128xf32> -> vector<128x128xf32>
    %34 = vector.broadcast %32 : vector<1x128xf32> to vector<128x128xf32>
    %35 = arith.addf %33, %34 : vector<128x128xf32>
    %36 = arith.negf %35 : vector<128x128xf32>
    %37 = math.exp %36 : vector<128x128xf32>
    %cst_23 = arith.constant 1.000000e+00 : f32
    %38 = vector.broadcast %cst_23 : f32 to vector<128x128xf32>
    %39 = arith.addf %38, %37 : vector<128x128xf32>
    %40 = arith.divf %38, %39 : vector<128x128xf32>
    %41 = arith.mulf %35, %40 : vector<128x128xf32>
    %42 = arith.truncf %41 : vector<128x128xf32> to vector<128x128xbf16>
    %c1 = arith.constant 1 : index
    %c0_24 = arith.constant 0 : index
    %c0_25 = arith.constant 0 : index
    %43 = vector.load %arg4[%c1, %c0_24, %c0_25] : memref<8x128x128xbf16, #tpu.memory_space<vmem>>, vector<1x128x128xbf16>
    %44 = vector.shape_cast %43 : vector<1x128x128xbf16> to vector<128x128xbf16>
    %c1_26 = arith.constant 1 : index
    %c0_27 = arith.constant 0 : index
    %c0_28 = arith.constant 0 : index
    %45 = vector.load %arg7[%c1_26, %c0_27, %c0_28] : memref<8x1x128xf32, #tpu.memory_space<vmem>>, vector<1x1x128xf32>
    %46 = vector.shape_cast %45 : vector<1x1x128xf32> to vector<1x128xf32>
    %cst_29 = arith.constant dense<0.000000e+00> : vector<128x128xf32>
    %47 = tpu.matmul %42, %44, %cst_29 {dimension_numbers = #tpu.dot_dimension_numbers<[1], [0], [0], [1], [0, 0, 1, 1], [], []>} : vector<128x128xbf16>, vector<128x128xbf16>, vector<128x128xf32> -> vector<128x128xf32>
    %48 = vector.broadcast %46 : vector<1x128xf32> to vector<128x128xf32>
    %49 = arith.addf %47, %48 : vector<128x128xf32>
    %50 = arith.negf %49 : vector<128x128xf32>
    %51 = math.exp %50 : vector<128x128xf32>
    %cst_30 = arith.constant 1.000000e+00 : f32
    %52 = vector.broadcast %cst_30 : f32 to vector<128x128xf32>
    %53 = arith.addf %52, %51 : vector<128x128xf32>
    %54 = arith.divf %52, %53 : vector<128x128xf32>
    %55 = arith.mulf %49, %54 : vector<128x128xf32>
    %56 = arith.truncf %55 : vector<128x128xf32> to vector<128x128xbf16>
    %c2 = arith.constant 2 : index
    %c0_31 = arith.constant 0 : index
    %c0_32 = arith.constant 0 : index
    %57 = vector.load %arg4[%c2, %c0_31, %c0_32] : memref<8x128x128xbf16, #tpu.memory_space<vmem>>, vector<1x128x128xbf16>
    %58 = vector.shape_cast %57 : vector<1x128x128xbf16> to vector<128x128xbf16>
    %c2_33 = arith.constant 2 : index
    %c0_34 = arith.constant 0 : index
    %c0_35 = arith.constant 0 : index
    %59 = vector.load %arg7[%c2_33, %c0_34, %c0_35] : memref<8x1x128xf32, #tpu.memory_space<vmem>>, vector<1x1x128xf32>
    %60 = vector.shape_cast %59 : vector<1x1x128xf32> to vector<1x128xf32>
    %cst_36 = arith.constant dense<0.000000e+00> : vector<128x128xf32>
    %61 = tpu.matmul %56, %58, %cst_36 {dimension_numbers = #tpu.dot_dimension_numbers<[1], [0], [0], [1], [0, 0, 1, 1], [], []>} : vector<128x128xbf16>, vector<128x128xbf16>, vector<128x128xf32> -> vector<128x128xf32>
    %62 = vector.broadcast %60 : vector<1x128xf32> to vector<128x128xf32>
    %63 = arith.addf %61, %62 : vector<128x128xf32>
    %64 = arith.negf %63 : vector<128x128xf32>
    %65 = math.exp %64 : vector<128x128xf32>
    %cst_37 = arith.constant 1.000000e+00 : f32
    %66 = vector.broadcast %cst_37 : f32 to vector<128x128xf32>
    %67 = arith.addf %66, %65 : vector<128x128xf32>
    %68 = arith.divf %66, %67 : vector<128x128xf32>
    %69 = arith.mulf %63, %68 : vector<128x128xf32>
    %70 = arith.truncf %69 : vector<128x128xf32> to vector<128x128xbf16>
    %c3 = arith.constant 3 : index
    %c0_38 = arith.constant 0 : index
    %c0_39 = arith.constant 0 : index
    %71 = vector.load %arg4[%c3, %c0_38, %c0_39] : memref<8x128x128xbf16, #tpu.memory_space<vmem>>, vector<1x128x128xbf16>
    %72 = vector.shape_cast %71 : vector<1x128x128xbf16> to vector<128x128xbf16>
    %c3_40 = arith.constant 3 : index
    %c0_41 = arith.constant 0 : index
    %c0_42 = arith.constant 0 : index
    %73 = vector.load %arg7[%c3_40, %c0_41, %c0_42] : memref<8x1x128xf32, #tpu.memory_space<vmem>>, vector<1x1x128xf32>
    %74 = vector.shape_cast %73 : vector<1x1x128xf32> to vector<1x128xf32>
    %cst_43 = arith.constant dense<0.000000e+00> : vector<128x128xf32>
    %75 = tpu.matmul %70, %72, %cst_43 {dimension_numbers = #tpu.dot_dimension_numbers<[1], [0], [0], [1], [0, 0, 1, 1], [], []>} : vector<128x128xbf16>, vector<128x128xbf16>, vector<128x128xf32> -> vector<128x128xf32>
    %76 = vector.broadcast %74 : vector<1x128xf32> to vector<128x128xf32>
    %77 = arith.addf %75, %76 : vector<128x128xf32>
    %78 = arith.negf %77 : vector<128x128xf32>
    %79 = math.exp %78 : vector<128x128xf32>
    %cst_44 = arith.constant 1.000000e+00 : f32
    %80 = vector.broadcast %cst_44 : f32 to vector<128x128xf32>
    %81 = arith.addf %80, %79 : vector<128x128xf32>
    %82 = arith.divf %80, %81 : vector<128x128xf32>
    %83 = arith.mulf %77, %82 : vector<128x128xf32>
    %84 = arith.truncf %83 : vector<128x128xf32> to vector<128x128xbf16>
    %c4 = arith.constant 4 : index
    %c0_45 = arith.constant 0 : index
    %c0_46 = arith.constant 0 : index
    %85 = vector.load %arg4[%c4, %c0_45, %c0_46] : memref<8x128x128xbf16, #tpu.memory_space<vmem>>, vector<1x128x128xbf16>
    %86 = vector.shape_cast %85 : vector<1x128x128xbf16> to vector<128x128xbf16>
    %c4_47 = arith.constant 4 : index
    %c0_48 = arith.constant 0 : index
    %c0_49 = arith.constant 0 : index
    %87 = vector.load %arg7[%c4_47, %c0_48, %c0_49] : memref<8x1x128xf32, #tpu.memory_space<vmem>>, vector<1x1x128xf32>
    %88 = vector.shape_cast %87 : vector<1x1x128xf32> to vector<1x128xf32>
    %cst_50 = arith.constant dense<0.000000e+00> : vector<128x128xf32>
    %89 = tpu.matmul %84, %86, %cst_50 {dimension_numbers = #tpu.dot_dimension_numbers<[1], [0], [0], [1], [0, 0, 1, 1], [], []>} : vector<128x128xbf16>, vector<128x128xbf16>, vector<128x128xf32> -> vector<128x128xf32>
    %90 = vector.broadcast %88 : vector<1x128xf32> to vector<128x128xf32>
    %91 = arith.addf %89, %90 : vector<128x128xf32>
    %92 = arith.negf %91 : vector<128x128xf32>
    %93 = math.exp %92 : vector<128x128xf32>
    %cst_51 = arith.constant 1.000000e+00 : f32
    %94 = vector.broadcast %cst_51 : f32 to vector<128x128xf32>
    %95 = arith.addf %94, %93 : vector<128x128xf32>
    %96 = arith.divf %94, %95 : vector<128x128xf32>
    %97 = arith.mulf %91, %96 : vector<128x128xf32>
    %98 = arith.truncf %97 : vector<128x128xf32> to vector<128x128xbf16>
    %c5 = arith.constant 5 : index
    %c0_52 = arith.constant 0 : index
    %c0_53 = arith.constant 0 : index
    %99 = vector.load %arg4[%c5, %c0_52, %c0_53] : memref<8x128x128xbf16, #tpu.memory_space<vmem>>, vector<1x128x128xbf16>
    %100 = vector.shape_cast %99 : vector<1x128x128xbf16> to vector<128x128xbf16>
    %c5_54 = arith.constant 5 : index
    %c0_55 = arith.constant 0 : index
    %c0_56 = arith.constant 0 : index
    %101 = vector.load %arg7[%c5_54, %c0_55, %c0_56] : memref<8x1x128xf32, #tpu.memory_space<vmem>>, vector<1x1x128xf32>
    %102 = vector.shape_cast %101 : vector<1x1x128xf32> to vector<1x128xf32>
    %cst_57 = arith.constant dense<0.000000e+00> : vector<128x128xf32>
    %103 = tpu.matmul %98, %100, %cst_57 {dimension_numbers = #tpu.dot_dimension_numbers<[1], [0], [0], [1], [0, 0, 1, 1], [], []>} : vector<128x128xbf16>, vector<128x128xbf16>, vector<128x128xf32> -> vector<128x128xf32>
    %104 = vector.broadcast %102 : vector<1x128xf32> to vector<128x128xf32>
    %105 = arith.addf %103, %104 : vector<128x128xf32>
    %106 = arith.negf %105 : vector<128x128xf32>
    %107 = math.exp %106 : vector<128x128xf32>
    %cst_58 = arith.constant 1.000000e+00 : f32
    %108 = vector.broadcast %cst_58 : f32 to vector<128x128xf32>
    %109 = arith.addf %108, %107 : vector<128x128xf32>
    %110 = arith.divf %108, %109 : vector<128x128xf32>
    %111 = arith.mulf %105, %110 : vector<128x128xf32>
    %112 = arith.truncf %111 : vector<128x128xf32> to vector<128x128xbf16>
    %c6 = arith.constant 6 : index
    %c0_59 = arith.constant 0 : index
    %c0_60 = arith.constant 0 : index
    %113 = vector.load %arg4[%c6, %c0_59, %c0_60] : memref<8x128x128xbf16, #tpu.memory_space<vmem>>, vector<1x128x128xbf16>
    %114 = vector.shape_cast %113 : vector<1x128x128xbf16> to vector<128x128xbf16>
    %c6_61 = arith.constant 6 : index
    %c0_62 = arith.constant 0 : index
    %c0_63 = arith.constant 0 : index
    %115 = vector.load %arg7[%c6_61, %c0_62, %c0_63] : memref<8x1x128xf32, #tpu.memory_space<vmem>>, vector<1x1x128xf32>
    %116 = vector.shape_cast %115 : vector<1x1x128xf32> to vector<1x128xf32>
    %cst_64 = arith.constant dense<0.000000e+00> : vector<128x128xf32>
    %117 = tpu.matmul %112, %114, %cst_64 {dimension_numbers = #tpu.dot_dimension_numbers<[1], [0], [0], [1], [0, 0, 1, 1], [], []>} : vector<128x128xbf16>, vector<128x128xbf16>, vector<128x128xf32> -> vector<128x128xf32>
    %118 = vector.broadcast %116 : vector<1x128xf32> to vector<128x128xf32>
    %119 = arith.addf %117, %118 : vector<128x128xf32>
    %120 = arith.negf %119 : vector<128x128xf32>
    %121 = math.exp %120 : vector<128x128xf32>
    %cst_65 = arith.constant 1.000000e+00 : f32
    %122 = vector.broadcast %cst_65 : f32 to vector<128x128xf32>
    %123 = arith.addf %122, %121 : vector<128x128xf32>
    %124 = arith.divf %122, %123 : vector<128x128xf32>
    %125 = arith.mulf %119, %124 : vector<128x128xf32>
    %126 = arith.truncf %125 : vector<128x128xf32> to vector<128x128xbf16>
    %c7 = arith.constant 7 : index
    %c0_66 = arith.constant 0 : index
    %c0_67 = arith.constant 0 : index
    %127 = vector.load %arg4[%c7, %c0_66, %c0_67] : memref<8x128x128xbf16, #tpu.memory_space<vmem>>, vector<1x128x128xbf16>
    %128 = vector.shape_cast %127 : vector<1x128x128xbf16> to vector<128x128xbf16>
    %c7_68 = arith.constant 7 : index
    %c0_69 = arith.constant 0 : index
    %c0_70 = arith.constant 0 : index
    %129 = vector.load %arg7[%c7_68, %c0_69, %c0_70] : memref<8x1x128xf32, #tpu.memory_space<vmem>>, vector<1x1x128xf32>
    %130 = vector.shape_cast %129 : vector<1x1x128xf32> to vector<1x128xf32>
    %cst_71 = arith.constant dense<0.000000e+00> : vector<128x128xf32>
    %131 = tpu.matmul %126, %128, %cst_71 {dimension_numbers = #tpu.dot_dimension_numbers<[1], [0], [0], [1], [0, 0, 1, 1], [], []>} : vector<128x128xbf16>, vector<128x128xbf16>, vector<128x128xf32> -> vector<128x128xf32>
    %132 = vector.broadcast %130 : vector<1x128xf32> to vector<128x128xf32>
    %133 = arith.addf %131, %132 : vector<128x128xf32>
    %134 = arith.negf %133 : vector<128x128xf32>
    %135 = math.exp %134 : vector<128x128xf32>
    %cst_72 = arith.constant 1.000000e+00 : f32
    %136 = vector.broadcast %cst_72 : f32 to vector<128x128xf32>
    %137 = arith.addf %136, %135 : vector<128x128xf32>
    %138 = arith.divf %136, %137 : vector<128x128xf32>
    %139 = arith.mulf %133, %138 : vector<128x128xf32>
    %140 = arith.truncf %139 : vector<128x128xf32> to vector<128x128xbf16>
    %c1_73 = arith.constant 1 : index
    %c0_74 = arith.constant 0 : index
    %c0_75 = arith.constant 0 : index
    %141 = vector.load %arg2[%c1_73, %c0_74, %c0_75] : memref<2x128x256xbf16, #tpu.memory_space<vmem>>, vector<1x128x256xbf16>
    %142 = vector.shape_cast %141 : vector<1x128x256xbf16> to vector<128x256xbf16>
    %c1_76 = arith.constant 1 : index
    %c0_77 = arith.constant 0 : index
    %c0_78 = arith.constant 0 : index
    %143 = vector.load %arg5[%c1_76, %c0_77, %c0_78] : memref<2x1x256xf32, #tpu.memory_space<vmem>>, vector<1x1x256xf32>
    %144 = vector.shape_cast %143 : vector<1x1x256xf32> to vector<1x256xf32>
    %cst_79 = arith.constant dense<0.000000e+00> : vector<128x256xf32>
    %145 = tpu.matmul %140, %142, %cst_79 {dimension_numbers = #tpu.dot_dimension_numbers<[1], [0], [0], [1], [0, 0, 1, 1], [], []>} : vector<128x128xbf16>, vector<128x256xbf16>, vector<128x256xf32> -> vector<128x256xf32>
    %146 = vector.broadcast %144 : vector<1x256xf32> to vector<128x256xf32>
    %147 = arith.addf %145, %146 : vector<128x256xf32>
    %148 = arith.negf %147 : vector<128x256xf32>
    %149 = math.exp %148 : vector<128x256xf32>
    %cst_80 = arith.constant 1.000000e+00 : f32
    %150 = vector.broadcast %cst_80 : f32 to vector<128x256xf32>
    %151 = arith.addf %150, %149 : vector<128x256xf32>
    %152 = arith.divf %150, %151 : vector<128x256xf32>
    %153 = arith.mulf %147, %152 : vector<128x256xf32>
    %154 = arith.truncf %153 : vector<128x256xf32> to vector<128x256xbf16>
    %c1_81 = arith.constant 1 : index
    %c0_82 = arith.constant 0 : index
    %c0_83 = arith.constant 0 : index
    %155 = vector.load %arg3[%c1_81, %c0_82, %c0_83] : memref<2x256x128xbf16, #tpu.memory_space<vmem>>, vector<1x256x128xbf16>
    %156 = vector.shape_cast %155 : vector<1x256x128xbf16> to vector<256x128xbf16>
    %c1_84 = arith.constant 1 : index
    %c0_85 = arith.constant 0 : index
    %c0_86 = arith.constant 0 : index
    %157 = vector.load %arg6[%c1_84, %c0_85, %c0_86] : memref<2x1x128xf32, #tpu.memory_space<vmem>>, vector<1x1x128xf32>
    %158 = vector.shape_cast %157 : vector<1x1x128xf32> to vector<1x128xf32>
    %cst_87 = arith.constant dense<0.000000e+00> : vector<128x128xf32>
    %159 = tpu.matmul %154, %156, %cst_87 {dimension_numbers = #tpu.dot_dimension_numbers<[1], [0], [0], [1], [0, 0, 1, 1], [], []>} : vector<128x256xbf16>, vector<256x128xbf16>, vector<128x128xf32> -> vector<128x128xf32>
    %160 = vector.broadcast %158 : vector<1x128xf32> to vector<128x128xf32>
    %161 = arith.addf %159, %160 : vector<128x128xf32>
    %c0_88 = arith.constant 0 : index
    %c0_89 = arith.constant 0 : index
    %162 = vector.load %arg8[%c0_88, %c0_89] : memref<128x128xf32, #tpu.memory_space<vmem>>, vector<128x128xf32>
    tpu.vector_store %arg8[%c0_88, %c0_89], %161 {strides = array<i32>} : memref<128x128xf32, #tpu.memory_space<vmem>>, vector<128x128xf32>,
    return
  }
  func.func @transform_0(%arg0: i32) -> (i32, i32) {
    %c0_i32 = arith.constant 0 : i32
    %c0_i32_0 = arith.constant 0 : i32
    return %arg0, %c0_i32 : i32, i32
  }
  func.func @transform_1(%arg0: i32) -> (i32, i32, i32) {
    %c0_i32 = arith.constant 0 : i32
    %c0_i32_0 = arith.constant 0 : i32
    %c0_i32_1 = arith.constant 0 : i32
    %c0_i32_2 = arith.constant 0 : i32
    return %c0_i32, %c0_i32_0, %c0_i32_1 : i32, i32, i32
  }
  func.func @transform_2(%arg0: i32) -> (i32, i32, i32) {
    %c0_i32 = arith.constant 0 : i32
    %c0_i32_0 = arith.constant 0 : i32
    %c0_i32_1 = arith.constant 0 : i32
    %c0_i32_2 = arith.constant 0 : i32
    return %c0_i32, %c0_i32_0, %c0_i32_1 : i32, i32, i32
  }
  func.func @transform_3(%arg0: i32) -> (i32, i32, i32) {
    %c0_i32 = arith.constant 0 : i32
    %c0_i32_0 = arith.constant 0 : i32
    %c0_i32_1 = arith.constant 0 : i32
    %c0_i32_2 = arith.constant 0 : i32
    return %c0_i32, %c0_i32_0, %c0_i32_1 : i32, i32, i32
  }
  func.func @transform_4(%arg0: i32) -> (i32, i32, i32) {
    %c0_i32 = arith.constant 0 : i32
    %c0_i32_0 = arith.constant 0 : i32
    %c0_i32_1 = arith.constant 0 : i32
    %c0_i32_2 = arith.constant 0 : i32
    return %c0_i32, %c0_i32_0, %c0_i32_1 : i32, i32, i32
  }
  func.func @transform_5(%arg0: i32) -> (i32, i32, i32) {
    %c0_i32 = arith.constant 0 : i32
    %c0_i32_0 = arith.constant 0 : i32
    %c0_i32_1 = arith.constant 0 : i32
    %c0_i32_2 = arith.constant 0 : i32
    return %c0_i32, %c0_i32_0, %c0_i32_1 : i32, i32, i32
  }
  func.func @transform_6(%arg0: i32) -> (i32, i32, i32) {
    %c0_i32 = arith.constant 0 : i32
    %c0_i32_0 = arith.constant 0 : i32
    %c0_i32_1 = arith.constant 0 : i32
    %c0_i32_2 = arith.constant 0 : i32
    return %c0_i32, %c0_i32_0, %c0_i32_1 : i32, i32, i32
  }
  func.func @transform_7(%arg0: i32) -> (i32, i32) {
    %c0_i32 = arith.constant 0 : i32
    %c0_i32_0 = arith.constant 0 : i32
    return %arg0, %c0_i32 : i32, i32
  }
}

</mosaic_0001>

<bundles_post_ra>
// kernel: autoencoder_forward.1
= control target key start
LH: loop header
LB: loop body
LE: loop exit
PB: predicated region body
PF: predicated region fallthrough
CT: control target
= control target key end

     0   :  { %12 = vsyncpa [#allocation3], 0  ;;  %s7214_s0 = inlined_call_operand.vmem [shape: bf16[256,128], index: 0, kind: input, shape index: {}]   ;;  %s7215_s1 = inlined_call_operand.vmem [shape: bf16[2,128,256], index: 1, kind: input, shape index: {}]   ;;  %s7216_s2 = inlined_call_operand.hbm [shape: bf16[2,256,128], index: 2, kind: input, shape index: {}]   ;;  %s7217_s3 = inlined_call_operand.hbm [shape: bf16[8,128,128], index: 3, kind: input, shape index: {}]   ;;  %s7218_s4 = inlined_call_operand.vmem [shape: f32[2,1,256], index: 4, kind: input, shape index: {}]   ;;  %s7219_s5 = inlined_call_operand.vmem [shape: f32[2,1,128], index: 5, kind: input, shape index: {}]   ;;  %s7220_s6 = inlined_call_operand.vmem [shape: f32[8,1,128], index: 6, kind: input, shape index: {}]   ;;  %s7221_s7 = inlined_call_operand.vmem [shape: f32[256,128], index: 7, kind: output, shape index: {}]  }
   0x1   :  { %13 = vsyncpa [#allocation5], 0  ;;  %s6338_s24 = smov 0  }
   0x2 LB: > { %s4299_s25 = sadd.s32 4294967295, %s6291_s24   ;;  %p4301_p0 = scmp.ge.s32.totalorder %s6291_s24, 1  ;;  %s6291_s24 = sphi %s6338_s24, %s19_s24  }
   0x3   : > { %p202_p1 = scmp.lt.s32.totalorder %s6291_s24, 3  ;;  %s6293_s26 = smov [#allocation2]  }
   0x4   : > { %s217_s27 = sshll.u32 %s6293_s26, 4  ;;  %p6352_p3 = scmp.eq.s32.totalorder %s4299_s25, 0  ;;  %s218_s27 = int_to_ptr.vmem [resolvable:$true] %s217_s27 }
   0x5   : > { %p6346_p2 = pnand %p4301_p0, %p202_p1  ;;  %s6294_s30 = smov [#allocation4]  }
   0x6   : > { %s7226_s29 = scalar_select %p6352_p3, 1, 0 }
   0x7   : > { %s7225_s28 = scalar_select %p6346_p2, 1, 0 }
   0x8   : > { %p5213_p4 = pneg %p6346_p2  ;;  %s230_s8 = sshll.u32 %s6294_s30, 4  ;;  %s6364_s8 = int_to_ptr.vmem [resolvable:$true] %s230_s8 }
   0x9   : > { %s6221_s12 = scalar_lea.hbm %s7216_s2, 4096 }
   0xa   : > { %p6360_p5 = pnand %p6352_p3, %p5213_p4  ;;  %p6222_p6 = scmp.ne.s32.totalorder %s7216_s2, %s6221_s12 }
   0xb   : > { %p6228_p10 = scmp.lt.u32.totalorder %s6221_s12, %s7216_s2 }
   0xc   : > { %p6223_p7 = pneg %p6360_p5 }
   0xe   : > { %p6224_p8 = pnand %p6223_p7, %p6222_p6 }
  0x10   : > { %p6225_p9 = pneg %p6224_p8 }
  0x12   : > { %p6230_p11 = pnand %p6228_p10, %p6225_p9 }
  0x14   : > { %6233 = shalt.err (!%p6230_p11)
}
  0x15   : > { %s6234_s17 = scalar_lea.vmem %s218_s27, 4096  ;;  %p6242_p1 = scmp.lt.s32.totalorder %s218_s27, %s218_s27 }
  0x16   : > { %p6235_p12 = scmp.ne.s32.totalorder %s218_s27, %s6234_s17  ;;  %p6243_p4 = scmp.lt.s32.totalorder %s6234_s17, %s6234_s17 }
  0x18   : > { %p6237_p13 = pnand %p6235_p12, %p6223_p7  ;;  %p6244_p3 = por %p6243_p4, %p6242_p1 }
  0x1a   : > { %p6238_p0 = pneg %p6237_p13 }
  0x1c   : > { %p6245_p2 = pnand %p6244_p3, %p6238_p0 }
  0x1e   : > { %6248 = shalt.err (!%p6245_p2)
}
  0x1f   : > { %s6295_s18 = smov 64   ;;  %s6296_s19 = smov 4  }
  0x20   : > { %5216 = dma.hbm_to_vmem [thread:$0]  (!%p6360_p5), %s7216_s2, 4096, %s218_s27, [#allocation3], %s6295_s18, %s6295_s18, %s6296_s19  }
  0x21   : > { %s6249_s26 = scalar_lea.hbm %s7217_s3, 8192 }
  0x22   : > { %p6250_p6 = scmp.ne.s32.totalorder %s7217_s3, %s6249_s26  ;;  %p6256_p8 = scmp.lt.u32.totalorder %s6249_s26, %s7217_s3 }
  0x24   : > { %p6252_p2 = pnand %p6250_p6, %p6223_p7 }
  0x26   : > { %p6253_p3 = pneg %p6252_p2 }
  0x28   : > { %p6258_p9 = pnand %p6256_p8, %p6253_p3 }
  0x2a   : > { %6261 = shalt.err (!%p6258_p9)
}
  0x2b   : > { %s6262_s27 = scalar_lea.vmem %s6364_s8, 8192  ;;  %p6270_p13 = scmp.lt.s32.totalorder %s6364_s8, %s6364_s8 }
  0x2c   : > { %p6263_p10 = scmp.ne.s32.totalorder %s6364_s8, %s6262_s27  ;;  %p6271_p0 = scmp.lt.s32.totalorder %s6262_s27, %s6262_s27 }
  0x2e   : > { %p6265_p11 = pnand %p6263_p10, %p6223_p7  ;;  %p6272_p1 = por %p6271_p0, %p6270_p13 }
  0x30   : > { %p6266_p12 = pneg %p6265_p11 }
  0x32   : > { %p6273_p4 = pnand %p6272_p1, %p6266_p12 }
  0x34   : > { %6276 = shalt.err (!%p6273_p4)
}
  0x35   : > { %5219 = dma.hbm_to_vmem [thread:$0]  (!%p6360_p5), %s7217_s3, 8192, %s6364_s8, [#allocation5], %s6295_s18, %s6295_s18, %s6296_s19  }
  0x36   : > { %p7228_p6 = scmp.ne.s32.totalorder %s7225_s28, 0 }
  0x37   : > { %p7229_p2 = scmp.ne.s32.totalorder (!%p7228_p6), %s7226_s29, 0 }
  0x38   : > { %264 = sbr.rel (%p7228_p6) target bundleno = 3122 (0xc32), region = 48 }
  0x3f   : > { %6282 = dma.done.wait (%p7229_p2), [#allocation3], 4096  }
  0x40   : > { %6284 = vsyncadd (%p7229_p2), [#allocation3], 4294963200 }
  0x41   : > { %6286 = dma.done.wait (%p7229_p2), [#allocation5], 8192  }
  0x42   : > { %6288 = vsyncadd (%p7229_p2), [#allocation5], 4294959104  ;;  %v6297_v0 = vmov 0   ;;  %s4308_s8 = sshll.u32 %s4299_s25, 4  ;;  %v5237_v1 = vld [vmem:[%s7215_s1 + $0x4] ss:$8 sps:$4 sm:$0xff]   ;;  %v347_v44 = vlaneseq }
  0x43   : > { %517 = vmatprep.mubr.bf16.mxu0 %v6297_v0  ;;  %p301_p5 = scmp.lt.s32.totalorder %s4308_s8, 31  ;;  %v5239_v2 = vld [vmem:[%s7215_s1] ss:$8 sps:$4 sm:$0xff]   ;;  %485 = vmatprep.subr.bf16.mxu0 %v5237_v1  ;;  %v5240_v3 = vld [vmem:[%s7215_s1 + $0x14] ss:$8 sps:$4 sm:$0xff]  }
  0x44   : > { %486 = vmatpush1.bf16.msra.mxu0 %v5239_v2  ;;  %v5242_v4 = vld [vmem:[%s7215_s1 + $0x10] ss:$8 sps:$4 sm:$0xff]   ;;  %v5243_v5 = vld [vmem:[%s7215_s1 + $0x24] ss:$8 sps:$4 sm:$0xff]   ;;  %v5245_v6 = vld [vmem:[%s7215_s1 + $0x20] ss:$8 sps:$4 sm:$0xff]  }
  0x45   : > { %s7231_s8 = smov (!%p301_p5, %s4308_s8), 31  ;;  %487 = vmatprep.subr.bf16.mxu0 %v5240_v3  ;;  %v5246_v7 = vld [vmem:[%s7215_s1 + $0x34] ss:$8 sps:$4 sm:$0xff]   ;;  %v5248_v8 = vld [vmem:[%s7215_s1 + $0x30] ss:$8 sps:$4 sm:$0xff]   ;;  %v5269_v25 = vld [vmem:[#allocation2 + $0x40] sm:$0xff]  }
  0x46   : > { %s4309_s21 = sshll.u32 %s7231_s8, 2  ;;  %v5249_v9 = vld [vmem:[%s7215_s1 + $0x44] ss:$8 sps:$4 sm:$0xff]   ;;  %v5251_v10 = vld [vmem:[%s7215_s1 + $0x40] ss:$8 sps:$4 sm:$0xff]   ;;  %4693 = vmatprep.subr.bf16.mxu1 %v5269_v25  ;;  %v5273_v29 = vld [vmem:[#allocation2 + $0x50] sm:$0xff]  }
  0x47   : > { %s6453_s12 = scalar_lea.vmem %s7214_s0, %s4309_s21  ;;  %v5252_v11 = vld [vmem:[%s7215_s1 + $0x54] ss:$8 sps:$4 sm:$0xff]   ;;  %v5254_v12 = vld [vmem:[%s7215_s1 + $0x50] ss:$8 sps:$4 sm:$0xff]   ;;  %v5255_v13 = vld [vmem:[%s7215_s1 + $0x64] ss:$8 sps:$4 sm:$0xff]  }
  0x48   : > { %488 = vmatpush1.bf16.msra.mxu0 %v5242_v4  ;;  %v5257_v14 = vld [vmem:[%s7215_s1 + $0x60] ss:$8 sps:$4 sm:$0xff]   ;;  %v5258_v15 = vld [vmem:[%s7215_s1 + $0x74] ss:$8 sps:$4 sm:$0xff]   ;;  %v5260_v16 = vld [vmem:[%s7215_s1 + $0x70] ss:$8 sps:$4 sm:$0xff]  }
  0x49   : > { %489 = vmatprep.subr.bf16.mxu0 %v5243_v5  ;;  %v5261_v17 = vld [vmem:[%s6453_s12] sm:$0xff]   ;;  %v5262_v18 = vld [vmem:[%s6453_s12 + $0x8] sm:$0xff]   ;;  %v5263_v19 = vld [vmem:[%s6453_s12 + $0x10] sm:$0xff]   ;;  %v6497_v45 = vshrl.u32 %v347_v44, 7  ;;  %s4311_s29 = sshll.u32 %s7231_s8, 3 }
  0x4a   : > { %v5264_v20 = vld [vmem:[%s6453_s12 + $0x18] sm:$0xff]   ;;  %v5265_v21 = vld [vmem:[%s6453_s12 + $0x20] sm:$0xff]   ;;  %v5266_v22 = vld [vmem:[%s6453_s12 + $0x28] sm:$0xff]   ;;  %s7177_s22 = scalar_lea.vmem %s7221_s7, %s4311_s29 }
  0x4b   : > { %v5267_v23 = vld [vmem:[%s6453_s12 + $0x30] sm:$0xff]   ;;  %v5268_v24 = vld [vmem:[%s6453_s12 + $0x38] sm:$0xff]   ;;  %v5270_v26 = vld [vmem:[#allocation2] sm:$0xff]   ;;  %v349_v46 = vsub.s32 0, %v6497_v45  ;;  %v353_v48 = vsub.s32 1, %v6497_v45 }
  0x4c   : > { %490 = vmatpush1.bf16.msra.mxu0 %v5245_v6  ;;  %4694 = vmatpush3.bf16.msra.mxu1 %v5270_v26  ;;  %v5271_v27 = vld [vmem:[#allocation2 + $0x48] sm:$0xff]   ;;  %v5274_v30 = vld [vmem:[#allocation2 + $0x10] sm:$0xff]   ;;  %v5275_v31 = vld [vmem:[#allocation2 + $0x58] sm:$0xff]  }
  0x4d   : > { %491 = vmatprep.subr.bf16.mxu0 %v5246_v7  ;;  %v5272_v28 = vld [vmem:[#allocation2 + $0x8] sm:$0xff]   ;;  %4695 = vmatprep.subr.bf16.mxu1 %v5271_v27  ;;  %v5276_v32 = vld [vmem:[#allocation2 + $0x18] sm:$0xff]   ;;  %v5277_v33 = vld [vmem:[#allocation2 + $0x60] sm:$0xff]  }
  0x4e   : > { %v5278_v34 = vld [vmem:[#allocation2 + $0x20] sm:$0xff]   ;;  %v5279_v35 = vld [vmem:[#allocation2 + $0x68] sm:$0xff]   ;;  %v5281_v37 = vld [vmem:[#allocation2 + $0x70] sm:$0xff]  }
  0x4f   : > { %v5280_v36 = vld [vmem:[#allocation2 + $0x28] sm:$0xff]   ;;  %v5282_v38 = vld [vmem:[#allocation2 + $0x30] sm:$0xff]   ;;  %v5283_v39 = vld [vmem:[#allocation2 + $0x78] sm:$0xff]  }
  0x50   : > { %492 = vmatpush1.bf16.msra.mxu0 %v5248_v8  ;;  %4696 = vmatpush3.bf16.msra.mxu1 %v5272_v28  ;;  %v5284_v40 = vld [vmem:[#allocation2 + $0x38] sm:$0xff]   ;;  %v5285_v41 = vld [vmem:[#allocation4] sm:$0xff]   ;;  %v5286_v42 = vld [vmem:[#allocation4 + $0x8] sm:$0xff]  }
  0x51   : > { %493 = vmatprep.subr.bf16.mxu0 %v5249_v9  ;;  %4697 = vmatprep.subr.bf16.mxu1 %v5273_v29  ;;  %v5287_v43 = vld [vmem:[#allocation4 + $0x10] sm:$0xff]   ;;  %v345_v47 = vld [vmem:[%s7218_s4] sm:$0x3] }
  0x52   : > { %v6506_v49 = vrot.slane %v345_v47, %v349_v46  ;;  %v6510_v50 = vrot.slane %v345_v47, %v353_v48 }
  0x54   : > { %494 = vmatpush1.bf16.msra.mxu0 %v5251_v10  ;;  %4698 = vmatpush3.bf16.msra.mxu1 %v5274_v30 }
  0x55   : > { %495 = vmatprep.subr.bf16.mxu0 %v5252_v11  ;;  %4699 = vmatprep.subr.bf16.mxu1 %v5275_v31 }
  0x58   : > { %496 = vmatpush1.bf16.msra.mxu0 %v5254_v12  ;;  %4700 = vmatpush3.bf16.msra.mxu1 %v5276_v32 }
  0x59   : > { %497 = vmatprep.subr.bf16.mxu0 %v5255_v13  ;;  %4701 = vmatprep.subr.bf16.mxu1 %v5277_v33 }
  0x5c   : > { %498 = vmatpush1.bf16.msra.mxu0 %v5257_v14  ;;  %4702 = vmatpush3.bf16.msra.mxu1 %v5278_v34 }
  0x5d   : > { %499 = vmatprep.subr.bf16.mxu0 %v5258_v15  ;;  %4703 = vmatprep.subr.bf16.mxu1 %v5279_v35 }
  0x60   : > { %500 = vmatpush1.bf16.msra.mxu0 %v5260_v16  ;;  %4704 = vmatpush3.bf16.msra.mxu1 %v5280_v36 }
  0x61   : > { %4705 = vmatprep.subr.bf16.mxu1 %v5281_v37  ;;  %4949 = vmatprep.subr.bf16.mxu0 %v5285_v41 }
  0x63   : > { %518 = vmatmul.mubr.bf16.vlgmr.msra.gmra.mrb[0].mxu0 %v5261_v17 }
  0x64   : > { %527 = vmatprep.mubr.bf16.mxu0 %v6297_v0  ;;  %4706 = vmatpush3.bf16.msra.mxu1 %v5282_v38 }
  0x65   : > { %4707 = vmatprep.subr.bf16.mxu1 %v5283_v39  ;;  %4950 = vmatpush3.bf16.msra.mxu0 %v5285_v41 }
  0x66   : > { %4951 = vmatprep.subr.bf16.mxu0 %v5286_v42 }
  0x68   : > { %4708 = vmatpush3.bf16.msra.mxu1 %v5284_v40 }
  0x69   : > { %4952 = vmatpush3.bf16.msra.mxu0 %v5286_v42 }
  0x6a   : > { %4953 = vmatprep.subr.bf16.mxu0 %v5287_v43 }
  0x6b   : > { %528 = vmatmul.mubr.bf16.gmra.mrb[4].mxu0 %v5262_v18 }
  0x6c   : > { %537 = vmatprep.mubr.bf16.mxu0 %v6297_v0 }
  0x6d   : > { %4954 = vmatpush3.bf16.msra.mxu0 %v5287_v43 }
  0x73   : > { %538 = vmatmul.mubr.bf16.gmra.mrb[8].mxu0 %v5263_v19 }
  0x74   : > { %547 = vmatprep.mubr.bf16.mxu0 %v6297_v0 }
  0x7b   : > { %548 = vmatmul.mubr.bf16.gmra.mrb[12].mxu0 %v5264_v20 }
  0x7c   : > { %557 = vmatprep.mubr.bf16.mxu0 %v6297_v0 }
  0x83   : > { %558 = vmatmul.mubr.bf16.gmra.mrb[16].mxu0 %v5265_v21 }
  0x84   : > { %567 = vmatprep.mubr.bf16.mxu0 %v6297_v0 }
  0x8b   : > { %568 = vmatmul.mubr.bf16.gmra.mrb[20].mxu0 %v5266_v22 }
  0x8c   : > { %577 = vmatprep.mubr.bf16.mxu0 %v6297_v0 }
  0x93   : > { %578 = vmatmul.mubr.bf16.gmra.mrb[24].mxu0 %v5267_v23 }
  0x94   : > { %587 = vmatprep.mubr.bf16.mxu0 %v6297_v0 }
  0x9b   : > { %588 = vmatmul.mubr.bf16.gmra.mrb[28].mxu0 %v5268_v24 }
 0x136   : > { %v519_v51 = vpop.f32.mrb[0].mxu0 }
 0x137   : > { %v6513_v52 = vadd.f32 %v519_v51, %v6506_v49  ;;  %v521_v53 = vpop.f32.mrb[1].mxu0 }
 0x138   : > { %v6516_v54 = vadd.f32 %v521_v53, %v6510_v50  ;;  %v523_v55 = vpop.f32.mrb[2].mxu0 }
 0x139   : > { %v4336_v56 = vmul.f32 -1.442695, %v6513_v52  ;;  %v6520_v57 = vadd.f32 %v523_v55, %v6506_v49  ;;  %v525_v58 = vpop.f32.mrb[3].mxu0 }
 0x13a   : > { %v4337_v59 = vmul.f32 -1.442695, %v6516_v54  ;;  %v6524_v60 = vadd.f32 %v525_v58, %v6510_v50 }
 0x13b   : > { %5389 = vpow2.f32 %v4336_v56  ;;  %v4338_v61 = vmul.f32 -1.442695, %v6520_v57 }
 0x13c   : > { %5391 = vpow2.f32 %v4337_v59  ;;  %v4339_v62 = vmul.f32 -1.442695, %v6524_v60 }
 0x13d   : > { %5393 = vpow2.f32 %v4338_v61 }
 0x13e   : > { %5395 = vpow2.f32 %v4339_v62  ;;  %v529_v63 = vpop.f32.mrb[4].mxu0 }
 0x13f   : > { %v6529_v1 = vadd.f32 %v529_v63, %v6506_v49  ;;  %v531_v2 = vpop.f32.mrb[5].mxu0 }
 0x140   : > { %v6532_v3 = vadd.f32 %v531_v2, %v6510_v50  ;;  %v533_v4 = vpop.f32.mrb[6].mxu0 }
 0x141   : > { %v4340_v5 = vmul.f32 -1.442695, %v6529_v1  ;;  %v6536_v6 = vadd.f32 %v533_v4, %v6506_v49  ;;  %v535_v7 = vpop.f32.mrb[7].mxu0 }
 0x142   : > { %v4341_v8 = vmul.f32 -1.442695, %v6532_v3  ;;  %v6540_v9 = vadd.f32 %v535_v7, %v6510_v50 }
 0x143   : > { %5397 = vpow2.f32 %v4340_v5  ;;  %v4342_v10 = vmul.f32 -1.442695, %v6536_v6 }
 0x144   : > { %5399 = vpow2.f32 %v4341_v8  ;;  %v4343_v11 = vmul.f32 -1.442695, %v6540_v9 }
 0x145   : > { %v5390_v12 = vpop.eup %5389  ;;  %5401 = vpow2.f32 %v4342_v10 }
 0x146   : > { %v5392_v13 = vpop.eup %5391  ;;  %v694_v14 = vadd.f32 1.0, %v5390_v12  ;;  %5403 = vpow2.f32 %v4343_v11  ;;  %v539_v15 = vpop.f32.mrb[8].mxu0 }
 0x147   : > { %v5394_v16 = vpop.eup %5393  ;;  %v695_v17 = vadd.f32 1.0, %v5392_v13  ;;  %v6545_v18 = vadd.f32 %v539_v15, %v6506_v49  ;;  %v541_v19 = vpop.f32.mrb[9].mxu0 }
 0x148   : > { %v5396_v20 = vpop.eup %5395  ;;  %5405 = vrcp.f32 %v694_v14  ;;  %v696_v21 = vadd.f32 1.0, %v5394_v16  ;;  %v6548_v22 = vadd.f32 %v541_v19, %v6510_v50  ;;  %v543_v23 = vpop.f32.mrb[10].mxu0 }
 0x149   : > { %5407 = vrcp.f32 %v695_v17  ;;  %v697_v24 = vadd.f32 1.0, %v5396_v20  ;;  %v4344_v25 = vmul.f32 -1.442695, %v6545_v18  ;;  %v6552_v26 = vadd.f32 %v543_v23, %v6506_v49  ;;  %v545_v27 = vpop.f32.mrb[11].mxu0 }
 0x14a   : > { %5409 = vrcp.f32 %v696_v21  ;;  %v4345_v28 = vmul.f32 -1.442695, %v6548_v22  ;;  %v6556_v29 = vadd.f32 %v545_v27, %v6510_v50 }
 0x14b   : > { %5411 = vrcp.f32 %v697_v24  ;;  %v4346_v30 = vmul.f32 -1.442695, %v6552_v26 }
 0x14c   : > { %5413 = vpow2.f32 %v4344_v25  ;;  %v4347_v31 = vmul.f32 -1.442695, %v6556_v29 }
 0x14d   : > { %v5398_v32 = vpop.eup %5397  ;;  %5415 = vpow2.f32 %v4345_v28 }
 0x14e   : > { %v5400_v33 = vpop.eup %5399  ;;  %v698_v34 = vadd.f32 1.0, %v5398_v32  ;;  %5417 = vpow2.f32 %v4346_v30  ;;  %v549_v35 = vpop.f32.mrb[12].mxu0 }
 0x14f   : > { %v5402_v36 = vpop.eup %5401  ;;  %v699_v37 = vadd.f32 1.0, %v5400_v33  ;;  %5419 = vpow2.f32 %v4347_v31  ;;  %v6561_v38 = vadd.f32 %v549_v35, %v6506_v49  ;;  %v551_v39 = vpop.f32.mrb[13].mxu0 }
 0x150   : > { %v5404_v40 = vpop.eup %5403  ;;  %5421 = vrcp.f32 %v698_v34  ;;  %v700_v41 = vadd.f32 1.0, %v5402_v36  ;;  %v6564_v42 = vadd.f32 %v551_v39, %v6510_v50  ;;  %v553_v43 = vpop.f32.mrb[14].mxu0 }
 0x151   : > { %5423 = vrcp.f32 %v699_v37  ;;  %v701_v44 = vadd.f32 1.0, %v5404_v40  ;;  %v4348_v47 = vmul.f32 -1.442695, %v6561_v38  ;;  %v6568_v51 = vadd.f32 %v553_v43, %v6506_v49  ;;  %v555_v53 = vpop.f32.mrb[15].mxu0 }
 0x152   : > { %v5406_v55 = vpop.eup %5405  ;;  %5425 = vrcp.f32 %v700_v41  ;;  %v4349_v56 = vmul.f32 -1.442695, %v6564_v42  ;;  %v6572_v58 = vadd.f32 %v555_v53, %v6510_v50 }
 0x153   : > { %v5408_v59 = vpop.eup %5407  ;;  %5427 = vrcp.f32 %v701_v44  ;;  %v4350_v61 = vmul.f32 -1.442695, %v6568_v51  ;;  %v790_v4 = vmul.f32 %v5406_v55, %v6513_v52 }
 0x154   : > { %v5410_v62 = vpop.eup %5409  ;;  %5429 = vpow2.f32 %v4348_v47  ;;  %v4351_v63 = vmul.f32 -1.442695, %v6572_v58  ;;  %v791_v10 = vmul.f32 %v5408_v59, %v6516_v54 }
 0x155   : > { %v5412_v2 = vpop.eup %5411  ;;  %v792_v5 = vmul.f32 %v5410_v62, %v6520_v57  ;;  %5431 = vpow2.f32 %v4349_v56 }
 0x156   : > { %v5414_v7 = vpop.eup %5413  ;;  %5433 = vpow2.f32 %v4350_v61  ;;  %v559_v8 = vpop.f32.mrb[16].mxu0  ;;  %v793_v11 = vmul.f32 %v5412_v2, %v6524_v60 }
 0x157   : > { %v5416_v12 = vpop.eup %5415  ;;  %v702_v13 = vadd.f32 1.0, %v5414_v7  ;;  %5435 = vpow2.f32 %v4351_v63  ;;  %v6581_v14 = vadd.f32 %v559_v8, %v6506_v49  ;;  %v561_v15 = vpop.f32.mrb[17].mxu0  ;;  %v822_v16 = vpack.c.bf16 %v792_v5, %v790_v4 }
 0x158   : > { %v5418_v17 = vpop.eup %5417  ;;  %v703_v52 = vadd.f32 1.0, %v5416_v12  ;;  %v6584_v57 = vadd.f32 %v561_v15, %v6510_v50  ;;  %v563_v19 = vpop.f32.mrb[18].mxu0  ;;  %v823_v20 = vpack.c.bf16 %v793_v11, %v791_v10 }
 0x159   : > { %v5420_v21 = vpop.eup %5419  ;;  %5437 = vrcp.f32 %v702_v13  ;;  %v704_v54 = vadd.f32 1.0, %v5418_v17  ;;  %v4352_v60 = vmul.f32 -1.442695, %v6581_v14  ;;  %v6588_v23 = vadd.f32 %v563_v19, %v6506_v49  ;;  %v565_v24 = vpop.f32.mrb[19].mxu0 }
 0x15a   : > { %v5422_v25 = vpop.eup %5421  ;;  %5439 = vrcp.f32 %v703_v52  ;;  %v705_v27 = vadd.f32 1.0, %v5420_v21  ;;  %v4353_v28 = vmul.f32 -1.442695, %v6584_v57  ;;  %v6592_v30 = vadd.f32 %v565_v24, %v6510_v50  ;;  %1005 = vmatprep.mubr.bf16.mxu1 %v823_v20 }
 0x15b   : > { %v5424_v31 = vpop.eup %5423  ;;  %5441 = vrcp.f32 %v704_v54  ;;  %v4354_v32 = vmul.f32 -1.442695, %v6588_v23  ;;  %1006 = vmatmul.mubr.bf16.vlgmr.msra.gmra.mrb[0].mxu1 %v822_v16  ;;  %v794_v36 = vmul.f32 %v5422_v25, %v6529_v1 }
 0x15c   : > { %v5426_v33 = vpop.eup %5425  ;;  %5443 = vrcp.f32 %v705_v27  ;;  %v4355_v34 = vmul.f32 -1.442695, %v6592_v30  ;;  %v795_v40 = vmul.f32 %v5424_v31, %v6532_v3 }
 0x15d   : > { %v5428_v35 = vpop.eup %5427  ;;  %v796_v37 = vmul.f32 %v5426_v33, %v6536_v6  ;;  %5445 = vpow2.f32 %v4352_v60 }
 0x15e   : > { %v5430_v39 = vpop.eup %5429  ;;  %v797_v41 = vmul.f32 %v5428_v35, %v6540_v9  ;;  %5447 = vpow2.f32 %v4353_v28  ;;  %v569_v43 = vpop.f32.mrb[20].mxu0 }
 0x15f   : > { %v5432_v44 = vpop.eup %5431  ;;  %v706_v47 = vadd.f32 1.0, %v5430_v39  ;;  %5449 = vpow2.f32 %v4354_v32  ;;  %v6601_v53 = vadd.f32 %v569_v43, %v6506_v49  ;;  %v571_v55 = vpop.f32.mrb[21].mxu0  ;;  %v824_v56 = vpack.c.bf16 %v796_v37, %v794_v36 }
 0x160   : > { %v5434_v59 = vpop.eup %5433  ;;  %v707_v1 = vadd.f32 1.0, %v5432_v44  ;;  %5451 = vpow2.f32 %v4355_v34  ;;  %v6604_v6 = vadd.f32 %v571_v55, %v6510_v50  ;;  %v573_v61 = vpop.f32.mrb[22].mxu0  ;;  %v825_v3 = vpack.c.bf16 %v797_v41, %v795_v40 }
 0x161   : > { %v5436_v62 = vpop.eup %5435  ;;  %5453 = vrcp.f32 %v706_v47  ;;  %v708_v9 = vadd.f32 1.0, %v5434_v59  ;;  %v4356_v63 = vmul.f32 -1.442695, %v6601_v53  ;;  %v6608_v2 = vadd.f32 %v573_v61, %v6506_v49  ;;  %v575_v4 = vpop.f32.mrb[23].mxu0 }
 0x162   : > { %5455 = vrcp.f32 %v707_v1  ;;  %v709_v5 = vadd.f32 1.0, %v5436_v62  ;;  %v4357_v7 = vmul.f32 -1.442695, %v6604_v6  ;;  %v6612_v8 = vadd.f32 %v575_v4, %v6510_v50  ;;  %1013 = vmatprep.mubr.bf16.mxu1 %v825_v3 }
 0x163   : > { %v5438_v10 = vpop.eup %5437  ;;  %5457 = vrcp.f32 %v708_v9  ;;  %v4358_v11 = vmul.f32 -1.442695, %v6608_v2  ;;  %1014 = vmatmul.mubr.bf16.gmra.mrb[4].mxu1 %v824_v56 }
 0x164   : > { %v5440_v12 = vpop.eup %5439  ;;  %5459 = vrcp.f32 %v709_v5  ;;  %v4359_v13 = vmul.f32 -1.442695, %v6612_v8  ;;  %v798_v17 = vmul.f32 %v5438_v10, %v6545_v18 }
 0x165   : > { %v5442_v15 = vpop.eup %5441  ;;  %5461 = vpow2.f32 %v4356_v63  ;;  %v799_v21 = vmul.f32 %v5440_v12, %v6548_v22 }
 0x166   : > { %v5444_v16 = vpop.eup %5443  ;;  %v800_v52 = vmul.f32 %v5442_v15, %v6552_v26  ;;  %5463 = vpow2.f32 %v4357_v7  ;;  %v579_v19 = vpop.f32.mrb[24].mxu0 }
 0x167   : > { %v5446_v20 = vpop.eup %5445  ;;  %v801_v54 = vmul.f32 %v5444_v16, %v6556_v29  ;;  %5465 = vpow2.f32 %v4358_v11  ;;  %v6621_v60 = vadd.f32 %v579_v19, %v6506_v49  ;;  %v581_v24 = vpop.f32.mrb[25].mxu0 }
 0x168   : > { %v5448_v25 = vpop.eup %5447  ;;  %v710_v27 = vadd.f32 1.0, %v5446_v20  ;;  %5467 = vpow2.f32 %v4359_v13  ;;  %v6624_v28 = vadd.f32 %v581_v24, %v6510_v50  ;;  %v583_v18 = vpop.f32.mrb[26].mxu0  ;;  %v826_v26 = vpack.c.bf16 %v800_v52, %v798_v17 }
 0x169   : > { %v5450_v31 = vpop.eup %5449  ;;  %v711_v32 = vadd.f32 1.0, %v5448_v25  ;;  %v6627_v33 = vadd.f32 %v583_v18, %v6506_v49  ;;  %v585_v22 = vpop.f32.mrb[27].mxu0  ;;  %v827_v29 = vpack.c.bf16 %v801_v54, %v799_v21  ;;  %v4360_v36 = vmul.f32 -1.442695, %v6621_v60 }
 0x16a   : > { %v5452_v34 = vpop.eup %5451  ;;  %5469 = vrcp.f32 %v710_v27  ;;  %v712_v35 = vadd.f32 1.0, %v5450_v31  ;;  %v6631_v37 = vadd.f32 %v585_v22, %v6510_v50  ;;  %v4361_v41 = vmul.f32 -1.442695, %v6624_v28 }
 0x16b   : > { %v5454_v39 = vpop.eup %5453  ;;  %5471 = vrcp.f32 %v711_v32  ;;  %v713_v40 = vadd.f32 1.0, %v5452_v34  ;;  %1021 = vmatprep.mubr.bf16.mxu1 %v827_v29  ;;  %v4362_v44 = vmul.f32 -1.442695, %v6627_v33 }
 0x16c   : > { %v5456_v43 = vpop.eup %5455  ;;  %5473 = vrcp.f32 %v712_v35  ;;  %1022 = vmatmul.mubr.bf16.gmra.mrb[8].mxu1 %v826_v26  ;;  %v4363_v55 = vmul.f32 -1.442695, %v6631_v37  ;;  %v802_v59 = vmul.f32 %v5454_v39, %v6561_v38 }
 0x16d   : > { %v5458_v47 = vpop.eup %5457  ;;  %5475 = vrcp.f32 %v713_v40 }
 0x16e   : > { %v5460_v56 = vpop.eup %5459  ;;  %v804_v1 = vmul.f32 %v5458_v47, %v6568_v51  ;;  %5477 = vpow2.f32 %v4360_v36  ;;  %v589_v61 = vpop.f32.mrb[28].mxu0  ;;  %v803_v51 = vmul.f32 %v5456_v43, %v6564_v42 }
 0x16f   : > { %v5462_v3 = vpop.eup %5461  ;;  %v805_v62 = vmul.f32 %v5460_v56, %v6572_v58  ;;  %5479 = vpow2.f32 %v4361_v41  ;;  %v6640_v9 = vadd.f32 %v589_v61, %v6506_v49  ;;  %v591_v63 = vpop.f32.mrb[29].mxu0 }
 0x170   : > { %v5464_v4 = vpop.eup %5463  ;;  %v714_v5 = vadd.f32 1.0, %v5462_v3  ;;  %5481 = vpow2.f32 %v4362_v44  ;;  %v6643_v7 = vadd.f32 %v591_v63, %v6510_v50  ;;  %v593_v10 = vpop.f32.mrb[30].mxu0  ;;  %v828_v38 = vpack.c.bf16 %v804_v1, %v802_v59 }
 0x171   : > { %v5466_v11 = vpop.eup %5465  ;;  %v715_v12 = vadd.f32 1.0, %v5464_v4  ;;  %5483 = vpow2.f32 %v4363_v55  ;;  %v6647_v58 = vadd.f32 %v593_v10, %v6506_v49  ;;  %v595_v13 = vpop.f32.mrb[31].mxu0  ;;  %v4364_v17 = vmul.f32 -1.442695, %v6640_v9 }
 0x172   : > { %v5468_v15 = vpop.eup %5467  ;;  %5485 = vrcp.f32 %v714_v5  ;;  %v716_v16 = vadd.f32 1.0, %v5466_v11  ;;  %v6651_v52 = vadd.f32 %v595_v13, %v6510_v50  ;;  %v4365_v20 = vmul.f32 -1.442695, %v6643_v7 }
 0x173   : > { %5487 = vrcp.f32 %v715_v12  ;;  %v717_v19 = vadd.f32 1.0, %v5468_v15  ;;  %v829_v21 = vpack.c.bf16 %v805_v62, %v803_v51  ;;  %v4366_v54 = vmul.f32 -1.442695, %v6647_v58 }
 0x174   : > { %v5470_v42 = vpop.eup %5469  ;;  %5489 = vrcp.f32 %v716_v16  ;;  %v4367_v24 = vmul.f32 -1.442695, %v6651_v52 }
 0x175   : > { %v5472_v49 = vpop.eup %5471  ;;  %5491 = vrcp.f32 %v717_v19  ;;  %1029 = vmatprep.mubr.bf16.mxu1 %v829_v21  ;;  %v806_v50 = vmul.f32 %v5470_v42, %v6581_v14 }
 0x176   : > { %v5474_v25 = vpop.eup %5473  ;;  %5493 = vpow2.f32 %v4364_v17  ;;  %1030 = vmatmul.mubr.bf16.gmra.mrb[12].mxu1 %v828_v38  ;;  %v807_v31 = vmul.f32 %v5472_v49, %v6584_v57 }
 0x177   : > { %v5476_v27 = vpop.eup %5475  ;;  %v808_v18 = vmul.f32 %v5474_v25, %v6588_v23  ;;  %5495 = vpow2.f32 %v4365_v20  ;;  %v5290_v25 = vld [vmem:[#allocation4 + $0x28] sm:$0xff]  }
 0x178   : > { %v5478_v26 = vpop.eup %5477  ;;  %v809_v32 = vmul.f32 %v5476_v27, %v6592_v30  ;;  %5497 = vpow2.f32 %v4366_v54  ;;  %v5295_v27 = vld [vmem:[#allocation4 + $0x50] sm:$0xff]  }
 0x179   : > { %v5480_v22 = vpop.eup %5479  ;;  %v718_v29 = vadd.f32 1.0, %v5478_v26  ;;  %5499 = vpow2.f32 %v4367_v24  ;;  %v830_v34 = vpack.c.bf16 %v808_v18, %v806_v50  ;;  %v5289_v24 = vld [vmem:[#allocation4 + $0x20] sm:$0xff]   ;;  %v5296_v50 = vld [vmem:[#allocation4 + $0x58] sm:$0xff]  }
 0x17a   : > { %v5482_v35 = vpop.eup %5481  ;;  %v719_v36 = vadd.f32 1.0, %v5480_v22  ;;  %v831_v39 = vpack.c.bf16 %v809_v32, %v807_v31  ;;  %v6675_v26 = vld [vmem:[%s7219_s5] ss:$0 sm:$0xff] }
 0x17b   : > { %v5484_v40 = vpop.eup %5483  ;;  %5501 = vrcp.f32 %v718_v29  ;;  %v720_v41 = vadd.f32 1.0, %v5482_v35 }
 0x17c   : > { %v5486_v14 = vpop.eup %5485  ;;  %5503 = vrcp.f32 %v719_v36  ;;  %v721_v23 = vadd.f32 1.0, %v5484_v40  ;;  %1037 = vmatprep.mubr.bf16.mxu1 %v831_v39 }
 0x17d   : > { %v5488_v43 = vpop.eup %5487  ;;  %5505 = vrcp.f32 %v720_v41  ;;  %v810_v44 = vmul.f32 %v5486_v14, %v6601_v53 }
 0x17e   : > { %v5490_v57 = vpop.eup %5489  ;;  %5507 = vrcp.f32 %v721_v23  ;;  %1038 = vmatmul.mubr.bf16.gmra.mrb[16].mxu1 %v830_v34  ;;  %v811_v56 = vmul.f32 %v5488_v43, %v6604_v6 }
 0x17f   : > { %v5492_v30 = vpop.eup %5491  ;;  %v812_v47 = vmul.f32 %v5490_v57, %v6608_v2 }
 0x180   : > { %v5494_v55 = vpop.eup %5493  ;;  %v813_v59 = vmul.f32 %v5492_v30, %v6612_v8 }
 0x181   : > { %v5496_v1 = vpop.eup %5495  ;;  %v722_v61 = vadd.f32 1.0, %v5494_v55  ;;  %v832_v3 = vpack.c.bf16 %v812_v47, %v810_v44 }
 0x182   : > { %v5498_v62 = vpop.eup %5497  ;;  %v723_v63 = vadd.f32 1.0, %v5496_v1  ;;  %v833_v4 = vpack.c.bf16 %v813_v59, %v811_v56 }
 0x183   : > { %v5500_v5 = vpop.eup %5499  ;;  %5509 = vrcp.f32 %v722_v61  ;;  %v724_v10 = vadd.f32 1.0, %v5498_v62 }
 0x184   : > { %5511 = vrcp.f32 %v723_v63  ;;  %v725_v38 = vadd.f32 1.0, %v5500_v5  ;;  %1045 = vmatprep.mubr.bf16.mxu1 %v833_v4 }
 0x185   : > { %v5502_v53 = vpop.eup %5501  ;;  %5513 = vrcp.f32 %v724_v10 }
 0x186   : > { %v5504_v2 = vpop.eup %5503  ;;  %5515 = vrcp.f32 %v725_v38  ;;  %1046 = vmatmul.mubr.bf16.gmra.mrb[20].mxu1 %v832_v3  ;;  %v814_v8 = vmul.f32 %v5502_v53, %v6621_v60 }
 0x187   : > { %v5506_v6 = vpop.eup %5505  ;;  %v815_v12 = vmul.f32 %v5504_v2, %v6624_v28 }
 0x188   : > { %v5508_v11 = vpop.eup %5507  ;;  %v816_v51 = vmul.f32 %v5506_v6, %v6627_v33 }
 0x189   : > { %v817_v13 = vmul.f32 %v5508_v11, %v6631_v37  ;;  %v5288_v37 = vld [vmem:[#allocation4 + $0x18] sm:$0xff]  }
 0x18a   : > { %v834_v15 = vpack.c.bf16 %v816_v51, %v814_v8  ;;  %4955 = vmatprep.subr.bf16.mxu0 %v5288_v37 }
 0x18b   : > { %v835_v16 = vpack.c.bf16 %v817_v13, %v815_v12  ;;  %4956 = vmatpush3.bf16.msra.mxu0 %v5288_v37 }
 0x18c   : > { %4957 = vmatprep.subr.bf16.mxu0 %v5289_v24 }
 0x18d   : > { %v5510_v17 = vpop.eup %5509  ;;  %1053 = vmatprep.mubr.bf16.mxu1 %v835_v16 }
 0x18e   : > { %v5512_v19 = vpop.eup %5511  ;;  %1054 = vmatmul.mubr.bf16.gmra.mrb[24].mxu1 %v834_v15  ;;  %v818_v42 = vmul.f32 %v5510_v17, %v6640_v9  ;;  %v5291_v9 = vld [vmem:[#allocation4 + $0x30] sm:$0xff]  }
 0x18f   : > { %v5514_v20 = vpop.eup %5513  ;;  %v819_v60 = vmul.f32 %v5512_v19, %v6643_v7  ;;  %4958 = vmatpush3.bf16.msra.mxu0 %v5289_v24  ;;  %v5293_v7 = vld [vmem:[#allocation4 + $0x40] sm:$0xff]  }
 0x190   : > { %v5516_v21 = vpop.eup %5515  ;;  %v820_v54 = vmul.f32 %v5514_v20, %v6647_v58  ;;  %4959 = vmatprep.subr.bf16.mxu0 %v5290_v25  ;;  %v5292_v58 = vld [vmem:[#allocation4 + $0x38] sm:$0xff]   ;;  %4981 = vmatprep.subr.bf16.mxu1 %v5293_v7 }
 0x191   : > { %v821_v33 = vmul.f32 %v5516_v21, %v6651_v52  ;;  %v5294_v52 = vld [vmem:[#allocation4 + $0x48] sm:$0xff]   ;;  %4982 = vmatpush3.bf16.msra.mxu1 %v5293_v7 }
 0x192   : > { %v836_v49 = vpack.c.bf16 %v820_v54, %v818_v42  ;;  %4983 = vmatprep.subr.bf16.mxu1 %v5294_v52 }
 0x193   : > { %v837_v28 = vpack.c.bf16 %v821_v33, %v819_v60  ;;  %4960 = vmatpush3.bf16.msra.mxu0 %v5290_v25 }
 0x194   : > { %4961 = vmatprep.subr.bf16.mxu0 %v5291_v9 }
 0x195   : > { %1061 = vmatprep.mubr.bf16.mxu1 %v837_v28  ;;  %4984 = vmatpush3.bf16.msra.mxu1 %v5294_v52 }
 0x196   : > { %1062 = vmatmul.mubr.bf16.gmra.mrb[28].mxu1 %v836_v49  ;;  %4985 = vmatprep.subr.bf16.mxu1 %v5295_v27 }
 0x197   : > { %4962 = vmatpush3.bf16.msra.mxu0 %v5291_v9 }
 0x198   : > { %4963 = vmatprep.subr.bf16.mxu0 %v5292_v58 }
 0x199   : > { %4986 = vmatpush3.bf16.msra.mxu1 %v5295_v27 }
 0x19a   : > { %4987 = vmatprep.subr.bf16.mxu1 %v5296_v50 }
 0x19b   : > { %4964 = vmatpush3.bf16.msra.mxu0 %v5292_v58 }
 0x19d   : > { %4988 = vmatpush3.bf16.msra.mxu1 %v5296_v50 }
 0x22e   : > { %v4709_v18 = vpop.f32.mrb[0].mxu1 }
 0x22f   : > { %v4710_v31 = vpop.f32.mrb[1].mxu1 }
 0x230   : > { %v4711_v32 = vadd.f32 %v4710_v31, %v4709_v18  ;;  %v4712_v22 = vpop.f32.mrb[2].mxu1 }
 0x231   : > { %v4713_v29 = vpop.f32.mrb[3].mxu1 }
 0x232   : > { %v1008_v34 = vadd.f32 %v4711_v32, %v6675_v26  ;;  %v4714_v35 = vadd.f32 %v4713_v29, %v4712_v22 }
 0x234   : > { %v4385_v36 = vmul.f32 -1.442695, %v1008_v34  ;;  %v1011_v39 = vadd.f32 %v4714_v35, %v6675_v26 }
 0x236   : > { %5517 = vpow2.f32 %v4385_v36  ;;  %v4386_v40 = vmul.f32 -1.442695, %v1011_v39  ;;  %v4715_v41 = vpop.f32.mrb[4].mxu1 }
 0x237   : > { %v4716_v14 = vpop.f32.mrb[5].mxu1 }
 0x238   : > { %5519 = vpow2.f32 %v4386_v40  ;;  %v4717_v23 = vadd.f32 %v4716_v14, %v4715_v41  ;;  %v4718_v43 = vpop.f32.mrb[6].mxu1 }
 0x239   : > { %v4719_v57 = vpop.f32.mrb[7].mxu1 }
 0x23a   : > { %v6680_v30 = vadd.f32 %v4717_v23, %v6675_v26  ;;  %v4720_v44 = vadd.f32 %v4719_v57, %v4718_v43 }
 0x23c   : > { %v4387_v47 = vmul.f32 -1.442695, %v6680_v30  ;;  %v6684_v55 = vadd.f32 %v4720_v44, %v6675_v26 }
 0x23e   : > { %5521 = vpow2.f32 %v4387_v47  ;;  %v4388_v56 = vmul.f32 -1.442695, %v6684_v55 }
 0x23f   : > { %v4721_v59 = vpop.f32.mrb[8].mxu1 }
 0x240   : > { %v5518_v1 = vpop.eup %5517  ;;  %5523 = vpow2.f32 %v4388_v56  ;;  %v4722_v61 = vpop.f32.mrb[9].mxu1 }
 0x241   : > { %v1118_v3 = vadd.f32 1.0, %v5518_v1  ;;  %v4723_v62 = vadd.f32 %v4722_v61, %v4721_v59  ;;  %v4724_v63 = vpop.f32.mrb[10].mxu1 }
 0x242   : > { %v5520_v4 = vpop.eup %5519  ;;  %v4725_v5 = vpop.f32.mrb[11].mxu1 }
 0x243   : > { %5525 = vrcp.f32 %v1118_v3  ;;  %v1119_v10 = vadd.f32 1.0, %v5520_v4  ;;  %v6688_v38 = vadd.f32 %v4723_v62, %v6675_v26  ;;  %v4726_v53 = vadd.f32 %v4725_v5, %v4724_v63 }
 0x245   : > { %5527 = vrcp.f32 %v1119_v10  ;;  %v4389_v2 = vmul.f32 -1.442695, %v6688_v38  ;;  %v6692_v6 = vadd.f32 %v4726_v53, %v6675_v26 }
 0x247   : > { %5529 = vpow2.f32 %v4389_v2  ;;  %v4390_v11 = vmul.f32 -1.442695, %v6692_v6 }
 0x248   : > { %v5522_v8 = vpop.eup %5521 }
 0x249   : > { %v1120_v51 = vadd.f32 1.0, %v5522_v8  ;;  %5531 = vpow2.f32 %v4390_v11  ;;  %v4727_v12 = vpop.f32.mrb[12].mxu1 }
 0x24a   : > { %v5524_v13 = vpop.eup %5523  ;;  %v4728_v15 = vpop.f32.mrb[13].mxu1 }
 0x24b   : > { %5533 = vrcp.f32 %v1120_v51  ;;  %v1121_v16 = vadd.f32 1.0, %v5524_v13  ;;  %v4729_v17 = vadd.f32 %v4728_v15, %v4727_v12  ;;  %v4730_v19 = vpop.f32.mrb[14].mxu1 }
 0x24c   : > { %v4731_v20 = vpop.f32.mrb[15].mxu1 }
 0x24d   : > { %v5526_v21 = vpop.eup %5525  ;;  %5535 = vrcp.f32 %v1121_v16  ;;  %v6696_v42 = vadd.f32 %v4729_v17, %v6675_v26  ;;  %v4732_v54 = vadd.f32 %v4731_v20, %v4730_v19 }
 0x24e   : > { %v1166_v28 = vmul.f32 %v5526_v21, %v1008_v34 }
 0x24f   : > { %v5528_v60 = vpop.eup %5527  ;;  %v4391_v33 = vmul.f32 -1.442695, %v6696_v42  ;;  %v6700_v49 = vadd.f32 %v4732_v54, %v6675_v26 }
 0x250   : > { %v1167_v37 = vmul.f32 %v5528_v60, %v1011_v39 }
 0x251   : > { %v5530_v24 = vpop.eup %5529  ;;  %5537 = vpow2.f32 %v4391_v33  ;;  %v4392_v25 = vmul.f32 -1.442695, %v6700_v49  ;;  %v4733_v9 = vpop.f32.mrb[16].mxu1 }
 0x252   : > { %v1122_v58 = vadd.f32 1.0, %v5530_v24  ;;  %v4734_v7 = vpop.f32.mrb[17].mxu1  ;;  %v1182_v52 = vpack.c.bf16 %v1167_v37, %v1166_v28 }
 0x253   : > { %v5532_v27 = vpop.eup %5531  ;;  %5539 = vpow2.f32 %v4392_v25  ;;  %v4735_v50 = vadd.f32 %v4734_v7, %v4733_v9  ;;  %v4736_v18 = vpop.f32.mrb[18].mxu1 }
 0x254   : > { %5541 = vrcp.f32 %v1122_v58  ;;  %v1123_v31 = vadd.f32 1.0, %v5532_v27  ;;  %v4737_v32 = vpop.f32.mrb[19].mxu1  ;;  %4965 = vmatprep.mubr.bf16.mxu0 %v1182_v52 }
 0x255   : > { %v5534_v22 = vpop.eup %5533  ;;  %v6704_v29 = vadd.f32 %v4735_v50, %v6675_v26  ;;  %v4738_v34 = vadd.f32 %v4737_v32, %v4736_v18 }
 0x256   : > { %5543 = vrcp.f32 %v1123_v31  ;;  %v1168_v40 = vmul.f32 %v5534_v22, %v6680_v30 }
 0x257   : > { %v5536_v35 = vpop.eup %5535  ;;  %v4393_v36 = vmul.f32 -1.442695, %v6704_v29  ;;  %v6708_v39 = vadd.f32 %v4738_v34, %v6675_v26 }
 0x258   : > { %v1169_v41 = vmul.f32 %v5536_v35, %v6684_v55 }
 0x259   : > { %5545 = vpow2.f32 %v4393_v36  ;;  %v4394_v14 = vmul.f32 -1.442695, %v6708_v39  ;;  %v4739_v23 = vpop.f32.mrb[20].mxu1 }
 0x25a   : > { %v1183_v43 = vpack.c.bf16 %v1169_v41, %v1168_v40  ;;  %v4740_v57 = vpop.f32.mrb[21].mxu1 }
 0x25b   : > { %v5538_v44 = vpop.eup %5537  ;;  %5547 = vpow2.f32 %v4394_v14  ;;  %v4741_v47 = vadd.f32 %v4740_v57, %v4739_v23  ;;  %v4742_v56 = vpop.f32.mrb[22].mxu1 }
 0x25c   : > { %v1124_v59 = vadd.f32 1.0, %v5538_v44  ;;  %v4743_v1 = vpop.f32.mrb[23].mxu1  ;;  %4966 = vmatmul.mubr.bf16.vlgmr.msra.gmra.mrb[32].mxu0 %v1183_v43 }
 0x25d   : > { %v5540_v61 = vpop.eup %5539  ;;  %v6714_v3 = vadd.f32 %v4741_v47, %v6675_v26  ;;  %v4744_v30 = vadd.f32 %v4743_v1, %v4742_v56 }
 0x25e   : > { %v5542_v62 = vpop.eup %5541  ;;  %5549 = vrcp.f32 %v1124_v59  ;;  %v1125_v55 = vadd.f32 1.0, %v5540_v61 }
 0x25f   : > { %v4395_v63 = vmul.f32 -1.442695, %v6714_v3  ;;  %v6718_v4 = vadd.f32 %v4744_v30, %v6675_v26  ;;  %v1170_v10 = vmul.f32 %v5542_v62, %v6688_v38 }
 0x260   : > { %v5544_v5 = vpop.eup %5543  ;;  %5551 = vrcp.f32 %v1125_v55 }
 0x261   : > { %v1171_v53 = vmul.f32 %v5544_v5, %v6692_v6  ;;  %5553 = vpow2.f32 %v4395_v63  ;;  %v4396_v2 = vmul.f32 -1.442695, %v6718_v4  ;;  %v4745_v11 = vpop.f32.mrb[24].mxu1 }
 0x262   : > { %v4746_v8 = vpop.f32.mrb[25].mxu1 }
 0x263   : > { %v5546_v51 = vpop.eup %5545  ;;  %5555 = vpow2.f32 %v4396_v2  ;;  %v4747_v12 = vadd.f32 %v4746_v8, %v4745_v11  ;;  %v4748_v13 = vpop.f32.mrb[26].mxu1  ;;  %v1184_v15 = vpack.c.bf16 %v1171_v53, %v1170_v10 }
 0x264   : > { %v1126_v16 = vadd.f32 1.0, %v5546_v51  ;;  %v4749_v17 = vpop.f32.mrb[27].mxu1 }
 0x265   : > { %v5548_v19 = vpop.eup %5547  ;;  %v1056_v20 = vadd.f32 %v4747_v12, %v6675_v26  ;;  %v4750_v21 = vadd.f32 %v4749_v17, %v4748_v13  ;;  %4969 = vmatprep.mubr.bf16.mxu0 %v1184_v15  ;;  %v5298_v12 = vld [vmem:[#allocation4 + $0x68] sm:$0xff]   ;;  %v5299_v13 = vld [vmem:[#allocation4 + $0x70] sm:$0xff]   ;;  %v5300_v15 = vld [vmem:[#allocation4 + $0x78] sm:$0xff]  }
 0x266   : > { %5557 = vrcp.f32 %v1126_v16  ;;  %v1127_v38 = vadd.f32 1.0, %v5548_v19  ;;  %v6736_v16 = vld [vmem:[%s7220_s6] ss:$0 sm:$0xff] }
 0x267   : > { %v4397_v6 = vmul.f32 -1.442695, %v1056_v20  ;;  %v1059_v54 = vadd.f32 %v4750_v21, %v6675_v26 }
 0x268   : > { %v5550_v60 = vpop.eup %5549  ;;  %5559 = vrcp.f32 %v1127_v38 }
 0x269   : > { %5561 = vpow2.f32 %v4397_v6  ;;  %v4398_v33 = vmul.f32 -1.442695, %v1059_v54  ;;  %v4751_v28 = vpop.f32.mrb[28].mxu1  ;;  %v1172_v9 = vmul.f32 %v5550_v60, %v6696_v42 }
 0x26a   : > { %v5552_v37 = vpop.eup %5551  ;;  %v4752_v24 = vpop.f32.mrb[29].mxu1 }
 0x26b   : > { %v5554_v25 = vpop.eup %5553  ;;  %v1173_v58 = vmul.f32 %v5552_v37, %v6700_v49  ;;  %5563 = vpow2.f32 %v4398_v33  ;;  %v4753_v7 = vadd.f32 %v4752_v24, %v4751_v28  ;;  %v4754_v52 = vpop.f32.mrb[30].mxu1 }
 0x26c   : > { %v1128_v27 = vadd.f32 1.0, %v5554_v25  ;;  %v4755_v50 = vpop.f32.mrb[31].mxu1 }
 0x26d   : > { %v5556_v18 = vpop.eup %5555  ;;  %v1064_v31 = vadd.f32 %v4753_v7, %v6675_v26  ;;  %v4756_v32 = vadd.f32 %v4755_v50, %v4754_v52  ;;  %v1185_v22 = vpack.c.bf16 %v1173_v58, %v1172_v9 }
 0x26e   : > { %5565 = vrcp.f32 %v1128_v27  ;;  %v1129_v34 = vadd.f32 1.0, %v5556_v18 }
 0x26f   : > { %v4399_v35 = vmul.f32 -1.442695, %v1064_v31  ;;  %v1067_v36 = vadd.f32 %v4756_v32, %v6675_v26  ;;  %4970 = vmatmul.mubr.bf16.gmra.mrb[36].mxu0 %v1185_v22 }
 0x270   : > { %v5558_v40 = vpop.eup %5557  ;;  %5567 = vrcp.f32 %v1129_v34 }
 0x271   : > { %5569 = vpow2.f32 %v4399_v35  ;;  %v4400_v42 = vmul.f32 -1.442695, %v1067_v36  ;;  %v1174_v14 = vmul.f32 %v5558_v40, %v6704_v29 }
 0x272   : > { %v5560_v49 = vpop.eup %5559 }
 0x273   : > { %v5562_v41 = vpop.eup %5561  ;;  %v1175_v23 = vmul.f32 %v5560_v49, %v6708_v39  ;;  %5571 = vpow2.f32 %v4400_v42 }
 0x274   : > { %v1130_v43 = vadd.f32 1.0, %v5562_v41 }
 0x275   : > { %v5564_v57 = vpop.eup %5563  ;;  %v1186_v44 = vpack.c.bf16 %v1175_v23, %v1174_v14 }
 0x276   : > { %5573 = vrcp.f32 %v1130_v43  ;;  %v1131_v47 = vadd.f32 1.0, %v5564_v57 }
 0x277   : > { %4973 = vmatprep.mubr.bf16.mxu0 %v1186_v44 }
 0x278   : > { %v5566_v56 = vpop.eup %5565  ;;  %5575 = vrcp.f32 %v1131_v47 }
 0x279   : > { %v1176_v1 = vmul.f32 %v5566_v56, %v6714_v3 }
 0x27a   : > { %v5568_v26 = vpop.eup %5567 }
 0x27b   : > { %v5570_v59 = vpop.eup %5569  ;;  %v1177_v61 = vmul.f32 %v5568_v26, %v6718_v4  ;;  %v5297_v4 = vld [vmem:[#allocation4 + $0x60] sm:$0xff]  }
 0x27c   : > { %v1132_v30 = vadd.f32 1.0, %v5570_v59  ;;  %4989 = vmatprep.subr.bf16.mxu1 %v5297_v4 }
 0x27d   : > { %v5572_v62 = vpop.eup %5571  ;;  %v1187_v29 = vpack.c.bf16 %v1177_v61, %v1176_v1  ;;  %4990 = vmatpush3.bf16.msra.mxu1 %v5297_v4 }
 0x27e   : > { %5577 = vrcp.f32 %v1132_v30  ;;  %v1133_v39 = vadd.f32 1.0, %v5572_v62  ;;  %4991 = vmatprep.subr.bf16.mxu1 %v5298_v12 }
 0x27f   : > { %4974 = vmatmul.mubr.bf16.gmra.mrb[40].mxu0 %v1187_v29 }
 0x280   : > { %v5574_v55 = vpop.eup %5573  ;;  %5579 = vrcp.f32 %v1133_v39 }
 0x281   : > { %v1178_v5 = vmul.f32 %v5574_v55, %v1056_v20  ;;  %4992 = vmatpush3.bf16.msra.mxu1 %v5298_v12 }
 0x282   : > { %v5576_v63 = vpop.eup %5575  ;;  %4993 = vmatprep.subr.bf16.mxu1 %v5299_v13 }
 0x283   : > { %v1179_v10 = vmul.f32 %v5576_v63, %v1059_v54 }
 0x285   : > { %v1188_v53 = vpack.c.bf16 %v1179_v10, %v1178_v5  ;;  %4994 = vmatpush3.bf16.msra.mxu1 %v5299_v13 }
 0x286   : > { %4995 = vmatprep.subr.bf16.mxu1 %v5300_v15 }
 0x287   : > { %4977 = vmatprep.mubr.bf16.mxu0 %v1188_v53 }
 0x288   : > { %v5578_v2 = vpop.eup %5577 }
 0x289   : > { %v1180_v8 = vmul.f32 %v5578_v2, %v1064_v31  ;;  %4996 = vmatpush3.bf16.msra.mxu1 %v5300_v15 }
 0x28a   : > { %v5580_v11 = vpop.eup %5579 }
 0x28b   : > { %v1181_v51 = vmul.f32 %v5580_v11, %v1067_v36 }
 0x28d   : > { %v1189_v3 = vpack.c.bf16 %v1181_v51, %v1180_v8 }
 0x28f   : > { %4978 = vmatmul.mubr.bf16.gmra.mrb[44].mxu0 %v1189_v3 }
 0x32f   : > { %v4967_v17 = vpop.f32.mrb[32].mxu0 }
 0x330   : > { %v1304_v19 = vadd.f32 %v4967_v17, %v6736_v16  ;;  %v1295_v20 = vpop.f32.mrb[33].mxu0 }
 0x331   : > { %v1296_v21 = vadd.f32 %v6736_v16, %v1295_v20  ;;  %v4968_v38 = vpop.f32.mrb[34].mxu0 }
 0x332   : > { %v4412_v6 = vmul.f32 -1.442695, %v1304_v19  ;;  %v1307_v54 = vadd.f32 %v4968_v38, %v6736_v16  ;;  %v1298_v60 = vpop.f32.mrb[35].mxu0 }
 0x333   : > { %v4410_v33 = vmul.f32 -1.442695, %v1296_v21  ;;  %v1299_v28 = vadd.f32 %v6736_v16, %v1298_v60 }
 0x334   : > { %5581 = vpow2.f32 %v4412_v6  ;;  %v4413_v37 = vmul.f32 -1.442695, %v1307_v54 }
 0x335   : > { %5583 = vpow2.f32 %v4410_v33  ;;  %v4411_v24 = vmul.f32 -1.442695, %v1299_v28 }
 0x336   : > { %5585 = vpow2.f32 %v4413_v37 }
 0x337   : > { %5587 = vpow2.f32 %v4411_v24 }
 0x33e   : > { %v5582_v25 = vpop.eup %5581 }
 0x33f   : > { %v5584_v9 = vpop.eup %5583  ;;  %v1408_v58 = vadd.f32 1.0, %v5582_v25 }
 0x340   : > { %v5586_v7 = vpop.eup %5585  ;;  %v1406_v52 = vadd.f32 1.0, %v5584_v9 }
 0x341   : > { %v5588_v27 = vpop.eup %5587  ;;  %5589 = vrcp.f32 %v1408_v58  ;;  %v1409_v50 = vadd.f32 1.0, %v5586_v7 }
 0x342   : > { %5591 = vrcp.f32 %v1406_v52  ;;  %v1407_v18 = vadd.f32 1.0, %v5588_v27  ;;  %v4971_v31 = vpop.f32.mrb[36].mxu0 }
 0x343   : > { %5593 = vrcp.f32 %v1409_v50  ;;  %v1320_v32 = vadd.f32 %v4971_v31, %v6736_v16  ;;  %v1311_v22 = vpop.f32.mrb[37].mxu0 }
 0x344   : > { %5595 = vrcp.f32 %v1407_v18  ;;  %v1312_v34 = vadd.f32 %v6736_v16, %v1311_v22  ;;  %v4972_v35 = vpop.f32.mrb[38].mxu0 }
 0x345   : > { %v4416_v36 = vmul.f32 -1.442695, %v1320_v32  ;;  %v1323_v40 = vadd.f32 %v4972_v35, %v6736_v16  ;;  %v1314_v42 = vpop.f32.mrb[39].mxu0 }
 0x346   : > { %v4414_v49 = vmul.f32 -1.442695, %v1312_v34  ;;  %v1315_v41 = vadd.f32 %v6736_v16, %v1314_v42 }
 0x347   : > { %5597 = vpow2.f32 %v4416_v36  ;;  %v4417_v14 = vmul.f32 -1.442695, %v1323_v40 }
 0x348   : > { %5599 = vpow2.f32 %v4414_v49  ;;  %v4415_v23 = vmul.f32 -1.442695, %v1315_v41 }
 0x349   : > { %5601 = vpow2.f32 %v4417_v14 }
 0x34a   : > { %5603 = vpow2.f32 %v4415_v23 }
 0x34b   : > { %v5590_v43 = vpop.eup %5589 }
 0x34c   : > { %v5592_v57 = vpop.eup %5591  ;;  %v1456_v56 = vmul.f32 %v5590_v43, %v1304_v19 }
 0x34d   : > { %v5594_v44 = vpop.eup %5593  ;;  %v1454_v59 = vmul.f32 %v5592_v57, %v1296_v21 }
 0x34e   : > { %v5596_v47 = vpop.eup %5595  ;;  %v1457_v26 = vmul.f32 %v5594_v44, %v1307_v54 }
 0x34f   : > { %v1455_v1 = vmul.f32 %v5596_v47, %v1299_v28 }
 0x350   : > { %v1471_v61 = vpack.c.bf16 %v1457_v26, %v1456_v56 }
 0x351   : > { %v5598_v30 = vpop.eup %5597  ;;  %v1470_v62 = vpack.c.bf16 %v1455_v1, %v1454_v59 }
 0x352   : > { %v5600_v29 = vpop.eup %5599  ;;  %v1412_v39 = vadd.f32 1.0, %v5598_v30  ;;  %v4975_v55 = vpop.f32.mrb[40].mxu0 }
 0x353   : > { %v5602_v63 = vpop.eup %5601  ;;  %v1410_v5 = vadd.f32 1.0, %v5600_v29  ;;  %v6747_v10 = vadd.f32 %v4975_v55, %v6736_v16  ;;  %v1327_v53 = vpop.f32.mrb[41].mxu0  ;;  %4997 = vmatprep.mubr.bf16.mxu1 %v1470_v62 }
 0x354   : > { %v5604_v2 = vpop.eup %5603  ;;  %5605 = vrcp.f32 %v1412_v39  ;;  %v1413_v11 = vadd.f32 1.0, %v5602_v63  ;;  %v6750_v8 = vadd.f32 %v6736_v16, %v1327_v53  ;;  %v4976_v51 = vpop.f32.mrb[42].mxu0  ;;  %4998 = vmatmul.mubr.bf16.vlgmr.msra.gmra.mrb[32].mxu1 %v1471_v61 }
 0x355   : > { %5607 = vrcp.f32 %v1410_v5  ;;  %v1411_v3 = vadd.f32 1.0, %v5604_v2  ;;  %v4420_v4 = vmul.f32 -1.442695, %v6747_v10  ;;  %v1339_v12 = vadd.f32 %v4976_v51, %v6736_v16  ;;  %v1330_v13 = vpop.f32.mrb[43].mxu0 }
 0x356   : > { %5609 = vrcp.f32 %v1413_v11  ;;  %v4418_v15 = vmul.f32 -1.442695, %v6750_v8  ;;  %v1331_v17 = vadd.f32 %v6736_v16, %v1330_v13 }
 0x357   : > { %5611 = vrcp.f32 %v1411_v3  ;;  %v4421_v19 = vmul.f32 -1.442695, %v1339_v12 }
 0x358   : > { %5613 = vpow2.f32 %v4420_v4  ;;  %v4419_v20 = vmul.f32 -1.442695, %v1331_v17 }
 0x359   : > { %5615 = vpow2.f32 %v4418_v15 }
 0x35a   : > { %5617 = vpow2.f32 %v4421_v19  ;;  %v5301_v19 = vld [vmem:[#allocation4 + $0x80] sm:$0xff]  }
 0x35b   : > { %5619 = vpow2.f32 %v4419_v20  ;;  %5013 = vmatprep.subr.bf16.mxu0 %v5301_v19  ;;  %v5302_v20 = vld [vmem:[#allocation4 + $0x88] sm:$0xff]  }
 0x35c   : > { %5014 = vmatpush3.bf16.msra.mxu0 %v5301_v19 }
 0x35d   : > { %5015 = vmatprep.subr.bf16.mxu0 %v5302_v20 }
 0x35e   : > { %v5606_v21 = vpop.eup %5605 }
 0x35f   : > { %v5608_v38 = vpop.eup %5607  ;;  %v1460_v60 = vmul.f32 %v5606_v21, %v1320_v32  ;;  %v5303_v21 = vld [vmem:[#allocation4 + $0x90] sm:$0xff]  }
 0x360   : > { %v5610_v6 = vpop.eup %5609  ;;  %v1458_v37 = vmul.f32 %v5608_v38, %v1312_v34  ;;  %5016 = vmatpush3.bf16.msra.mxu0 %v5302_v20  ;;  %v5304_v38 = vld [vmem:[#allocation4 + $0x98] sm:$0xff]  }
 0x361   : > { %v5612_v54 = vpop.eup %5611  ;;  %v1461_v33 = vmul.f32 %v5610_v6, %v1323_v40  ;;  %5017 = vmatprep.subr.bf16.mxu0 %v5303_v21  ;;  %v5305_v6 = vld [vmem:[#allocation4 + $0xa0] sm:$0xff]  }
 0x362   : > { %v5614_v28 = vpop.eup %5613  ;;  %v1459_v24 = vmul.f32 %v5612_v54, %v1315_v41  ;;  %v4979_v25 = vpop.f32.mrb[44].mxu0  ;;  %v5306_v54 = vld [vmem:[#allocation4 + $0xa8] sm:$0xff]  }
 0x363   : > { %v5616_v9 = vpop.eup %5615  ;;  %v1416_v58 = vadd.f32 1.0, %v5614_v28  ;;  %v1352_v7 = vadd.f32 %v4979_v25, %v6736_v16  ;;  %v1343_v52 = vpop.f32.mrb[45].mxu0  ;;  %v1473_v27 = vpack.c.bf16 %v1461_v33, %v1460_v60  ;;  %v5307_v60 = vld [vmem:[#allocation4 + $0xb0] sm:$0xff]   ;;  %v5308_v33 = vld [vmem:[#allocation4 + $0xb8] sm:$0xff]   ;;  %v6765_v28 = vld [vmem:[%s7220_s6 + $0x1] ss:$0 sm:$0xff] }
 0x364   : > { %v5618_v50 = vpop.eup %5617  ;;  %v1414_v18 = vadd.f32 1.0, %v5616_v9  ;;  %v1344_v31 = vadd.f32 %v6736_v16, %v1343_v52  ;;  %v4980_v22 = vpop.f32.mrb[46].mxu0  ;;  %v1472_v35 = vpack.c.bf16 %v1459_v24, %v1458_v37  ;;  %5018 = vmatpush3.bf16.msra.mxu0 %v5303_v21 }
 0x365   : > { %v5620_v36 = vpop.eup %5619  ;;  %5621 = vrcp.f32 %v1416_v58  ;;  %v1417_v32 = vadd.f32 1.0, %v5618_v50  ;;  %v4424_v40 = vmul.f32 -1.442695, %v1352_v7  ;;  %v1355_v34 = vadd.f32 %v4980_v22, %v6736_v16  ;;  %v1346_v42 = vpop.f32.mrb[47].mxu0  ;;  %5019 = vmatprep.subr.bf16.mxu0 %v5304_v38 }
 0x366   : > { %5623 = vrcp.f32 %v1414_v18  ;;  %v1415_v49 = vadd.f32 1.0, %v5620_v36  ;;  %v4422_v41 = vmul.f32 -1.442695, %v1344_v31  ;;  %v1347_v14 = vadd.f32 %v6736_v16, %v1346_v42  ;;  %5001 = vmatprep.mubr.bf16.mxu1 %v1472_v35 }
 0x367   : > { %5625 = vrcp.f32 %v1417_v32  ;;  %v4425_v23 = vmul.f32 -1.442695, %v1355_v34  ;;  %5002 = vmatmul.mubr.bf16.gmra.mrb[36].mxu1 %v1473_v27 }
 0x368   : > { %5627 = vrcp.f32 %v1415_v49  ;;  %v4423_v43 = vmul.f32 -1.442695, %v1347_v14  ;;  %5020 = vmatpush3.bf16.msra.mxu0 %v5304_v38 }
 0x369   : > { %5629 = vpow2.f32 %v4424_v40  ;;  %5021 = vmatprep.subr.bf16.mxu0 %v5305_v6 }
 0x36a   : > { %5631 = vpow2.f32 %v4422_v41 }
 0x36b   : > { %5633 = vpow2.f32 %v4425_v23 }
 0x36c   : > { %5635 = vpow2.f32 %v4423_v43  ;;  %5022 = vmatpush3.bf16.msra.mxu0 %v5305_v6 }
 0x36d   : > { %5023 = vmatprep.subr.bf16.mxu0 %v5306_v54 }
 0x36f   : > { %v5622_v57 = vpop.eup %5621 }
 0x370   : > { %v5624_v44 = vpop.eup %5623  ;;  %v1464_v26 = vmul.f32 %v5622_v57, %v6747_v10  ;;  %5024 = vmatpush3.bf16.msra.mxu0 %v5306_v54 }
 0x371   : > { %v5626_v47 = vpop.eup %5625  ;;  %v1462_v16 = vmul.f32 %v5624_v44, %v6750_v8  ;;  %5025 = vmatprep.subr.bf16.mxu0 %v5307_v60 }
 0x372   : > { %v5628_v56 = vpop.eup %5627  ;;  %v1465_v59 = vmul.f32 %v5626_v47, %v1339_v12 }
 0x373   : > { %v5630_v1 = vpop.eup %5629  ;;  %v1463_v61 = vmul.f32 %v5628_v56, %v1331_v17 }
 0x374   : > { %v5632_v30 = vpop.eup %5631  ;;  %v1420_v62 = vadd.f32 1.0, %v5630_v1  ;;  %v1475_v29 = vpack.c.bf16 %v1465_v59, %v1464_v26  ;;  %5026 = vmatpush3.bf16.msra.mxu0 %v5307_v60 }
 0x375   : > { %v5634_v39 = vpop.eup %5633  ;;  %v1418_v55 = vadd.f32 1.0, %v5632_v30  ;;  %v1474_v63 = vpack.c.bf16 %v1463_v61, %v1462_v16  ;;  %5027 = vmatprep.subr.bf16.mxu0 %v5308_v33 }
 0x376   : > { %v5636_v5 = vpop.eup %5635  ;;  %5637 = vrcp.f32 %v1420_v62  ;;  %v1421_v53 = vadd.f32 1.0, %v5634_v39 }
 0x377   : > { %5639 = vrcp.f32 %v1418_v55  ;;  %v1419_v2 = vadd.f32 1.0, %v5636_v5  ;;  %5005 = vmatprep.mubr.bf16.mxu1 %v1474_v63 }
 0x378   : > { %5641 = vrcp.f32 %v1421_v53  ;;  %5006 = vmatmul.mubr.bf16.gmra.mrb[40].mxu1 %v1475_v29  ;;  %5028 = vmatpush3.bf16.msra.mxu0 %v5308_v33 }
 0x379   : > { %5643 = vrcp.f32 %v1419_v2 }
 0x380   : > { %v5638_v10 = vpop.eup %5637 }
 0x381   : > { %v5640_v11 = vpop.eup %5639  ;;  %v1468_v3 = vmul.f32 %v5638_v10, %v1352_v7 }
 0x382   : > { %v5642_v51 = vpop.eup %5641  ;;  %v1466_v12 = vmul.f32 %v5640_v11, %v1344_v31 }
 0x383   : > { %v5644_v8 = vpop.eup %5643  ;;  %v1469_v4 = vmul.f32 %v5642_v51, %v1355_v34 }
 0x384   : > { %v1467_v13 = vmul.f32 %v5644_v8, %v1347_v14 }
 0x385   : > { %v1477_v15 = vpack.c.bf16 %v1469_v4, %v1468_v3 }
 0x386   : > { %v1476_v17 = vpack.c.bf16 %v1467_v13, %v1466_v12 }
 0x388   : > { %5009 = vmatprep.mubr.bf16.mxu1 %v1476_v17 }
 0x389   : > { %5010 = vmatmul.mubr.bf16.gmra.mrb[44].mxu1 %v1477_v15 }
 0x427   : > { %v4999_v37 = vpop.f32.mrb[32].mxu1 }
 0x428   : > { %v1594_v24 = vadd.f32 %v4999_v37, %v6765_v28  ;;  %v1585_v25 = vpop.f32.mrb[33].mxu1 }
 0x429   : > { %v1586_v9 = vadd.f32 %v6765_v28, %v1585_v25  ;;  %v5000_v58 = vpop.f32.mrb[34].mxu1 }
 0x42a   : > { %v4438_v7 = vmul.f32 -1.442695, %v1594_v24  ;;  %v1597_v52 = vadd.f32 %v5000_v58, %v6765_v28  ;;  %v1588_v27 = vpop.f32.mrb[35].mxu1 }
 0x42b   : > { %v4436_v50 = vmul.f32 -1.442695, %v1586_v9  ;;  %v1589_v18 = vadd.f32 %v6765_v28, %v1588_v27 }
 0x42c   : > { %5645 = vpow2.f32 %v4438_v7  ;;  %v4439_v31 = vmul.f32 -1.442695, %v1597_v52 }
 0x42d   : > { %5647 = vpow2.f32 %v4436_v50  ;;  %v4437_v22 = vmul.f32 -1.442695, %v1589_v18 }
 0x42e   : > { %5649 = vpow2.f32 %v4439_v31 }
 0x42f   : > { %5651 = vpow2.f32 %v4437_v22 }
 0x436   : > { %v5646_v35 = vpop.eup %5645 }
 0x437   : > { %v5648_v36 = vpop.eup %5647  ;;  %v1698_v32 = vadd.f32 1.0, %v5646_v35 }
 0x438   : > { %v5650_v40 = vpop.eup %5649  ;;  %v1696_v34 = vadd.f32 1.0, %v5648_v36 }
 0x439   : > { %v5652_v42 = vpop.eup %5651  ;;  %5653 = vrcp.f32 %v1698_v32  ;;  %v1699_v49 = vadd.f32 1.0, %v5650_v40 }
 0x43a   : > { %5655 = vrcp.f32 %v1696_v34  ;;  %v1697_v41 = vadd.f32 1.0, %v5652_v42  ;;  %v5003_v14 = vpop.f32.mrb[36].mxu1 }
 0x43b   : > { %5657 = vrcp.f32 %v1699_v49  ;;  %v1610_v23 = vadd.f32 %v5003_v14, %v6765_v28  ;;  %v1601_v43 = vpop.f32.mrb[37].mxu1 }
 0x43c   : > { %5659 = vrcp.f32 %v1697_v41  ;;  %v1602_v57 = vadd.f32 %v6765_v28, %v1601_v43  ;;  %v5004_v44 = vpop.f32.mrb[38].mxu1 }
 0x43d   : > { %v4442_v47 = vmul.f32 -1.442695, %v1610_v23  ;;  %v1613_v56 = vadd.f32 %v5004_v44, %v6765_v28  ;;  %v1604_v26 = vpop.f32.mrb[39].mxu1 }
 0x43e   : > { %v4440_v59 = vmul.f32 -1.442695, %v1602_v57  ;;  %v1605_v1 = vadd.f32 %v6765_v28, %v1604_v26 }
 0x43f   : > { %5661 = vpow2.f32 %v4442_v47  ;;  %v4443_v16 = vmul.f32 -1.442695, %v1613_v56 }
 0x440   : > { %5663 = vpow2.f32 %v4440_v59  ;;  %v4441_v61 = vmul.f32 -1.442695, %v1605_v1 }
 0x441   : > { %5665 = vpow2.f32 %v4443_v16 }
 0x442   : > { %5667 = vpow2.f32 %v4441_v61 }
 0x443   : > { %v5654_v30 = vpop.eup %5653 }
 0x444   : > { %v5656_v62 = vpop.eup %5655  ;;  %v1746_v55 = vmul.f32 %v5654_v30, %v1594_v24 }
 0x445   : > { %v5658_v29 = vpop.eup %5657  ;;  %v1744_v5 = vmul.f32 %v5656_v62, %v1586_v9 }
 0x446   : > { %v5660_v39 = vpop.eup %5659  ;;  %v1747_v63 = vmul.f32 %v5658_v29, %v1597_v52 }
 0x447   : > { %v1745_v53 = vmul.f32 %v5660_v39, %v1589_v18 }
 0x448   : > { %v1761_v2 = vpack.c.bf16 %v1747_v63, %v1746_v55 }
 0x449   : > { %v5662_v10 = vpop.eup %5661  ;;  %v1760_v11 = vpack.c.bf16 %v1745_v53, %v1744_v5 }
 0x44a   : > { %v5664_v51 = vpop.eup %5663  ;;  %v1702_v8 = vadd.f32 1.0, %v5662_v10 }
 0x44b   : > { %v5666_v3 = vpop.eup %5665  ;;  %v1700_v4 = vadd.f32 1.0, %v5664_v51  ;;  %v5007_v12 = vpop.f32.mrb[40].mxu1  ;;  %5029 = vmatprep.mubr.bf16.mxu0 %v1760_v11 }
 0x44c   : > { %v5668_v13 = vpop.eup %5667  ;;  %5669 = vrcp.f32 %v1702_v8  ;;  %v1703_v15 = vadd.f32 1.0, %v5666_v3  ;;  %v6776_v17 = vadd.f32 %v5007_v12, %v6765_v28  ;;  %v1617_v19 = vpop.f32.mrb[41].mxu1  ;;  %5030 = vmatmul.mubr.bf16.vlgmr.msra.gmra.mrb[48].mxu0 %v1761_v2 }
 0x44d   : > { %5671 = vrcp.f32 %v1700_v4  ;;  %v1701_v20 = vadd.f32 1.0, %v5668_v13  ;;  %v1618_v21 = vadd.f32 %v6765_v28, %v1617_v19  ;;  %v5008_v38 = vpop.f32.mrb[42].mxu1 }
 0x44e   : > { %5673 = vrcp.f32 %v1703_v15  ;;  %v4446_v6 = vmul.f32 -1.442695, %v6776_v17  ;;  %v1629_v54 = vadd.f32 %v5008_v38, %v6765_v28  ;;  %v1620_v60 = vpop.f32.mrb[43].mxu1 }
 0x44f   : > { %5675 = vrcp.f32 %v1701_v20  ;;  %v4444_v33 = vmul.f32 -1.442695, %v1618_v21  ;;  %v1621_v37 = vadd.f32 %v6765_v28, %v1620_v60 }
 0x450   : > { %5677 = vpow2.f32 %v4446_v6  ;;  %v4447_v24 = vmul.f32 -1.442695, %v1629_v54 }
 0x451   : > { %5679 = vpow2.f32 %v4444_v33  ;;  %v4445_v25 = vmul.f32 -1.442695, %v1621_v37 }
 0x452   : > { %5681 = vpow2.f32 %v4447_v24  ;;  %v5309_v24 = vld [vmem:[#allocation4 + $0xc0] sm:$0xff]  }
 0x453   : > { %5683 = vpow2.f32 %v4445_v25  ;;  %5045 = vmatprep.subr.bf16.mxu1 %v5309_v24  ;;  %v5310_v25 = vld [vmem:[#allocation4 + $0xc8] sm:$0xff]  }
 0x454   : > { %5046 = vmatpush3.bf16.msra.mxu1 %v5309_v24 }
 0x455   : > { %5047 = vmatprep.subr.bf16.mxu1 %v5310_v25 }
 0x456   : > { %v5670_v9 = vpop.eup %5669 }
 0x457   : > { %v5672_v58 = vpop.eup %5671  ;;  %v1750_v27 = vmul.f32 %v5670_v9, %v1610_v23  ;;  %v5311_v9 = vld [vmem:[#allocation4 + $0xd0] sm:$0xff]  }
 0x458   : > { %v5674_v7 = vpop.eup %5673  ;;  %v1748_v31 = vmul.f32 %v5672_v58, %v1602_v57  ;;  %5048 = vmatpush3.bf16.msra.mxu1 %v5310_v25  ;;  %v5312_v58 = vld [vmem:[#allocation4 + $0xd8] sm:$0xff]  }
 0x459   : > { %v5676_v52 = vpop.eup %5675  ;;  %v1751_v50 = vmul.f32 %v5674_v7, %v1613_v56  ;;  %5049 = vmatprep.subr.bf16.mxu1 %v5311_v9  ;;  %v5313_v7 = vld [vmem:[#allocation4 + $0xe0] sm:$0xff]  }
 0x45a   : > { %v5678_v18 = vpop.eup %5677  ;;  %v1749_v22 = vmul.f32 %v5676_v52, %v1605_v1  ;;  %v5314_v52 = vld [vmem:[#allocation4 + $0xe8] sm:$0xff]  }
 0x45b   : > { %v5680_v35 = vpop.eup %5679  ;;  %v1706_v36 = vadd.f32 1.0, %v5678_v18  ;;  %v1763_v32 = vpack.c.bf16 %v1751_v50, %v1750_v27  ;;  %v5315_v27 = vld [vmem:[#allocation4 + $0xf0] sm:$0xff]   ;;  %v5316_v50 = vld [vmem:[#allocation4 + $0xf8] sm:$0xff]   ;;  %v6790_v18 = vld [vmem:[%s7220_s6 + $0x2] ss:$0 sm:$0xff] }
 0x45c   : > { %v5682_v40 = vpop.eup %5681  ;;  %v1704_v34 = vadd.f32 1.0, %v5680_v35  ;;  %v5011_v42 = vpop.f32.mrb[44].mxu1  ;;  %v1762_v49 = vpack.c.bf16 %v1749_v22, %v1748_v31  ;;  %5050 = vmatpush3.bf16.msra.mxu1 %v5311_v9 }
 0x45d   : > { %v5684_v41 = vpop.eup %5683  ;;  %5685 = vrcp.f32 %v1706_v36  ;;  %v1707_v14 = vadd.f32 1.0, %v5682_v40  ;;  %v1642_v43 = vadd.f32 %v5011_v42, %v6765_v28  ;;  %v1633_v44 = vpop.f32.mrb[45].mxu1  ;;  %5051 = vmatprep.subr.bf16.mxu1 %v5312_v58 }
 0x45e   : > { %5687 = vrcp.f32 %v1704_v34  ;;  %v1705_v47 = vadd.f32 1.0, %v5684_v41  ;;  %v1634_v23 = vadd.f32 %v6765_v28, %v1633_v44  ;;  %v5012_v56 = vpop.f32.mrb[46].mxu1  ;;  %5033 = vmatprep.mubr.bf16.mxu0 %v1762_v49 }
 0x45f   : > { %5689 = vrcp.f32 %v1707_v14  ;;  %v4450_v57 = vmul.f32 -1.442695, %v1642_v43  ;;  %v1645_v26 = vadd.f32 %v5012_v56, %v6765_v28  ;;  %v1636_v59 = vpop.f32.mrb[47].mxu1  ;;  %5034 = vmatmul.mubr.bf16.gmra.mrb[52].mxu0 %v1763_v32 }
 0x460   : > { %5691 = vrcp.f32 %v1705_v47  ;;  %v4448_v1 = vmul.f32 -1.442695, %v1634_v23  ;;  %v1637_v16 = vadd.f32 %v6765_v28, %v1636_v59  ;;  %5052 = vmatpush3.bf16.msra.mxu1 %v5312_v58 }
 0x461   : > { %5693 = vpow2.f32 %v4450_v57  ;;  %v4451_v61 = vmul.f32 -1.442695, %v1645_v26  ;;  %5053 = vmatprep.subr.bf16.mxu1 %v5313_v7 }
 0x462   : > { %5695 = vpow2.f32 %v4448_v1  ;;  %v4449_v30 = vmul.f32 -1.442695, %v1637_v16 }
 0x463   : > { %5697 = vpow2.f32 %v4451_v61 }
 0x464   : > { %5699 = vpow2.f32 %v4449_v30  ;;  %5054 = vmatpush3.bf16.msra.mxu1 %v5313_v7 }
 0x465   : > { %5055 = vmatprep.subr.bf16.mxu1 %v5314_v52 }
 0x467   : > { %v5686_v62 = vpop.eup %5685 }
 0x468   : > { %v5688_v29 = vpop.eup %5687  ;;  %v1754_v63 = vmul.f32 %v5686_v62, %v6776_v17  ;;  %5056 = vmatpush3.bf16.msra.mxu1 %v5314_v52 }
 0x469   : > { %v5690_v39 = vpop.eup %5689  ;;  %v1752_v2 = vmul.f32 %v5688_v29, %v1618_v21  ;;  %5057 = vmatprep.subr.bf16.mxu1 %v5315_v27 }
 0x46a   : > { %v5692_v55 = vpop.eup %5691  ;;  %v1755_v5 = vmul.f32 %v5690_v39, %v1629_v54 }
 0x46b   : > { %v5694_v53 = vpop.eup %5693  ;;  %v1753_v10 = vmul.f32 %v5692_v55, %v1621_v37 }
 0x46c   : > { %v5696_v11 = vpop.eup %5695  ;;  %v1710_v51 = vadd.f32 1.0, %v5694_v53  ;;  %v1765_v8 = vpack.c.bf16 %v1755_v5, %v1754_v63  ;;  %5058 = vmatpush3.bf16.msra.mxu1 %v5315_v27 }
 0x46d   : > { %v5698_v28 = vpop.eup %5697  ;;  %v1708_v3 = vadd.f32 1.0, %v5696_v11  ;;  %v1764_v4 = vpack.c.bf16 %v1753_v10, %v1752_v2  ;;  %5059 = vmatprep.subr.bf16.mxu1 %v5316_v50 }
 0x46e   : > { %v5700_v12 = vpop.eup %5699  ;;  %5701 = vrcp.f32 %v1710_v51  ;;  %v1711_v13 = vadd.f32 1.0, %v5698_v28 }
 0x46f   : > { %5703 = vrcp.f32 %v1708_v3  ;;  %v1709_v15 = vadd.f32 1.0, %v5700_v12  ;;  %5037 = vmatprep.mubr.bf16.mxu0 %v1764_v4 }
 0x470   : > { %5705 = vrcp.f32 %v1711_v13  ;;  %5038 = vmatmul.mubr.bf16.gmra.mrb[56].mxu0 %v1765_v8  ;;  %5060 = vmatpush3.bf16.msra.mxu1 %v5316_v50 }
 0x471   : > { %5707 = vrcp.f32 %v1709_v15 }
 0x478   : > { %v5702_v17 = vpop.eup %5701 }
 0x479   : > { %v5704_v19 = vpop.eup %5703  ;;  %v1758_v38 = vmul.f32 %v5702_v17, %v1642_v43 }
 0x47a   : > { %v5706_v20 = vpop.eup %5705  ;;  %v1756_v54 = vmul.f32 %v5704_v19, %v1634_v23 }
 0x47b   : > { %v5708_v21 = vpop.eup %5707  ;;  %v1759_v6 = vmul.f32 %v5706_v20, %v1645_v26 }
 0x47c   : > { %v1757_v60 = vmul.f32 %v5708_v21, %v1637_v16 }
 0x47d   : > { %v1767_v33 = vpack.c.bf16 %v1759_v6, %v1758_v38 }
 0x47e   : > { %v1766_v37 = vpack.c.bf16 %v1757_v60, %v1756_v54 }
 0x480   : > { %5041 = vmatprep.mubr.bf16.mxu0 %v1766_v37 }
 0x481   : > { %5042 = vmatmul.mubr.bf16.gmra.mrb[60].mxu0 %v1767_v33 }
 0x51f   : > { %v5031_v31 = vpop.f32.mrb[48].mxu0 }
 0x520   : > { %v1884_v22 = vadd.f32 %v5031_v31, %v6790_v18  ;;  %v1875_v35 = vpop.f32.mrb[49].mxu0 }
 0x521   : > { %v1876_v36 = vadd.f32 %v6790_v18, %v1875_v35  ;;  %v5032_v32 = vpop.f32.mrb[50].mxu0 }
 0x522   : > { %v4464_v40 = vmul.f32 -1.442695, %v1884_v22  ;;  %v1887_v34 = vadd.f32 %v5032_v32, %v6790_v18  ;;  %v1878_v42 = vpop.f32.mrb[51].mxu0 }
 0x523   : > { %v4462_v49 = vmul.f32 -1.442695, %v1876_v36  ;;  %v1879_v41 = vadd.f32 %v6790_v18, %v1878_v42 }
 0x524   : > { %5709 = vpow2.f32 %v4464_v40  ;;  %v4465_v14 = vmul.f32 -1.442695, %v1887_v34 }
 0x525   : > { %5711 = vpow2.f32 %v4462_v49  ;;  %v4463_v43 = vmul.f32 -1.442695, %v1879_v41 }
 0x526   : > { %5713 = vpow2.f32 %v4465_v14 }
 0x527   : > { %5715 = vpow2.f32 %v4463_v43 }
 0x52e   : > { %v5710_v44 = vpop.eup %5709 }
 0x52f   : > { %v5712_v47 = vpop.eup %5711  ;;  %v1988_v23 = vadd.f32 1.0, %v5710_v44 }
 0x530   : > { %v5714_v56 = vpop.eup %5713  ;;  %v1986_v57 = vadd.f32 1.0, %v5712_v47 }
 0x531   : > { %v5716_v26 = vpop.eup %5715  ;;  %5717 = vrcp.f32 %v1988_v23  ;;  %v1989_v59 = vadd.f32 1.0, %v5714_v56 }
 0x532   : > { %5719 = vrcp.f32 %v1986_v57  ;;  %v1987_v1 = vadd.f32 1.0, %v5716_v26  ;;  %v5035_v16 = vpop.f32.mrb[52].mxu0 }
 0x533   : > { %5721 = vrcp.f32 %v1989_v59  ;;  %v1900_v61 = vadd.f32 %v5035_v16, %v6790_v18  ;;  %v1891_v30 = vpop.f32.mrb[53].mxu0 }
 0x534   : > { %5723 = vrcp.f32 %v1987_v1  ;;  %v1892_v62 = vadd.f32 %v6790_v18, %v1891_v30  ;;  %v5036_v29 = vpop.f32.mrb[54].mxu0 }
 0x535   : > { %v4468_v39 = vmul.f32 -1.442695, %v1900_v61  ;;  %v1903_v55 = vadd.f32 %v5036_v29, %v6790_v18  ;;  %v1894_v63 = vpop.f32.mrb[55].mxu0 }
 0x536   : > { %v4466_v5 = vmul.f32 -1.442695, %v1892_v62  ;;  %v1895_v53 = vadd.f32 %v6790_v18, %v1894_v63 }
 0x537   : > { %5725 = vpow2.f32 %v4468_v39  ;;  %v4469_v2 = vmul.f32 -1.442695, %v1903_v55 }
 0x538   : > { %5727 = vpow2.f32 %v4466_v5  ;;  %v4467_v10 = vmul.f32 -1.442695, %v1895_v53 }
 0x539   : > { %5729 = vpow2.f32 %v4469_v2 }
 0x53a   : > { %5731 = vpow2.f32 %v4467_v10 }
 0x53b   : > { %v5718_v11 = vpop.eup %5717 }
 0x53c   : > { %v5720_v51 = vpop.eup %5719  ;;  %v2036_v3 = vmul.f32 %v5718_v11, %v1884_v22 }
 0x53d   : > { %v5722_v8 = vpop.eup %5721  ;;  %v2034_v12 = vmul.f32 %v5720_v51, %v1876_v36 }
 0x53e   : > { %v5724_v28 = vpop.eup %5723  ;;  %v2037_v4 = vmul.f32 %v5722_v8, %v1887_v34 }
 0x53f   : > { %v2035_v13 = vmul.f32 %v5724_v28, %v1879_v41 }
 0x540   : > { %v2051_v15 = vpack.c.bf16 %v2037_v4, %v2036_v3 }
 0x541   : > { %v5726_v17 = vpop.eup %5725  ;;  %v2050_v19 = vpack.c.bf16 %v2035_v13, %v2034_v12 }
 0x542   : > { %v5728_v20 = vpop.eup %5727  ;;  %v1992_v21 = vadd.f32 1.0, %v5726_v17 }
 0x543   : > { %v5730_v38 = vpop.eup %5729  ;;  %v1990_v6 = vadd.f32 1.0, %v5728_v20  ;;  %v5039_v54 = vpop.f32.mrb[56].mxu0  ;;  %5061 = vmatprep.mubr.bf16.mxu1 %v2050_v19 }
 0x544   : > { %v5732_v60 = vpop.eup %5731  ;;  %5733 = vrcp.f32 %v1992_v21  ;;  %v1993_v33 = vadd.f32 1.0, %v5730_v38  ;;  %v6801_v37 = vadd.f32 %v5039_v54, %v6790_v18  ;;  %v1907_v24 = vpop.f32.mrb[57].mxu0  ;;  %5062 = vmatmul.mubr.bf16.vlgmr.msra.gmra.mrb[48].mxu1 %v2051_v15 }
 0x545   : > { %5735 = vrcp.f32 %v1990_v6  ;;  %v1991_v25 = vadd.f32 1.0, %v5732_v60  ;;  %v1908_v9 = vadd.f32 %v6790_v18, %v1907_v24  ;;  %v5040_v58 = vpop.f32.mrb[58].mxu0 }
 0x546   : > { %5737 = vrcp.f32 %v1993_v33  ;;  %v4472_v7 = vmul.f32 -1.442695, %v6801_v37  ;;  %v1919_v52 = vadd.f32 %v5040_v58, %v6790_v18  ;;  %v1910_v27 = vpop.f32.mrb[59].mxu0 }
 0x547   : > { %5739 = vrcp.f32 %v1991_v25  ;;  %v4470_v50 = vmul.f32 -1.442695, %v1908_v9  ;;  %v1911_v31 = vadd.f32 %v6790_v18, %v1910_v27 }
 0x548   : > { %5741 = vpow2.f32 %v4472_v7  ;;  %v4473_v22 = vmul.f32 -1.442695, %v1919_v52 }
 0x549   : > { %5743 = vpow2.f32 %v4470_v50  ;;  %v4471_v35 = vmul.f32 -1.442695, %v1911_v31 }
 0x54a   : > { %5745 = vpow2.f32 %v4473_v22  ;;  %v5317_v22 = vld [vmem:[#allocation4 + $0x100] sm:$0xff]  }
 0x54b   : > { %5747 = vpow2.f32 %v4471_v35  ;;  %5077 = vmatprep.subr.bf16.mxu0 %v5317_v22  ;;  %v5318_v35 = vld [vmem:[#allocation4 + $0x108] sm:$0xff]  }
 0x54c   : > { %5078 = vmatpush3.bf16.msra.mxu0 %v5317_v22 }
 0x54d   : > { %5079 = vmatprep.subr.bf16.mxu0 %v5318_v35 }
 0x54e   : > { %v5734_v36 = vpop.eup %5733 }
 0x54f   : > { %v5736_v32 = vpop.eup %5735  ;;  %v2040_v42 = vmul.f32 %v5734_v36, %v1900_v61  ;;  %v5319_v36 = vld [vmem:[#allocation4 + $0x110] sm:$0xff]  }
 0x550   : > { %v5738_v40 = vpop.eup %5737  ;;  %v2038_v14 = vmul.f32 %v5736_v32, %v1892_v62  ;;  %5080 = vmatpush3.bf16.msra.mxu0 %v5318_v35  ;;  %v5320_v32 = vld [vmem:[#allocation4 + $0x118] sm:$0xff]  }
 0x551   : > { %v5740_v34 = vpop.eup %5739  ;;  %v2041_v49 = vmul.f32 %v5738_v40, %v1903_v55  ;;  %5081 = vmatprep.subr.bf16.mxu0 %v5319_v36  ;;  %v5321_v40 = vld [vmem:[#allocation4 + $0x120] sm:$0xff]  }
 0x552   : > { %v5742_v41 = vpop.eup %5741  ;;  %v2039_v43 = vmul.f32 %v5740_v34, %v1895_v53  ;;  %v5322_v34 = vld [vmem:[#allocation4 + $0x128] sm:$0xff]  }
 0x553   : > { %v5744_v44 = vpop.eup %5743  ;;  %v1996_v47 = vadd.f32 1.0, %v5742_v41  ;;  %v2053_v23 = vpack.c.bf16 %v2041_v49, %v2040_v42  ;;  %v5323_v42 = vld [vmem:[#allocation4 + $0x130] sm:$0xff]   ;;  %v5324_v49 = vld [vmem:[#allocation4 + $0x138] sm:$0xff]   ;;  %v6815_v41 = vld [vmem:[%s7220_s6 + $0x3] ss:$0 sm:$0xff] }
 0x554   : > { %v5746_v56 = vpop.eup %5745  ;;  %v1994_v57 = vadd.f32 1.0, %v5744_v44  ;;  %v5043_v26 = vpop.f32.mrb[60].mxu0  ;;  %v2052_v59 = vpack.c.bf16 %v2039_v43, %v2038_v14  ;;  %5082 = vmatpush3.bf16.msra.mxu0 %v5319_v36 }
 0x555   : > { %v5748_v1 = vpop.eup %5747  ;;  %5749 = vrcp.f32 %v1996_v47  ;;  %v1997_v16 = vadd.f32 1.0, %v5746_v56  ;;  %v1932_v30 = vadd.f32 %v5043_v26, %v6790_v18  ;;  %v1923_v29 = vpop.f32.mrb[61].mxu0  ;;  %5083 = vmatprep.subr.bf16.mxu0 %v5320_v32 }
 0x556   : > { %5751 = vrcp.f32 %v1994_v57  ;;  %v1995_v39 = vadd.f32 1.0, %v5748_v1  ;;  %v1924_v61 = vadd.f32 %v6790_v18, %v1923_v29  ;;  %v5044_v55 = vpop.f32.mrb[62].mxu0  ;;  %5065 = vmatprep.mubr.bf16.mxu1 %v2052_v59 }
 0x557   : > { %5753 = vrcp.f32 %v1997_v16  ;;  %v4476_v62 = vmul.f32 -1.442695, %v1932_v30  ;;  %v1935_v63 = vadd.f32 %v5044_v55, %v6790_v18  ;;  %v1926_v5 = vpop.f32.mrb[63].mxu0  ;;  %5066 = vmatmul.mubr.bf16.gmra.mrb[52].mxu1 %v2053_v23 }
 0x558   : > { %5755 = vrcp.f32 %v1995_v39  ;;  %v4474_v53 = vmul.f32 -1.442695, %v1924_v61  ;;  %v1927_v2 = vadd.f32 %v6790_v18, %v1926_v5  ;;  %5084 = vmatpush3.bf16.msra.mxu0 %v5320_v32 }
 0x559   : > { %5757 = vpow2.f32 %v4476_v62  ;;  %v4477_v10 = vmul.f32 -1.442695, %v1935_v63  ;;  %5085 = vmatprep.subr.bf16.mxu0 %v5321_v40 }
 0x55a   : > { %5759 = vpow2.f32 %v4474_v53  ;;  %v4475_v11 = vmul.f32 -1.442695, %v1927_v2 }
 0x55b   : > { %5761 = vpow2.f32 %v4477_v10 }
 0x55c   : > { %5763 = vpow2.f32 %v4475_v11  ;;  %5086 = vmatpush3.bf16.msra.mxu0 %v5321_v40 }
 0x55d   : > { %5087 = vmatprep.subr.bf16.mxu0 %v5322_v34 }
 0x55f   : > { %v5750_v51 = vpop.eup %5749 }
 0x560   : > { %v5752_v8 = vpop.eup %5751  ;;  %v2044_v4 = vmul.f32 %v5750_v51, %v6801_v37  ;;  %5088 = vmatpush3.bf16.msra.mxu0 %v5322_v34 }
 0x561   : > { %v5754_v28 = vpop.eup %5753  ;;  %v2042_v15 = vmul.f32 %v5752_v8, %v1908_v9  ;;  %5089 = vmatprep.subr.bf16.mxu0 %v5323_v42 }
 0x562   : > { %v5756_v3 = vpop.eup %5755  ;;  %v2045_v12 = vmul.f32 %v5754_v28, %v1919_v52 }
 0x563   : > { %v5758_v13 = vpop.eup %5757  ;;  %v2043_v17 = vmul.f32 %v5756_v3, %v1911_v31 }
 0x564   : > { %v5760_v19 = vpop.eup %5759  ;;  %v2000_v20 = vadd.f32 1.0, %v5758_v13  ;;  %v2055_v21 = vpack.c.bf16 %v2045_v12, %v2044_v4  ;;  %5090 = vmatpush3.bf16.msra.mxu0 %v5323_v42 }
 0x565   : > { %v5762_v18 = vpop.eup %5761  ;;  %v1998_v38 = vadd.f32 1.0, %v5760_v19  ;;  %v2054_v6 = vpack.c.bf16 %v2043_v17, %v2042_v15  ;;  %5091 = vmatprep.subr.bf16.mxu0 %v5324_v49 }
 0x566   : > { %v5764_v54 = vpop.eup %5763  ;;  %5765 = vrcp.f32 %v2000_v20  ;;  %v2001_v60 = vadd.f32 1.0, %v5762_v18 }
 0x567   : > { %5767 = vrcp.f32 %v1998_v38  ;;  %v1999_v33 = vadd.f32 1.0, %v5764_v54  ;;  %5069 = vmatprep.mubr.bf16.mxu1 %v2054_v6 }
 0x568   : > { %5769 = vrcp.f32 %v2001_v60  ;;  %5070 = vmatmul.mubr.bf16.gmra.mrb[56].mxu1 %v2055_v21  ;;  %5092 = vmatpush3.bf16.msra.mxu0 %v5324_v49 }
 0x569   : > { %5771 = vrcp.f32 %v1999_v33 }
 0x570   : > { %v5766_v37 = vpop.eup %5765 }
 0x571   : > { %v5768_v24 = vpop.eup %5767  ;;  %v2048_v58 = vmul.f32 %v5766_v37, %v1932_v30 }
 0x572   : > { %v5770_v25 = vpop.eup %5769  ;;  %v2046_v52 = vmul.f32 %v5768_v24, %v1924_v61 }
 0x573   : > { %v5772_v9 = vpop.eup %5771  ;;  %v2049_v7 = vmul.f32 %v5770_v25, %v1935_v63 }
 0x574   : > { %v2047_v27 = vmul.f32 %v5772_v9, %v1927_v2 }
 0x575   : > { %v2057_v50 = vpack.c.bf16 %v2049_v7, %v2048_v58 }
 0x576   : > { %v2056_v31 = vpack.c.bf16 %v2047_v27, %v2046_v52 }
 0x578   : > { %5073 = vmatprep.mubr.bf16.mxu1 %v2056_v31 }
 0x579   : > { %5074 = vmatmul.mubr.bf16.gmra.mrb[60].mxu1 %v2057_v50 }
 0x617   : > { %v5063_v14 = vpop.f32.mrb[48].mxu1 }
 0x618   : > { %v2174_v43 = vadd.f32 %v5063_v14, %v6815_v41  ;;  %v2165_v44 = vpop.f32.mrb[49].mxu1 }
 0x619   : > { %v2166_v47 = vadd.f32 %v6815_v41, %v2165_v44  ;;  %v5064_v23 = vpop.f32.mrb[50].mxu1 }
 0x61a   : > { %v4490_v56 = vmul.f32 -1.442695, %v2174_v43  ;;  %v2177_v57 = vadd.f32 %v5064_v23, %v6815_v41  ;;  %v2168_v26 = vpop.f32.mrb[51].mxu1 }
 0x61b   : > { %v4488_v59 = vmul.f32 -1.442695, %v2166_v47  ;;  %v2169_v1 = vadd.f32 %v6815_v41, %v2168_v26 }
 0x61c   : > { %5773 = vpow2.f32 %v4490_v56  ;;  %v4491_v16 = vmul.f32 -1.442695, %v2177_v57 }
 0x61d   : > { %5775 = vpow2.f32 %v4488_v59  ;;  %v4489_v30 = vmul.f32 -1.442695, %v2169_v1 }
 0x61e   : > { %5777 = vpow2.f32 %v4491_v16 }
 0x61f   : > { %5779 = vpow2.f32 %v4489_v30 }
 0x626   : > { %v5774_v29 = vpop.eup %5773 }
 0x627   : > { %v5776_v39 = vpop.eup %5775  ;;  %v2278_v61 = vadd.f32 1.0, %v5774_v29 }
 0x628   : > { %v5778_v55 = vpop.eup %5777  ;;  %v2276_v62 = vadd.f32 1.0, %v5776_v39 }
 0x629   : > { %v5780_v63 = vpop.eup %5779  ;;  %5781 = vrcp.f32 %v2278_v61  ;;  %v2279_v5 = vadd.f32 1.0, %v5778_v55 }
 0x62a   : > { %5783 = vrcp.f32 %v2276_v62  ;;  %v2277_v53 = vadd.f32 1.0, %v5780_v63  ;;  %v5067_v2 = vpop.f32.mrb[52].mxu1 }
 0x62b   : > { %5785 = vrcp.f32 %v2279_v5  ;;  %v2190_v10 = vadd.f32 %v5067_v2, %v6815_v41  ;;  %v2181_v11 = vpop.f32.mrb[53].mxu1 }
 0x62c   : > { %5787 = vrcp.f32 %v2277_v53  ;;  %v2182_v51 = vadd.f32 %v6815_v41, %v2181_v11  ;;  %v5068_v8 = vpop.f32.mrb[54].mxu1 }
 0x62d   : > { %v4494_v28 = vmul.f32 -1.442695, %v2190_v10  ;;  %v2193_v3 = vadd.f32 %v5068_v8, %v6815_v41  ;;  %v2184_v4 = vpop.f32.mrb[55].mxu1 }
 0x62e   : > { %v4492_v12 = vmul.f32 -1.442695, %v2182_v51  ;;  %v2185_v13 = vadd.f32 %v6815_v41, %v2184_v4 }
 0x62f   : > { %5789 = vpow2.f32 %v4494_v28  ;;  %v4495_v15 = vmul.f32 -1.442695, %v2193_v3 }
 0x630   : > { %5791 = vpow2.f32 %v4492_v12  ;;  %v4493_v17 = vmul.f32 -1.442695, %v2185_v13 }
 0x631   : > { %5793 = vpow2.f32 %v4495_v15 }
 0x632   : > { %5795 = vpow2.f32 %v4493_v17 }
 0x633   : > { %v5782_v19 = vpop.eup %5781 }
 0x634   : > { %v5784_v20 = vpop.eup %5783  ;;  %v2326_v38 = vmul.f32 %v5782_v19, %v2174_v43 }
 0x635   : > { %v5786_v21 = vpop.eup %5785  ;;  %v2324_v54 = vmul.f32 %v5784_v20, %v2166_v47 }
 0x636   : > { %v5788_v18 = vpop.eup %5787  ;;  %v2327_v6 = vmul.f32 %v5786_v21, %v2177_v57 }
 0x637   : > { %v2325_v60 = vmul.f32 %v5788_v18, %v2169_v1 }
 0x638   : > { %v2341_v33 = vpack.c.bf16 %v2327_v6, %v2326_v38 }
 0x639   : > { %v5790_v37 = vpop.eup %5789  ;;  %v2340_v24 = vpack.c.bf16 %v2325_v60, %v2324_v54 }
 0x63a   : > { %v5792_v25 = vpop.eup %5791  ;;  %v2282_v9 = vadd.f32 1.0, %v5790_v37 }
 0x63b   : > { %v5794_v58 = vpop.eup %5793  ;;  %v2280_v7 = vadd.f32 1.0, %v5792_v25  ;;  %v5071_v52 = vpop.f32.mrb[56].mxu1  ;;  %5093 = vmatprep.mubr.bf16.mxu0 %v2340_v24 }
 0x63c   : > { %v5796_v27 = vpop.eup %5795  ;;  %5797 = vrcp.f32 %v2282_v9  ;;  %v2283_v50 = vadd.f32 1.0, %v5794_v58  ;;  %v6826_v31 = vadd.f32 %v5071_v52, %v6815_v41  ;;  %v2197_v22 = vpop.f32.mrb[57].mxu1  ;;  %5094 = vmatmul.mubr.bf16.vlgmr.msra.gmra.mrb[64].mxu0 %v2341_v33 }
 0x63d   : > { %5799 = vrcp.f32 %v2280_v7  ;;  %v2281_v35 = vadd.f32 1.0, %v5796_v27  ;;  %v2198_v36 = vadd.f32 %v6815_v41, %v2197_v22  ;;  %v5072_v32 = vpop.f32.mrb[58].mxu1 }
 0x63e   : > { %5801 = vrcp.f32 %v2283_v50  ;;  %v4498_v40 = vmul.f32 -1.442695, %v6826_v31  ;;  %v2209_v34 = vadd.f32 %v5072_v32, %v6815_v41  ;;  %v2200_v42 = vpop.f32.mrb[59].mxu1 }
 0x63f   : > { %5803 = vrcp.f32 %v2281_v35  ;;  %v4496_v49 = vmul.f32 -1.442695, %v2198_v36  ;;  %v2201_v14 = vadd.f32 %v6815_v41, %v2200_v42 }
 0x640   : > { %5805 = vpow2.f32 %v4498_v40  ;;  %v4499_v43 = vmul.f32 -1.442695, %v2209_v34 }
 0x641   : > { %5807 = vpow2.f32 %v4496_v49  ;;  %v4497_v44 = vmul.f32 -1.442695, %v2201_v14 }
 0x642   : > { %5809 = vpow2.f32 %v4499_v43  ;;  %v5325_v43 = vld [vmem:[#allocation4 + $0x140] sm:$0xff]  }
 0x643   : > { %5811 = vpow2.f32 %v4497_v44  ;;  %5109 = vmatprep.subr.bf16.mxu1 %v5325_v43  ;;  %v5326_v44 = vld [vmem:[#allocation4 + $0x148] sm:$0xff]  }
 0x644   : > { %5110 = vmatpush3.bf16.msra.mxu1 %v5325_v43 }
 0x645   : > { %5111 = vmatprep.subr.bf16.mxu1 %v5326_v44 }
 0x646   : > { %v5798_v47 = vpop.eup %5797 }
 0x647   : > { %v5800_v23 = vpop.eup %5799  ;;  %v2330_v26 = vmul.f32 %v5798_v47, %v2190_v10  ;;  %v5327_v47 = vld [vmem:[#allocation4 + $0x150] sm:$0xff]  }
 0x648   : > { %v5802_v56 = vpop.eup %5801  ;;  %v2328_v16 = vmul.f32 %v5800_v23, %v2182_v51  ;;  %5112 = vmatpush3.bf16.msra.mxu1 %v5326_v44  ;;  %v5328_v23 = vld [vmem:[#allocation4 + $0x158] sm:$0xff]  }
 0x649   : > { %v5804_v57 = vpop.eup %5803  ;;  %v2331_v59 = vmul.f32 %v5802_v56, %v2193_v3  ;;  %5113 = vmatprep.subr.bf16.mxu1 %v5327_v47  ;;  %v5329_v56 = vld [vmem:[#allocation4 + $0x160] sm:$0xff]  }
 0x64a   : > { %v5806_v1 = vpop.eup %5805  ;;  %v2329_v30 = vmul.f32 %v5804_v57, %v2185_v13  ;;  %v5330_v57 = vld [vmem:[#allocation4 + $0x168] sm:$0xff]  }
 0x64b   : > { %v5808_v29 = vpop.eup %5807  ;;  %v2286_v39 = vadd.f32 1.0, %v5806_v1  ;;  %v2343_v61 = vpack.c.bf16 %v2331_v59, %v2330_v26  ;;  %v5331_v26 = vld [vmem:[#allocation4 + $0x170] sm:$0xff]   ;;  %v5332_v59 = vld [vmem:[#allocation4 + $0x178] sm:$0xff]   ;;  %v6840_v1 = vld [vmem:[%s7220_s6 + $0x4] ss:$0 sm:$0xff] }
 0x64c   : > { %v5810_v55 = vpop.eup %5809  ;;  %v2284_v62 = vadd.f32 1.0, %v5808_v29  ;;  %v5075_v63 = vpop.f32.mrb[60].mxu1  ;;  %v2342_v5 = vpack.c.bf16 %v2329_v30, %v2328_v16  ;;  %5114 = vmatpush3.bf16.msra.mxu1 %v5327_v47 }
 0x64d   : > { %v5812_v53 = vpop.eup %5811  ;;  %5813 = vrcp.f32 %v2286_v39  ;;  %v2287_v2 = vadd.f32 1.0, %v5810_v55  ;;  %v2222_v11 = vadd.f32 %v5075_v63, %v6815_v41  ;;  %v2213_v8 = vpop.f32.mrb[61].mxu1  ;;  %5115 = vmatprep.subr.bf16.mxu1 %v5328_v23 }
 0x64e   : > { %5815 = vrcp.f32 %v2284_v62  ;;  %v2285_v28 = vadd.f32 1.0, %v5812_v53  ;;  %v2214_v10 = vadd.f32 %v6815_v41, %v2213_v8  ;;  %v5076_v3 = vpop.f32.mrb[62].mxu1  ;;  %5097 = vmatprep.mubr.bf16.mxu0 %v2342_v5 }
 0x64f   : > { %5817 = vrcp.f32 %v2287_v2  ;;  %v4502_v51 = vmul.f32 -1.442695, %v2222_v11  ;;  %v2225_v4 = vadd.f32 %v5076_v3, %v6815_v41  ;;  %v2216_v12 = vpop.f32.mrb[63].mxu1  ;;  %5098 = vmatmul.mubr.bf16.gmra.mrb[68].mxu0 %v2343_v61 }
 0x650   : > { %5819 = vrcp.f32 %v2285_v28  ;;  %v4500_v13 = vmul.f32 -1.442695, %v2214_v10  ;;  %v2217_v15 = vadd.f32 %v6815_v41, %v2216_v12  ;;  %5116 = vmatpush3.bf16.msra.mxu1 %v5328_v23 }
 0x651   : > { %5821 = vpow2.f32 %v4502_v51  ;;  %v4503_v17 = vmul.f32 -1.442695, %v2225_v4  ;;  %5117 = vmatprep.subr.bf16.mxu1 %v5329_v56 }
 0x652   : > { %5823 = vpow2.f32 %v4500_v13  ;;  %v4501_v19 = vmul.f32 -1.442695, %v2217_v15 }
 0x653   : > { %5825 = vpow2.f32 %v4503_v17 }
 0x654   : > { %5827 = vpow2.f32 %v4501_v19  ;;  %5118 = vmatpush3.bf16.msra.mxu1 %v5329_v56 }
 0x655   : > { %5119 = vmatprep.subr.bf16.mxu1 %v5330_v57 }
 0x657   : > { %v5814_v20 = vpop.eup %5813 }
 0x658   : > { %v5816_v21 = vpop.eup %5815  ;;  %v2334_v6 = vmul.f32 %v5814_v20, %v6826_v31  ;;  %5120 = vmatpush3.bf16.msra.mxu1 %v5330_v57 }
 0x659   : > { %v5818_v18 = vpop.eup %5817  ;;  %v2332_v33 = vmul.f32 %v5816_v21, %v2198_v36  ;;  %5121 = vmatprep.subr.bf16.mxu1 %v5331_v26 }
 0x65a   : > { %v5820_v38 = vpop.eup %5819  ;;  %v2335_v54 = vmul.f32 %v5818_v18, %v2209_v34 }
 0x65b   : > { %v5822_v60 = vpop.eup %5821  ;;  %v2333_v37 = vmul.f32 %v5820_v38, %v2201_v14 }
 0x65c   : > { %v5824_v24 = vpop.eup %5823  ;;  %v2290_v25 = vadd.f32 1.0, %v5822_v60  ;;  %v2345_v9 = vpack.c.bf16 %v2335_v54, %v2334_v6  ;;  %5122 = vmatpush3.bf16.msra.mxu1 %v5331_v26 }
 0x65d   : > { %v5826_v41 = vpop.eup %5825  ;;  %v2288_v58 = vadd.f32 1.0, %v5824_v24  ;;  %v2344_v7 = vpack.c.bf16 %v2333_v37, %v2332_v33  ;;  %5123 = vmatprep.subr.bf16.mxu1 %v5332_v59 }
 0x65e   : > { %v5828_v52 = vpop.eup %5827  ;;  %5829 = vrcp.f32 %v2290_v25  ;;  %v2291_v27 = vadd.f32 1.0, %v5826_v41 }
 0x65f   : > { %5831 = vrcp.f32 %v2288_v58  ;;  %v2289_v50 = vadd.f32 1.0, %v5828_v52  ;;  %5101 = vmatprep.mubr.bf16.mxu0 %v2344_v7 }
 0x660   : > { %5833 = vrcp.f32 %v2291_v27  ;;  %5102 = vmatmul.mubr.bf16.gmra.mrb[72].mxu0 %v2345_v9  ;;  %5124 = vmatpush3.bf16.msra.mxu1 %v5332_v59 }
 0x661   : > { %5835 = vrcp.f32 %v2289_v50 }
 0x668   : > { %v5830_v31 = vpop.eup %5829 }
 0x669   : > { %v5832_v22 = vpop.eup %5831  ;;  %v2338_v32 = vmul.f32 %v5830_v31, %v2222_v11 }
 0x66a   : > { %v5834_v35 = vpop.eup %5833  ;;  %v2336_v34 = vmul.f32 %v5832_v22, %v2214_v10 }
 0x66b   : > { %v5836_v36 = vpop.eup %5835  ;;  %v2339_v40 = vmul.f32 %v5834_v35, %v2225_v4 }
 0x66c   : > { %v2337_v42 = vmul.f32 %v5836_v36, %v2217_v15 }
 0x66d   : > { %v2347_v49 = vpack.c.bf16 %v2339_v40, %v2338_v32 }
 0x66e   : > { %v2346_v14 = vpack.c.bf16 %v2337_v42, %v2336_v34 }
 0x670   : > { %5105 = vmatprep.mubr.bf16.mxu0 %v2346_v14 }
 0x671   : > { %5106 = vmatmul.mubr.bf16.gmra.mrb[76].mxu0 %v2347_v49 }
 0x70f   : > { %v5095_v16 = vpop.f32.mrb[64].mxu0 }
 0x710   : > { %v2464_v30 = vadd.f32 %v5095_v16, %v6840_v1  ;;  %v2455_v29 = vpop.f32.mrb[65].mxu0 }
 0x711   : > { %v2456_v39 = vadd.f32 %v6840_v1, %v2455_v29  ;;  %v5096_v61 = vpop.f32.mrb[66].mxu0 }
 0x712   : > { %v4516_v55 = vmul.f32 -1.442695, %v2464_v30  ;;  %v2467_v62 = vadd.f32 %v5096_v61, %v6840_v1  ;;  %v2458_v63 = vpop.f32.mrb[67].mxu0 }
 0x713   : > { %v4514_v5 = vmul.f32 -1.442695, %v2456_v39  ;;  %v2459_v53 = vadd.f32 %v6840_v1, %v2458_v63 }
 0x714   : > { %5837 = vpow2.f32 %v4516_v55  ;;  %v4517_v2 = vmul.f32 -1.442695, %v2467_v62 }
 0x715   : > { %5839 = vpow2.f32 %v4514_v5  ;;  %v4515_v11 = vmul.f32 -1.442695, %v2459_v53 }
 0x716   : > { %5841 = vpow2.f32 %v4517_v2 }
 0x717   : > { %5843 = vpow2.f32 %v4515_v11 }
 0x71e   : > { %v5838_v8 = vpop.eup %5837 }
 0x71f   : > { %v5840_v28 = vpop.eup %5839  ;;  %v2568_v10 = vadd.f32 1.0, %v5838_v8 }
 0x720   : > { %v5842_v3 = vpop.eup %5841  ;;  %v2566_v51 = vadd.f32 1.0, %v5840_v28 }
 0x721   : > { %v5844_v4 = vpop.eup %5843  ;;  %5845 = vrcp.f32 %v2568_v10  ;;  %v2569_v12 = vadd.f32 1.0, %v5842_v3 }
 0x722   : > { %5847 = vrcp.f32 %v2566_v51  ;;  %v2567_v13 = vadd.f32 1.0, %v5844_v4  ;;  %v5099_v15 = vpop.f32.mrb[68].mxu0 }
 0x723   : > { %5849 = vrcp.f32 %v2569_v12  ;;  %v2480_v17 = vadd.f32 %v5099_v15, %v6840_v1  ;;  %v2471_v19 = vpop.f32.mrb[69].mxu0 }
 0x724   : > { %5851 = vrcp.f32 %v2567_v13  ;;  %v2472_v20 = vadd.f32 %v6840_v1, %v2471_v19  ;;  %v5100_v21 = vpop.f32.mrb[70].mxu0 }
 0x725   : > { %v4520_v18 = vmul.f32 -1.442695, %v2480_v17  ;;  %v2483_v38 = vadd.f32 %v5100_v21, %v6840_v1  ;;  %v2474_v6 = vpop.f32.mrb[71].mxu0 }
 0x726   : > { %v4518_v54 = vmul.f32 -1.442695, %v2472_v20  ;;  %v2475_v60 = vadd.f32 %v6840_v1, %v2474_v6 }
 0x727   : > { %5853 = vpow2.f32 %v4520_v18  ;;  %v4521_v33 = vmul.f32 -1.442695, %v2483_v38 }
 0x728   : > { %5855 = vpow2.f32 %v4518_v54  ;;  %v4519_v37 = vmul.f32 -1.442695, %v2475_v60 }
 0x729   : > { %5857 = vpow2.f32 %v4521_v33 }
 0x72a   : > { %5859 = vpow2.f32 %v4519_v37 }
 0x72b   : > { %v5846_v24 = vpop.eup %5845 }
 0x72c   : > { %v5848_v25 = vpop.eup %5847  ;;  %v2616_v58 = vmul.f32 %v5846_v24, %v2464_v30 }
 0x72d   : > { %v5850_v9 = vpop.eup %5849  ;;  %v2614_v52 = vmul.f32 %v5848_v25, %v2456_v39 }
 0x72e   : > { %v5852_v41 = vpop.eup %5851  ;;  %v2617_v7 = vmul.f32 %v5850_v9, %v2467_v62 }
 0x72f   : > { %v2615_v27 = vmul.f32 %v5852_v41, %v2459_v53 }
 0x730   : > { %v2631_v50 = vpack.c.bf16 %v2617_v7, %v2616_v58 }
 0x731   : > { %v5854_v31 = vpop.eup %5853  ;;  %v2630_v22 = vpack.c.bf16 %v2615_v27, %v2614_v52 }
 0x732   : > { %v5856_v35 = vpop.eup %5855  ;;  %v2572_v36 = vadd.f32 1.0, %v5854_v31 }
 0x733   : > { %v5858_v32 = vpop.eup %5857  ;;  %v2570_v40 = vadd.f32 1.0, %v5856_v35  ;;  %v5103_v34 = vpop.f32.mrb[72].mxu0  ;;  %5125 = vmatprep.mubr.bf16.mxu1 %v2630_v22 }
 0x734   : > { %v5860_v42 = vpop.eup %5859  ;;  %5861 = vrcp.f32 %v2572_v36  ;;  %v2573_v49 = vadd.f32 1.0, %v5858_v32  ;;  %v6851_v14 = vadd.f32 %v5103_v34, %v6840_v1  ;;  %v2487_v43 = vpop.f32.mrb[73].mxu0  ;;  %5126 = vmatmul.mubr.bf16.vlgmr.msra.gmra.mrb[64].mxu1 %v2631_v50 }
 0x735   : > { %5863 = vrcp.f32 %v2570_v40  ;;  %v2571_v44 = vadd.f32 1.0, %v5860_v42  ;;  %v2488_v47 = vadd.f32 %v6840_v1, %v2487_v43  ;;  %v5104_v23 = vpop.f32.mrb[74].mxu0 }
 0x736   : > { %5865 = vrcp.f32 %v2573_v49  ;;  %v4524_v56 = vmul.f32 -1.442695, %v6851_v14  ;;  %v2499_v57 = vadd.f32 %v5104_v23, %v6840_v1  ;;  %v2490_v26 = vpop.f32.mrb[75].mxu0 }
 0x737   : > { %5867 = vrcp.f32 %v2571_v44  ;;  %v4522_v59 = vmul.f32 -1.442695, %v2488_v47  ;;  %v2491_v16 = vadd.f32 %v6840_v1, %v2490_v26 }
 0x738   : > { %5869 = vpow2.f32 %v4524_v56  ;;  %v4525_v30 = vmul.f32 -1.442695, %v2499_v57 }
 0x739   : > { %5871 = vpow2.f32 %v4522_v59  ;;  %v4523_v29 = vmul.f32 -1.442695, %v2491_v16 }
 0x73a   : > { %5873 = vpow2.f32 %v4525_v30  ;;  %v5333_v30 = vld [vmem:[#allocation4 + $0x180] sm:$0xff]  }
 0x73b   : > { %5875 = vpow2.f32 %v4523_v29  ;;  %5141 = vmatprep.subr.bf16.mxu0 %v5333_v30  ;;  %v5334_v29 = vld [vmem:[#allocation4 + $0x188] sm:$0xff]  }
 0x73c   : > { %5142 = vmatpush3.bf16.msra.mxu0 %v5333_v30 }
 0x73d   : > { %5143 = vmatprep.subr.bf16.mxu0 %v5334_v29 }
 0x73e   : > { %v5862_v39 = vpop.eup %5861 }
 0x73f   : > { %v5864_v61 = vpop.eup %5863  ;;  %v2620_v63 = vmul.f32 %v5862_v39, %v2480_v17  ;;  %v5335_v39 = vld [vmem:[#allocation4 + $0x190] sm:$0xff]  }
 0x740   : > { %v5866_v55 = vpop.eup %5865  ;;  %v2618_v2 = vmul.f32 %v5864_v61, %v2472_v20  ;;  %5144 = vmatpush3.bf16.msra.mxu0 %v5334_v29  ;;  %v5336_v61 = vld [vmem:[#allocation4 + $0x198] sm:$0xff]  }
 0x741   : > { %v5868_v62 = vpop.eup %5867  ;;  %v2621_v5 = vmul.f32 %v5866_v55, %v2483_v38  ;;  %5145 = vmatprep.subr.bf16.mxu0 %v5335_v39  ;;  %v5337_v55 = vld [vmem:[#allocation4 + $0x1a0] sm:$0xff]  }
 0x742   : > { %v5870_v53 = vpop.eup %5869  ;;  %v2619_v11 = vmul.f32 %v5868_v62, %v2475_v60  ;;  %v5338_v62 = vld [vmem:[#allocation4 + $0x1a8] sm:$0xff]  }
 0x743   : > { %v5872_v8 = vpop.eup %5871  ;;  %v2576_v28 = vadd.f32 1.0, %v5870_v53  ;;  %v2633_v10 = vpack.c.bf16 %v2621_v5, %v2620_v63  ;;  %v5339_v63 = vld [vmem:[#allocation4 + $0x1b0] sm:$0xff]   ;;  %v5340_v5 = vld [vmem:[#allocation4 + $0x1b8] sm:$0xff]   ;;  %v6865_v53 = vld [vmem:[%s7220_s6 + $0x5] ss:$0 sm:$0xff] }
 0x744   : > { %v5874_v3 = vpop.eup %5873  ;;  %v2574_v51 = vadd.f32 1.0, %v5872_v8  ;;  %v5107_v4 = vpop.f32.mrb[76].mxu0  ;;  %v2632_v12 = vpack.c.bf16 %v2619_v11, %v2618_v2  ;;  %5146 = vmatpush3.bf16.msra.mxu0 %v5335_v39 }
 0x745   : > { %v5876_v13 = vpop.eup %5875  ;;  %5877 = vrcp.f32 %v2576_v28  ;;  %v2577_v15 = vadd.f32 1.0, %v5874_v3  ;;  %v2512_v19 = vadd.f32 %v5107_v4, %v6840_v1  ;;  %v2503_v21 = vpop.f32.mrb[77].mxu0  ;;  %5147 = vmatprep.subr.bf16.mxu0 %v5336_v61 }
 0x746   : > { %5879 = vrcp.f32 %v2574_v51  ;;  %v2575_v18 = vadd.f32 1.0, %v5876_v13  ;;  %v2504_v17 = vadd.f32 %v6840_v1, %v2503_v21  ;;  %v5108_v38 = vpop.f32.mrb[78].mxu0  ;;  %5129 = vmatprep.mubr.bf16.mxu1 %v2632_v12 }
 0x747   : > { %5881 = vrcp.f32 %v2577_v15  ;;  %v4528_v20 = vmul.f32 -1.442695, %v2512_v19  ;;  %v2515_v6 = vadd.f32 %v5108_v38, %v6840_v1  ;;  %v2506_v54 = vpop.f32.mrb[79].mxu0  ;;  %5130 = vmatmul.mubr.bf16.gmra.mrb[68].mxu1 %v2633_v10 }
 0x748   : > { %5883 = vrcp.f32 %v2575_v18  ;;  %v4526_v60 = vmul.f32 -1.442695, %v2504_v17  ;;  %v2507_v33 = vadd.f32 %v6840_v1, %v2506_v54  ;;  %5148 = vmatpush3.bf16.msra.mxu0 %v5336_v61 }
 0x749   : > { %5885 = vpow2.f32 %v4528_v20  ;;  %v4529_v37 = vmul.f32 -1.442695, %v2515_v6  ;;  %5149 = vmatprep.subr.bf16.mxu0 %v5337_v55 }
 0x74a   : > { %5887 = vpow2.f32 %v4526_v60  ;;  %v4527_v24 = vmul.f32 -1.442695, %v2507_v33 }
 0x74b   : > { %5889 = vpow2.f32 %v4529_v37 }
 0x74c   : > { %5891 = vpow2.f32 %v4527_v24  ;;  %5150 = vmatpush3.bf16.msra.mxu0 %v5337_v55 }
 0x74d   : > { %5151 = vmatprep.subr.bf16.mxu0 %v5338_v62 }
 0x74f   : > { %v5878_v25 = vpop.eup %5877 }
 0x750   : > { %v5880_v9 = vpop.eup %5879  ;;  %v2624_v7 = vmul.f32 %v5878_v25, %v6851_v14  ;;  %5152 = vmatpush3.bf16.msra.mxu0 %v5338_v62 }
 0x751   : > { %v5882_v41 = vpop.eup %5881  ;;  %v2622_v50 = vmul.f32 %v5880_v9, %v2488_v47  ;;  %5153 = vmatprep.subr.bf16.mxu0 %v5339_v63 }
 0x752   : > { %v5884_v58 = vpop.eup %5883  ;;  %v2625_v52 = vmul.f32 %v5882_v41, %v2499_v57 }
 0x753   : > { %v5886_v27 = vpop.eup %5885  ;;  %v2623_v31 = vmul.f32 %v5884_v58, %v2491_v16 }
 0x754   : > { %v5888_v22 = vpop.eup %5887  ;;  %v2580_v35 = vadd.f32 1.0, %v5886_v27  ;;  %v2635_v36 = vpack.c.bf16 %v2625_v52, %v2624_v7  ;;  %5154 = vmatpush3.bf16.msra.mxu0 %v5339_v63 }
 0x755   : > { %v5890_v1 = vpop.eup %5889  ;;  %v2578_v32 = vadd.f32 1.0, %v5888_v22  ;;  %v2634_v40 = vpack.c.bf16 %v2623_v31, %v2622_v50  ;;  %5155 = vmatprep.subr.bf16.mxu0 %v5340_v5 }
 0x756   : > { %v5892_v34 = vpop.eup %5891  ;;  %5893 = vrcp.f32 %v2580_v35  ;;  %v2581_v42 = vadd.f32 1.0, %v5890_v1 }
 0x757   : > { %5895 = vrcp.f32 %v2578_v32  ;;  %v2579_v49 = vadd.f32 1.0, %v5892_v34  ;;  %5133 = vmatprep.mubr.bf16.mxu1 %v2634_v40 }
 0x758   : > { %5897 = vrcp.f32 %v2581_v42  ;;  %5134 = vmatmul.mubr.bf16.gmra.mrb[72].mxu1 %v2635_v36  ;;  %5156 = vmatpush3.bf16.msra.mxu0 %v5340_v5 }
 0x759   : > { %5899 = vrcp.f32 %v2579_v49 }
 0x760   : > { %v5894_v14 = vpop.eup %5893 }
 0x761   : > { %v5896_v43 = vpop.eup %5895  ;;  %v2628_v23 = vmul.f32 %v5894_v14, %v2512_v19 }
 0x762   : > { %v5898_v44 = vpop.eup %5897  ;;  %v2626_v57 = vmul.f32 %v5896_v43, %v2504_v17 }
 0x763   : > { %v5900_v47 = vpop.eup %5899  ;;  %v2629_v56 = vmul.f32 %v5898_v44, %v2515_v6 }
 0x764   : > { %v2627_v26 = vmul.f32 %v5900_v47, %v2507_v33 }
 0x765   : > { %v2637_v59 = vpack.c.bf16 %v2629_v56, %v2628_v23 }
 0x766   : > { %v2636_v16 = vpack.c.bf16 %v2627_v26, %v2626_v57 }
 0x768   : > { %5137 = vmatprep.mubr.bf16.mxu1 %v2636_v16 }
 0x769   : > { %5138 = vmatmul.mubr.bf16.gmra.mrb[76].mxu1 %v2637_v59 }
 0x807   : > { %v5127_v2 = vpop.f32.mrb[64].mxu1 }
 0x808   : > { %v2754_v11 = vadd.f32 %v5127_v2, %v6865_v53  ;;  %v2745_v8 = vpop.f32.mrb[65].mxu1 }
 0x809   : > { %v2746_v28 = vadd.f32 %v6865_v53, %v2745_v8  ;;  %v5128_v10 = vpop.f32.mrb[66].mxu1 }
 0x80a   : > { %v4542_v3 = vmul.f32 -1.442695, %v2754_v11  ;;  %v2757_v51 = vadd.f32 %v5128_v10, %v6865_v53  ;;  %v2748_v4 = vpop.f32.mrb[67].mxu1 }
 0x80b   : > { %v4540_v12 = vmul.f32 -1.442695, %v2746_v28  ;;  %v2749_v13 = vadd.f32 %v6865_v53, %v2748_v4 }
 0x80c   : > { %5901 = vpow2.f32 %v4542_v3  ;;  %v4543_v15 = vmul.f32 -1.442695, %v2757_v51 }
 0x80d   : > { %5903 = vpow2.f32 %v4540_v12  ;;  %v4541_v19 = vmul.f32 -1.442695, %v2749_v13 }
 0x80e   : > { %5905 = vpow2.f32 %v4543_v15 }
 0x80f   : > { %5907 = vpow2.f32 %v4541_v19 }
 0x816   : > { %v5902_v21 = vpop.eup %5901 }
 0x817   : > { %v5904_v18 = vpop.eup %5903  ;;  %v2858_v17 = vadd.f32 1.0, %v5902_v21 }
 0x818   : > { %v5906_v38 = vpop.eup %5905  ;;  %v2856_v20 = vadd.f32 1.0, %v5904_v18 }
 0x819   : > { %v5908_v6 = vpop.eup %5907  ;;  %5909 = vrcp.f32 %v2858_v17  ;;  %v2859_v54 = vadd.f32 1.0, %v5906_v38 }
 0x81a   : > { %5911 = vrcp.f32 %v2856_v20  ;;  %v2857_v60 = vadd.f32 1.0, %v5908_v6  ;;  %v5131_v33 = vpop.f32.mrb[68].mxu1 }
 0x81b   : > { %5913 = vrcp.f32 %v2859_v54  ;;  %v2770_v37 = vadd.f32 %v5131_v33, %v6865_v53  ;;  %v2761_v24 = vpop.f32.mrb[69].mxu1 }
 0x81c   : > { %5915 = vrcp.f32 %v2857_v60  ;;  %v2762_v25 = vadd.f32 %v6865_v53, %v2761_v24  ;;  %v5132_v9 = vpop.f32.mrb[70].mxu1 }
 0x81d   : > { %v4546_v41 = vmul.f32 -1.442695, %v2770_v37  ;;  %v2773_v58 = vadd.f32 %v5132_v9, %v6865_v53  ;;  %v2764_v7 = vpop.f32.mrb[71].mxu1 }
 0x81e   : > { %v4544_v52 = vmul.f32 -1.442695, %v2762_v25  ;;  %v2765_v27 = vadd.f32 %v6865_v53, %v2764_v7 }
 0x81f   : > { %5917 = vpow2.f32 %v4546_v41  ;;  %v4547_v50 = vmul.f32 -1.442695, %v2773_v58 }
 0x820   : > { %5919 = vpow2.f32 %v4544_v52  ;;  %v4545_v31 = vmul.f32 -1.442695, %v2765_v27 }
 0x821   : > { %5921 = vpow2.f32 %v4547_v50 }
 0x822   : > { %5923 = vpow2.f32 %v4545_v31 }
 0x823   : > { %v5910_v22 = vpop.eup %5909 }
 0x824   : > { %v5912_v35 = vpop.eup %5911  ;;  %v2906_v32 = vmul.f32 %v5910_v22, %v2754_v11 }
 0x825   : > { %v5914_v36 = vpop.eup %5913  ;;  %v2904_v34 = vmul.f32 %v5912_v35, %v2746_v28 }
 0x826   : > { %v5916_v1 = vpop.eup %5915  ;;  %v2907_v40 = vmul.f32 %v5914_v36, %v2757_v51 }
 0x827   : > { %v2905_v42 = vmul.f32 %v5916_v1, %v2749_v13 }
 0x828   : > { %v2921_v49 = vpack.c.bf16 %v2907_v40, %v2906_v32 }
 0x829   : > { %v5918_v14 = vpop.eup %5917  ;;  %v2920_v43 = vpack.c.bf16 %v2905_v42, %v2904_v34 }
 0x82a   : > { %v5920_v44 = vpop.eup %5919  ;;  %v2862_v47 = vadd.f32 1.0, %v5918_v14 }
 0x82b   : > { %v5922_v23 = vpop.eup %5921  ;;  %v2860_v56 = vadd.f32 1.0, %v5920_v44  ;;  %v5135_v57 = vpop.f32.mrb[72].mxu1  ;;  %5157 = vmatprep.mubr.bf16.mxu0 %v2920_v43 }
 0x82c   : > { %v5924_v26 = vpop.eup %5923  ;;  %5925 = vrcp.f32 %v2862_v47  ;;  %v2863_v59 = vadd.f32 1.0, %v5922_v23  ;;  %v6876_v16 = vadd.f32 %v5135_v57, %v6865_v53  ;;  %v2777_v30 = vpop.f32.mrb[73].mxu1  ;;  %5158 = vmatmul.mubr.bf16.vlgmr.msra.gmra.mrb[80].mxu0 %v2921_v49 }
 0x82d   : > { %5927 = vrcp.f32 %v2860_v56  ;;  %v2861_v29 = vadd.f32 1.0, %v5924_v26  ;;  %v2778_v39 = vadd.f32 %v6865_v53, %v2777_v30  ;;  %v5136_v61 = vpop.f32.mrb[74].mxu1 }
 0x82e   : > { %5929 = vrcp.f32 %v2863_v59  ;;  %v4550_v55 = vmul.f32 -1.442695, %v6876_v16  ;;  %v2789_v62 = vadd.f32 %v5136_v61, %v6865_v53  ;;  %v2780_v63 = vpop.f32.mrb[75].mxu1 }
 0x82f   : > { %5931 = vrcp.f32 %v2861_v29  ;;  %v4548_v5 = vmul.f32 -1.442695, %v2778_v39  ;;  %v2781_v2 = vadd.f32 %v6865_v53, %v2780_v63 }
 0x830   : > { %5933 = vpow2.f32 %v4550_v55  ;;  %v4551_v11 = vmul.f32 -1.442695, %v2789_v62 }
 0x831   : > { %5935 = vpow2.f32 %v4548_v5  ;;  %v4549_v8 = vmul.f32 -1.442695, %v2781_v2 }
 0x832   : > { %5937 = vpow2.f32 %v4551_v11  ;;  %v5341_v11 = vld [vmem:[#allocation4 + $0x1c0] sm:$0xff]  }
 0x833   : > { %5939 = vpow2.f32 %v4549_v8  ;;  %5173 = vmatprep.subr.bf16.mxu1 %v5341_v11  ;;  %v5342_v8 = vld [vmem:[#allocation4 + $0x1c8] sm:$0xff]  }
 0x834   : > { %5174 = vmatpush3.bf16.msra.mxu1 %v5341_v11 }
 0x835   : > { %5175 = vmatprep.subr.bf16.mxu1 %v5342_v8 }
 0x836   : > { %v5926_v28 = vpop.eup %5925 }
 0x837   : > { %v5928_v10 = vpop.eup %5927  ;;  %v2910_v4 = vmul.f32 %v5926_v28, %v2770_v37  ;;  %v5343_v28 = vld [vmem:[#allocation4 + $0x1d0] sm:$0xff]  }
 0x838   : > { %v5930_v3 = vpop.eup %5929  ;;  %v2908_v15 = vmul.f32 %v5928_v10, %v2762_v25  ;;  %5176 = vmatpush3.bf16.msra.mxu1 %v5342_v8  ;;  %v5344_v10 = vld [vmem:[#allocation4 + $0x1d8] sm:$0xff]  }
 0x839   : > { %v5932_v51 = vpop.eup %5931  ;;  %v2911_v12 = vmul.f32 %v5930_v3, %v2773_v58  ;;  %5177 = vmatprep.subr.bf16.mxu1 %v5343_v28  ;;  %v5345_v3 = vld [vmem:[#allocation4 + $0x1e0] sm:$0xff]  }
 0x83a   : > { %v5934_v13 = vpop.eup %5933  ;;  %v2909_v19 = vmul.f32 %v5932_v51, %v2765_v27  ;;  %v5346_v51 = vld [vmem:[#allocation4 + $0x1e8] sm:$0xff]  }
 0x83b   : > { %v5936_v21 = vpop.eup %5935  ;;  %v2866_v18 = vadd.f32 1.0, %v5934_v13  ;;  %v2923_v17 = vpack.c.bf16 %v2911_v12, %v2910_v4  ;;  %v5347_v4 = vld [vmem:[#allocation4 + $0x1f0] sm:$0xff]   ;;  %v5348_v12 = vld [vmem:[#allocation4 + $0x1f8] sm:$0xff]   ;;  %v6891_v13 = vld [vmem:[%s7220_s6 + $0x6] ss:$0 sm:$0xff] }
 0x83c   : > { %v5938_v38 = vpop.eup %5937  ;;  %v2864_v20 = vadd.f32 1.0, %v5936_v21  ;;  %v5139_v6 = vpop.f32.mrb[76].mxu1  ;;  %v2922_v54 = vpack.c.bf16 %v2909_v19, %v2908_v15  ;;  %5178 = vmatpush3.bf16.msra.mxu1 %v5343_v28 }
 0x83d   : > { %v5940_v60 = vpop.eup %5939  ;;  %5941 = vrcp.f32 %v2866_v18  ;;  %v2867_v33 = vadd.f32 1.0, %v5938_v38  ;;  %v2802_v24 = vadd.f32 %v5139_v6, %v6865_v53  ;;  %v2793_v9 = vpop.f32.mrb[77].mxu1  ;;  %5179 = vmatprep.subr.bf16.mxu1 %v5344_v10 }
 0x83e   : > { %5943 = vrcp.f32 %v2864_v20  ;;  %v2865_v41 = vadd.f32 1.0, %v5940_v60  ;;  %v2794_v37 = vadd.f32 %v6865_v53, %v2793_v9  ;;  %v5140_v58 = vpop.f32.mrb[78].mxu1  ;;  %5161 = vmatprep.mubr.bf16.mxu0 %v2922_v54 }
 0x83f   : > { %5945 = vrcp.f32 %v2867_v33  ;;  %v4554_v25 = vmul.f32 -1.442695, %v2802_v24  ;;  %v2805_v7 = vadd.f32 %v5140_v58, %v6865_v53  ;;  %v2796_v52 = vpop.f32.mrb[79].mxu1  ;;  %5162 = vmatmul.mubr.bf16.gmra.mrb[84].mxu0 %v2923_v17 }
 0x840   : > { %5947 = vrcp.f32 %v2865_v41  ;;  %v4552_v27 = vmul.f32 -1.442695, %v2794_v37  ;;  %v2797_v50 = vadd.f32 %v6865_v53, %v2796_v52  ;;  %5180 = vmatpush3.bf16.msra.mxu1 %v5344_v10 }
 0x841   : > { %5949 = vpow2.f32 %v4554_v25  ;;  %v4555_v31 = vmul.f32 -1.442695, %v2805_v7  ;;  %5181 = vmatprep.subr.bf16.mxu1 %v5345_v3 }
 0x842   : > { %5951 = vpow2.f32 %v4552_v27  ;;  %v4553_v22 = vmul.f32 -1.442695, %v2797_v50 }
 0x843   : > { %5953 = vpow2.f32 %v4555_v31 }
 0x844   : > { %5955 = vpow2.f32 %v4553_v22  ;;  %5182 = vmatpush3.bf16.msra.mxu1 %v5345_v3 }
 0x845   : > { %5183 = vmatprep.subr.bf16.mxu1 %v5346_v51 }
 0x847   : > { %v5942_v35 = vpop.eup %5941 }
 0x848   : > { %v5944_v36 = vpop.eup %5943  ;;  %v2914_v40 = vmul.f32 %v5942_v35, %v6876_v16  ;;  %5184 = vmatpush3.bf16.msra.mxu1 %v5346_v51 }
 0x849   : > { %v5946_v1 = vpop.eup %5945  ;;  %v2912_v49 = vmul.f32 %v5944_v36, %v2778_v39  ;;  %5185 = vmatprep.subr.bf16.mxu1 %v5347_v4 }
 0x84a   : > { %v5948_v32 = vpop.eup %5947  ;;  %v2915_v34 = vmul.f32 %v5946_v1, %v2789_v62 }
 0x84b   : > { %v5950_v42 = vpop.eup %5949  ;;  %v2913_v14 = vmul.f32 %v5948_v32, %v2781_v2 }
 0x84c   : > { %v5952_v43 = vpop.eup %5951  ;;  %v2870_v44 = vadd.f32 1.0, %v5950_v42  ;;  %v2925_v47 = vpack.c.bf16 %v2915_v34, %v2914_v40  ;;  %5186 = vmatpush3.bf16.msra.mxu1 %v5347_v4 }
 0x84d   : > { %v5954_v53 = vpop.eup %5953  ;;  %v2868_v23 = vadd.f32 1.0, %v5952_v43  ;;  %v2924_v56 = vpack.c.bf16 %v2913_v14, %v2912_v49  ;;  %5187 = vmatprep.subr.bf16.mxu1 %v5348_v12 }
 0x84e   : > { %v5956_v57 = vpop.eup %5955  ;;  %5957 = vrcp.f32 %v2870_v44  ;;  %v2871_v26 = vadd.f32 1.0, %v5954_v53 }
 0x84f   : > { %5959 = vrcp.f32 %v2868_v23  ;;  %v2869_v59 = vadd.f32 1.0, %v5956_v57  ;;  %5165 = vmatprep.mubr.bf16.mxu0 %v2924_v56 }
 0x850   : > { %5961 = vrcp.f32 %v2871_v26  ;;  %5166 = vmatmul.mubr.bf16.gmra.mrb[88].mxu0 %v2925_v47  ;;  %5188 = vmatpush3.bf16.msra.mxu1 %v5348_v12 }
 0x851   : > { %5963 = vrcp.f32 %v2869_v59 }
 0x858   : > { %v5958_v16 = vpop.eup %5957 }
 0x859   : > { %v5960_v30 = vpop.eup %5959  ;;  %v2918_v61 = vmul.f32 %v5958_v16, %v2802_v24 }
 0x85a   : > { %v5962_v29 = vpop.eup %5961  ;;  %v2916_v62 = vmul.f32 %v5960_v30, %v2794_v37 }
 0x85b   : > { %v5964_v39 = vpop.eup %5963  ;;  %v2919_v55 = vmul.f32 %v5962_v29, %v2805_v7 }
 0x85c   : > { %v2917_v63 = vmul.f32 %v5964_v39, %v2797_v50 }
 0x85d   : > { %v2927_v5 = vpack.c.bf16 %v2919_v55, %v2918_v61 }
 0x85e   : > { %v2926_v2 = vpack.c.bf16 %v2917_v63, %v2916_v62 }
 0x860   : > { %5169 = vmatprep.mubr.bf16.mxu0 %v2926_v2 }
 0x861   : > { %5170 = vmatmul.mubr.bf16.gmra.mrb[92].mxu0 %v2927_v5 }
 0x862   : > { %3650 = vmatprep.mubr.bf16.mxu0 %v6297_v0 }
 0x8ff   : > { %v5159_v15 = vpop.f32.mrb[80].mxu0 }
 0x900   : > { %v3044_v19 = vadd.f32 %v5159_v15, %v6891_v13  ;;  %v3035_v21 = vpop.f32.mrb[81].mxu0 }
 0x901   : > { %v3036_v18 = vadd.f32 %v6891_v13, %v3035_v21  ;;  %v5160_v17 = vpop.f32.mrb[82].mxu0 }
 0x902   : > { %v4568_v38 = vmul.f32 -1.442695, %v3044_v19  ;;  %v3047_v20 = vadd.f32 %v5160_v17, %v6891_v13  ;;  %v3038_v6 = vpop.f32.mrb[83].mxu0 }
 0x903   : > { %v4566_v54 = vmul.f32 -1.442695, %v3036_v18  ;;  %v3039_v60 = vadd.f32 %v6891_v13, %v3038_v6 }
 0x904   : > { %5965 = vpow2.f32 %v4568_v38  ;;  %v4569_v33 = vmul.f32 -1.442695, %v3047_v20 }
 0x905   : > { %5967 = vpow2.f32 %v4566_v54  ;;  %v4567_v24 = vmul.f32 -1.442695, %v3039_v60 }
 0x906   : > { %5969 = vpow2.f32 %v4569_v33 }
 0x907   : > { %5971 = vpow2.f32 %v4567_v24 }
 0x90e   : > { %v5966_v9 = vpop.eup %5965 }
 0x90f   : > { %v5968_v41 = vpop.eup %5967  ;;  %v3148_v37 = vadd.f32 1.0, %v5966_v9 }
 0x910   : > { %v5970_v58 = vpop.eup %5969  ;;  %v3146_v25 = vadd.f32 1.0, %v5968_v41 }
 0x911   : > { %v5972_v7 = vpop.eup %5971  ;;  %5973 = vrcp.f32 %v3148_v37  ;;  %v3149_v52 = vadd.f32 1.0, %v5970_v58 }
 0x912   : > { %5975 = vrcp.f32 %v3146_v25  ;;  %v3147_v27 = vadd.f32 1.0, %v5972_v7  ;;  %v5163_v50 = vpop.f32.mrb[84].mxu0 }
 0x913   : > { %5977 = vrcp.f32 %v3149_v52  ;;  %v3060_v31 = vadd.f32 %v5163_v50, %v6891_v13  ;;  %v3051_v22 = vpop.f32.mrb[85].mxu0 }
 0x914   : > { %5979 = vrcp.f32 %v3147_v27  ;;  %v3052_v35 = vadd.f32 %v6891_v13, %v3051_v22  ;;  %v5164_v36 = vpop.f32.mrb[86].mxu0 }
 0x915   : > { %v4572_v1 = vmul.f32 -1.442695, %v3060_v31  ;;  %v3063_v32 = vadd.f32 %v5164_v36, %v6891_v13  ;;  %v3054_v40 = vpop.f32.mrb[87].mxu0 }
 0x916   : > { %v4570_v34 = vmul.f32 -1.442695, %v3052_v35  ;;  %v3055_v42 = vadd.f32 %v6891_v13, %v3054_v40 }
 0x917   : > { %5981 = vpow2.f32 %v4572_v1  ;;  %v4573_v49 = vmul.f32 -1.442695, %v3063_v32 }
 0x918   : > { %5983 = vpow2.f32 %v4570_v34  ;;  %v4571_v14 = vmul.f32 -1.442695, %v3055_v42 }
 0x919   : > { %5985 = vpow2.f32 %v4573_v49 }
 0x91a   : > { %5987 = vpow2.f32 %v4571_v14 }
 0x91b   : > { %v5974_v43 = vpop.eup %5973 }
 0x91c   : > { %v5976_v44 = vpop.eup %5975  ;;  %v3196_v23 = vmul.f32 %v5974_v43, %v3044_v19 }
 0x91d   : > { %v5978_v47 = vpop.eup %5977  ;;  %v3194_v57 = vmul.f32 %v5976_v44, %v3036_v18 }
 0x91e   : > { %v5980_v53 = vpop.eup %5979  ;;  %v3197_v56 = vmul.f32 %v5978_v47, %v3047_v20 }
 0x91f   : > { %v3195_v26 = vmul.f32 %v5980_v53, %v3039_v60 }
 0x920   : > { %v3211_v59 = vpack.c.bf16 %v3197_v56, %v3196_v23 }
 0x921   : > { %v5982_v16 = vpop.eup %5981  ;;  %v3210_v30 = vpack.c.bf16 %v3195_v26, %v3194_v57 }
 0x922   : > { %v5984_v29 = vpop.eup %5983  ;;  %v3152_v39 = vadd.f32 1.0, %v5982_v16 }
 0x923   : > { %v5986_v61 = vpop.eup %5985  ;;  %v3150_v55 = vadd.f32 1.0, %v5984_v29  ;;  %v5167_v62 = vpop.f32.mrb[88].mxu0  ;;  %5189 = vmatprep.mubr.bf16.mxu1 %v3210_v30 }
 0x924   : > { %v5988_v63 = vpop.eup %5987  ;;  %5989 = vrcp.f32 %v3152_v39  ;;  %v3153_v5 = vadd.f32 1.0, %v5986_v61  ;;  %v6902_v2 = vadd.f32 %v5167_v62, %v6891_v13  ;;  %v3067_v11 = vpop.f32.mrb[89].mxu0  ;;  %5190 = vmatmul.mubr.bf16.vlgmr.msra.gmra.mrb[80].mxu1 %v3211_v59 }
 0x925   : > { %5991 = vrcp.f32 %v3150_v55  ;;  %v3151_v8 = vadd.f32 1.0, %v5988_v63  ;;  %v3068_v28 = vadd.f32 %v6891_v13, %v3067_v11  ;;  %v5168_v10 = vpop.f32.mrb[90].mxu0 }
 0x926   : > { %5993 = vrcp.f32 %v3153_v5  ;;  %v4576_v3 = vmul.f32 -1.442695, %v6902_v2  ;;  %v3079_v51 = vadd.f32 %v5168_v10, %v6891_v13  ;;  %v3070_v4 = vpop.f32.mrb[91].mxu0 }
 0x927   : > { %5995 = vrcp.f32 %v3151_v8  ;;  %v4574_v12 = vmul.f32 -1.442695, %v3068_v28  ;;  %v3071_v15 = vadd.f32 %v6891_v13, %v3070_v4 }
 0x928   : > { %5997 = vpow2.f32 %v4576_v3  ;;  %v4577_v19 = vmul.f32 -1.442695, %v3079_v51 }
 0x929   : > { %5999 = vpow2.f32 %v4574_v12  ;;  %v4575_v21 = vmul.f32 -1.442695, %v3071_v15 }
 0x92a   : > { %6001 = vpow2.f32 %v4577_v19  ;;  %v5351_v19 = vld [vmem:[%s7215_s1 + $0x84] ss:$8 sps:$4 sm:$0xff]  }
 0x92b   : > { %6003 = vpow2.f32 %v4575_v21  ;;  %v5349_v21 = vld [vmem:[%s7215_s1 + $0x80] ss:$8 sps:$4 sm:$0xff]   ;;  %3618 = vmatprep.subr.bf16.mxu0 %v5351_v19 }
 0x92c   : > { %3619 = vmatpush1.bf16.msra.mxu0 %v5349_v21 }
 0x92e   : > { %v5990_v18 = vpop.eup %5989 }
 0x92f   : > { %v5992_v17 = vpop.eup %5991  ;;  %v3200_v6 = vmul.f32 %v5990_v18, %v3060_v31  ;;  %v5354_v18 = vld [vmem:[%s7215_s1 + $0x94] ss:$8 sps:$4 sm:$0xff]  }
 0x930   : > { %v5994_v38 = vpop.eup %5993  ;;  %v3198_v33 = vmul.f32 %v5992_v17, %v3052_v35  ;;  %v5352_v17 = vld [vmem:[%s7215_s1 + $0x90] ss:$8 sps:$4 sm:$0xff]   ;;  %3620 = vmatprep.subr.bf16.mxu0 %v5354_v18 }
 0x931   : > { %v5996_v20 = vpop.eup %5995  ;;  %v3201_v54 = vmul.f32 %v5994_v38, %v3063_v32  ;;  %3621 = vmatpush1.bf16.msra.mxu0 %v5352_v17  ;;  %v5357_v38 = vld [vmem:[%s7215_s1 + $0xa4] ss:$8 sps:$4 sm:$0xff]  }
 0x932   : > { %v5998_v60 = vpop.eup %5997  ;;  %v3199_v24 = vmul.f32 %v5996_v20, %v3055_v42  ;;  %v5355_v20 = vld [vmem:[%s7215_s1 + $0xa0] ss:$8 sps:$4 sm:$0xff]   ;;  %3622 = vmatprep.subr.bf16.mxu0 %v5357_v38 }
 0x933   : > { %v6000_v9 = vpop.eup %5999  ;;  %v3156_v41 = vadd.f32 1.0, %v5998_v60  ;;  %v3213_v37 = vpack.c.bf16 %v3201_v54, %v3200_v6  ;;  %v5360_v6 = vld [vmem:[%s7215_s1 + $0xb4] ss:$8 sps:$4 sm:$0xff]   ;;  %v5358_v54 = vld [vmem:[%s7215_s1 + $0xb0] ss:$8 sps:$4 sm:$0xff]  }
 0x934   : > { %v6002_v58 = vpop.eup %6001  ;;  %v3154_v25 = vadd.f32 1.0, %v6000_v9  ;;  %v5171_v7 = vpop.f32.mrb[92].mxu0  ;;  %v3212_v52 = vpack.c.bf16 %v3199_v24, %v3198_v33  ;;  %v5363_v60 = vld [vmem:[%s7215_s1 + $0xc4] ss:$8 sps:$4 sm:$0xff]   ;;  %v5361_v33 = vld [vmem:[%s7215_s1 + $0xc0] ss:$8 sps:$4 sm:$0xff]  }
 0x935   : > { %v6004_v27 = vpop.eup %6003  ;;  %6005 = vrcp.f32 %v3156_v41  ;;  %v3157_v50 = vadd.f32 1.0, %v6002_v58  ;;  %v3092_v22 = vadd.f32 %v5171_v7, %v6891_v13  ;;  %v3083_v36 = vpop.f32.mrb[93].mxu0  ;;  %3623 = vmatpush1.bf16.msra.mxu0 %v5355_v20  ;;  %v5366_v24 = vld [vmem:[%s7215_s1 + $0xd4] ss:$8 sps:$4 sm:$0xff]   ;;  %v5364_v9 = vld [vmem:[%s7215_s1 + $0xd0] ss:$8 sps:$4 sm:$0xff]  }
 0x936   : > { %6007 = vrcp.f32 %v3154_v25  ;;  %v3155_v1 = vadd.f32 1.0, %v6004_v27  ;;  %v3084_v31 = vadd.f32 %v6891_v13, %v3083_v36  ;;  %v5172_v32 = vpop.f32.mrb[94].mxu0  ;;  %5193 = vmatprep.mubr.bf16.mxu1 %v3212_v52  ;;  %3624 = vmatprep.subr.bf16.mxu0 %v5360_v6  ;;  %v5369_v41 = vld [vmem:[%s7215_s1 + $0xe4] ss:$8 sps:$4 sm:$0xff]   ;;  %v5372_v58 = vld [vmem:[%s7215_s1 + $0xf4] ss:$8 sps:$4 sm:$0xff]  }
 0x937   : > { %6009 = vrcp.f32 %v3157_v50  ;;  %v4580_v35 = vmul.f32 -1.442695, %v3092_v22  ;;  %v3095_v40 = vadd.f32 %v5172_v32, %v6891_v13  ;;  %v3086_v34 = vpop.f32.mrb[95].mxu0  ;;  %5194 = vmatmul.mubr.bf16.gmra.mrb[84].mxu1 %v3213_v37  ;;  %v5367_v37 = vld [vmem:[%s7215_s1 + $0xe0] ss:$8 sps:$4 sm:$0xff]  }
 0x938   : > { %6011 = vrcp.f32 %v3155_v1  ;;  %v4578_v42 = vmul.f32 -1.442695, %v3084_v31  ;;  %v3087_v49 = vadd.f32 %v6891_v13, %v3086_v34  ;;  %v5370_v25 = vld [vmem:[%s7215_s1 + $0xf0] ss:$8 sps:$4 sm:$0xff]   ;;  %v6964_v7 = vld [vmem:[%s7220_s6 + $0x7] ss:$0 sm:$0xff] }
 0x939   : > { %6013 = vpow2.f32 %v4580_v35  ;;  %v4581_v14 = vmul.f32 -1.442695, %v3095_v40  ;;  %3625 = vmatpush1.bf16.msra.mxu0 %v5358_v54 }
 0x93a   : > { %6015 = vpow2.f32 %v4578_v42  ;;  %v4579_v43 = vmul.f32 -1.442695, %v3087_v49  ;;  %3626 = vmatprep.subr.bf16.mxu0 %v5363_v60 }
 0x93b   : > { %6017 = vpow2.f32 %v4581_v14 }
 0x93c   : > { %6019 = vpow2.f32 %v4579_v43 }
 0x93d   : > { %3627 = vmatpush1.bf16.msra.mxu0 %v5361_v33 }
 0x93e   : > { %3628 = vmatprep.subr.bf16.mxu0 %v5366_v24 }
 0x93f   : > { %v6006_v44 = vpop.eup %6005 }
 0x940   : > { %v6008_v47 = vpop.eup %6007  ;;  %v3204_v56 = vmul.f32 %v6006_v44, %v6902_v2 }
 0x941   : > { %v6010_v53 = vpop.eup %6009  ;;  %v3202_v59 = vmul.f32 %v6008_v47, %v3068_v28  ;;  %3629 = vmatpush1.bf16.msra.mxu0 %v5364_v9 }
 0x942   : > { %v6012_v23 = vpop.eup %6011  ;;  %v3205_v57 = vmul.f32 %v6010_v53, %v3079_v51  ;;  %3630 = vmatprep.subr.bf16.mxu0 %v5369_v41 }
 0x943   : > { %v6014_v26 = vpop.eup %6013  ;;  %v3203_v16 = vmul.f32 %v6012_v23, %v3071_v15 }
 0x944   : > { %v6016_v30 = vpop.eup %6015  ;;  %v3160_v29 = vadd.f32 1.0, %v6014_v26  ;;  %v3215_v39 = vpack.c.bf16 %v3205_v57, %v3204_v56 }
 0x945   : > { %v6018_v13 = vpop.eup %6017  ;;  %v3158_v61 = vadd.f32 1.0, %v6016_v30  ;;  %v3214_v55 = vpack.c.bf16 %v3203_v16, %v3202_v59  ;;  %3631 = vmatpush1.bf16.msra.mxu0 %v5367_v37 }
 0x946   : > { %v6020_v62 = vpop.eup %6019  ;;  %6021 = vrcp.f32 %v3160_v29  ;;  %v3161_v63 = vadd.f32 1.0, %v6018_v13  ;;  %3632 = vmatprep.subr.bf16.mxu0 %v5372_v58 }
 0x947   : > { %6023 = vrcp.f32 %v3158_v61  ;;  %v3159_v5 = vadd.f32 1.0, %v6020_v62  ;;  %5197 = vmatprep.mubr.bf16.mxu1 %v3214_v55 }
 0x948   : > { %6025 = vrcp.f32 %v3161_v63  ;;  %5198 = vmatmul.mubr.bf16.gmra.mrb[88].mxu1 %v3215_v39 }
 0x949   : > { %6027 = vrcp.f32 %v3159_v5  ;;  %3633 = vmatpush1.bf16.msra.mxu0 %v5370_v25 }
 0x950   : > { %v6022_v2 = vpop.eup %6021 }
 0x951   : > { %v6024_v11 = vpop.eup %6023  ;;  %v3208_v10 = vmul.f32 %v6022_v2, %v3092_v22 }
 0x952   : > { %v6026_v8 = vpop.eup %6025  ;;  %v3206_v51 = vmul.f32 %v6024_v11, %v3084_v31 }
 0x953   : > { %v6028_v28 = vpop.eup %6027  ;;  %v3209_v3 = vmul.f32 %v6026_v8, %v3095_v40 }
 0x954   : > { %v3207_v4 = vmul.f32 %v6028_v28, %v3087_v49 }
 0x955   : > { %v3217_v12 = vpack.c.bf16 %v3209_v3, %v3208_v10 }
 0x956   : > { %v3216_v15 = vpack.c.bf16 %v3207_v4, %v3206_v51 }
 0x958   : > { %5201 = vmatprep.mubr.bf16.mxu1 %v3216_v15 }
 0x959   : > { %5202 = vmatmul.mubr.bf16.gmra.mrb[92].mxu1 %v3217_v12 }
 0x9f7   : > { %v5191_v52 = vpop.f32.mrb[80].mxu1 }
 0x9f8   : > { %v3334_v27 = vadd.f32 %v5191_v52, %v6964_v7  ;;  %v3325_v50 = vpop.f32.mrb[81].mxu1 }
 0x9f9   : > { %v3326_v22 = vadd.f32 %v6964_v7, %v3325_v50  ;;  %v5192_v36 = vpop.f32.mrb[82].mxu1 }
 0x9fa   : > { %v4594_v1 = vmul.f32 -1.442695, %v3334_v27  ;;  %v3337_v31 = vadd.f32 %v5192_v36, %v6964_v7  ;;  %v3328_v32 = vpop.f32.mrb[83].mxu1 }
 0x9fb   : > { %v4592_v35 = vmul.f32 -1.442695, %v3326_v22  ;;  %v3329_v40 = vadd.f32 %v6964_v7, %v3328_v32 }
 0x9fc   : > { %6029 = vpow2.f32 %v4594_v1  ;;  %v4595_v34 = vmul.f32 -1.442695, %v3337_v31 }
 0x9fd   : > { %6031 = vpow2.f32 %v4592_v35  ;;  %v4593_v42 = vmul.f32 -1.442695, %v3329_v40 }
 0x9fe   : > { %6033 = vpow2.f32 %v4595_v34 }
 0x9ff   : > { %6035 = vpow2.f32 %v4593_v42 }
 0xa06   : > { %v6030_v49 = vpop.eup %6029 }
 0xa07   : > { %v6032_v14 = vpop.eup %6031  ;;  %v3438_v43 = vadd.f32 1.0, %v6030_v49 }
 0xa08   : > { %v6034_v44 = vpop.eup %6033  ;;  %v3436_v47 = vadd.f32 1.0, %v6032_v14 }
 0xa09   : > { %v6036_v53 = vpop.eup %6035  ;;  %6037 = vrcp.f32 %v3438_v43  ;;  %v3439_v23 = vadd.f32 1.0, %v6034_v44 }
 0xa0a   : > { %6039 = vrcp.f32 %v3436_v47  ;;  %v3437_v56 = vadd.f32 1.0, %v6036_v53  ;;  %v5195_v57 = vpop.f32.mrb[84].mxu1 }
 0xa0b   : > { %6041 = vrcp.f32 %v3439_v23  ;;  %v3350_v26 = vadd.f32 %v5195_v57, %v6964_v7  ;;  %v3341_v59 = vpop.f32.mrb[85].mxu1 }
 0xa0c   : > { %6043 = vrcp.f32 %v3437_v56  ;;  %v3342_v16 = vadd.f32 %v6964_v7, %v3341_v59  ;;  %v5196_v30 = vpop.f32.mrb[86].mxu1 }
 0xa0d   : > { %v4598_v29 = vmul.f32 -1.442695, %v3350_v26  ;;  %v3353_v39 = vadd.f32 %v5196_v30, %v6964_v7  ;;  %v3344_v13 = vpop.f32.mrb[87].mxu1 }
 0xa0e   : > { %v4596_v61 = vmul.f32 -1.442695, %v3342_v16  ;;  %v3345_v55 = vadd.f32 %v6964_v7, %v3344_v13 }
 0xa0f   : > { %6045 = vpow2.f32 %v4598_v29  ;;  %v4599_v62 = vmul.f32 -1.442695, %v3353_v39 }
 0xa10   : > { %6047 = vpow2.f32 %v4596_v61  ;;  %v4597_v63 = vmul.f32 -1.442695, %v3345_v55 }
 0xa11   : > { %6049 = vpow2.f32 %v4599_v62 }
 0xa12   : > { %6051 = vpow2.f32 %v4597_v63 }
 0xa13   : > { %v6038_v5 = vpop.eup %6037 }
 0xa14   : > { %v6040_v2 = vpop.eup %6039  ;;  %v3486_v28 = vmul.f32 %v6038_v5, %v3334_v27 }
 0xa15   : > { %v6042_v11 = vpop.eup %6041  ;;  %v3484_v3 = vmul.f32 %v6040_v2, %v3326_v22 }
 0xa16   : > { %v6044_v8 = vpop.eup %6043  ;;  %v3487_v10 = vmul.f32 %v6042_v11, %v3337_v31 }
 0xa17   : > { %v3485_v51 = vmul.f32 %v6044_v8, %v3329_v40 }
 0xa18   : > { %v3501_v4 = vpack.c.bf16 %v3487_v10, %v3486_v28 }
 0xa19   : > { %v6046_v12 = vpop.eup %6045  ;;  %v3500_v15 = vpack.c.bf16 %v3485_v51, %v3484_v3 }
 0xa1a   : > { %v6048_v19 = vpop.eup %6047  ;;  %v3442_v21 = vadd.f32 1.0, %v6046_v12 }
 0xa1b   : > { %v6050_v18 = vpop.eup %6049  ;;  %v3440_v17 = vadd.f32 1.0, %v6048_v19  ;;  %v5199_v38 = vpop.f32.mrb[88].mxu1  ;;  %3651 = vmatmul.mubr.bf16.vlgmr.msra.gmra.mrb[96].mxu0 %v3500_v15 }
 0xa1c   : > { %v6052_v20 = vpop.eup %6051  ;;  %6053 = vrcp.f32 %v3442_v21  ;;  %v3443_v6 = vadd.f32 1.0, %v6050_v18  ;;  %v6975_v54 = vadd.f32 %v5199_v38, %v6964_v7  ;;  %v3357_v60 = vpop.f32.mrb[89].mxu1  ;;  %3660 = vmatprep.mubr.bf16.mxu0 %v6297_v0 }
 0xa1d   : > { %6055 = vrcp.f32 %v3440_v17  ;;  %v3441_v33 = vadd.f32 1.0, %v6052_v20  ;;  %v6979_v24 = vadd.f32 %v6964_v7, %v3357_v60  ;;  %v5200_v9 = vpop.f32.mrb[90].mxu1 }
 0xa1e   : > { %6057 = vrcp.f32 %v3443_v6  ;;  %v4602_v41 = vmul.f32 -1.442695, %v6975_v54  ;;  %v3369_v37 = vadd.f32 %v5200_v9, %v6964_v7  ;;  %v3360_v58 = vpop.f32.mrb[91].mxu1 }
 0xa1f   : > { %6059 = vrcp.f32 %v3441_v33  ;;  %v4600_v25 = vmul.f32 -1.442695, %v6979_v24  ;;  %v3361_v52 = vadd.f32 %v6964_v7, %v3360_v58 }
 0xa20   : > { %6061 = vpow2.f32 %v4602_v41  ;;  %v4603_v27 = vmul.f32 -1.442695, %v3369_v37 }
 0xa21   : > { %6063 = vpow2.f32 %v4600_v25  ;;  %v4601_v50 = vmul.f32 -1.442695, %v3361_v52 }
 0xa22   : > { %6065 = vpow2.f32 %v4603_v27  ;;  %v5373_v27 = vld [vmem:[#allocation2 + $0xc0] sm:$0xff]  }
 0xa23   : > { %6067 = vpow2.f32 %v4601_v50  ;;  %3661 = vmatmul.mubr.bf16.gmra.mrb[100].mxu0 %v3501_v4  ;;  %v5374_v50 = vld [vmem:[#allocation2 + $0x80] sm:$0xff]   ;;  %4885 = vmatprep.subr.bf16.mxu1 %v5373_v27 }
 0xa24   : > { %3670 = vmatprep.mubr.bf16.mxu0 %v6297_v0  ;;  %4886 = vmatpush3.bf16.msra.mxu1 %v5374_v50 }
 0xa26   : > { %v6054_v22 = vpop.eup %6053 }
 0xa27   : > { %v6056_v36 = vpop.eup %6055  ;;  %v3490_v32 = vmul.f32 %v6054_v22, %v3350_v26  ;;  %v5375_v22 = vld [vmem:[#allocation2 + $0xc8] sm:$0xff]  }
 0xa28   : > { %v6058_v1 = vpop.eup %6057  ;;  %v3488_v34 = vmul.f32 %v6056_v36, %v3342_v16  ;;  %v5376_v36 = vld [vmem:[#allocation2 + $0x88] sm:$0xff]   ;;  %4887 = vmatprep.subr.bf16.mxu1 %v5375_v22 }
 0xa29   : > { %v6060_v31 = vpop.eup %6059  ;;  %v3491_v35 = vmul.f32 %v6058_v1, %v3353_v39  ;;  %4888 = vmatpush3.bf16.msra.mxu1 %v5376_v36  ;;  %v5377_v1 = vld [vmem:[#allocation2 + $0xd0] sm:$0xff]  }
 0xa2a   : > { %v6062_v40 = vpop.eup %6061  ;;  %v3489_v42 = vmul.f32 %v6060_v31, %v3345_v55  ;;  %v5378_v31 = vld [vmem:[#allocation2 + $0x90] sm:$0xff]   ;;  %4889 = vmatprep.subr.bf16.mxu1 %v5377_v1 }
 0xa2b   : > { %v6064_v49 = vpop.eup %6063  ;;  %v3446_v14 = vadd.f32 1.0, %v6062_v40  ;;  %v3503_v43 = vpack.c.bf16 %v3491_v35, %v3490_v32  ;;  %v5379_v32 = vld [vmem:[#allocation2 + $0xd8] sm:$0xff]   ;;  %v5381_v40 = vld [vmem:[#allocation2 + $0xe0] sm:$0xff]  }
 0xa2c   : > { %v6066_v44 = vpop.eup %6065  ;;  %v3444_v47 = vadd.f32 1.0, %v6064_v49  ;;  %v5203_v53 = vpop.f32.mrb[92].mxu1  ;;  %v3502_v23 = vpack.c.bf16 %v3489_v42, %v3488_v34  ;;  %v5380_v35 = vld [vmem:[#allocation2 + $0x98] sm:$0xff]   ;;  %v5382_v34 = vld [vmem:[#allocation2 + $0xa0] sm:$0xff]   ;;  %v5384_v42 = vld [vmem:[#allocation2 + $0xa8] sm:$0xff]  }
 0xa2d   : > { %v6068_v56 = vpop.eup %6067  ;;  %6069 = vrcp.f32 %v3446_v14  ;;  %v3447_v57 = vadd.f32 1.0, %v6066_v44  ;;  %v3382_v59 = vadd.f32 %v5203_v53, %v6964_v7  ;;  %v3373_v30 = vpop.f32.mrb[93].mxu1  ;;  %4890 = vmatpush3.bf16.msra.mxu1 %v5378_v31  ;;  %v5385_v49 = vld [vmem:[#allocation2 + $0xf0] sm:$0xff]   ;;  %v5388_v44 = vld [vmem:[#allocation2 + $0xb8] sm:$0xff]  }
 0xa2e   : > { %6071 = vrcp.f32 %v3444_v47  ;;  %v3445_v29 = vadd.f32 1.0, %v6068_v56  ;;  %v3374_v26 = vadd.f32 %v6964_v7, %v3373_v30  ;;  %v5204_v39 = vpop.f32.mrb[94].mxu1  ;;  %3671 = vmatmul.mubr.bf16.gmra.mrb[104].mxu0 %v3502_v23  ;;  %4891 = vmatprep.subr.bf16.mxu1 %v5379_v32  ;;  %v5386_v14 = vld [vmem:[#allocation2 + $0xb0] sm:$0xff]   ;;  %v4624_v47 = vld [vmem:[%s7218_s4 + $0x2] sm:$0x3] }
 0xa2f   : > { %6073 = vrcp.f32 %v3447_v57  ;;  %v4606_v16 = vmul.f32 -1.442695, %v3382_v59  ;;  %v3385_v13 = vadd.f32 %v5204_v39, %v6964_v7  ;;  %v3376_v61 = vpop.f32.mrb[95].mxu1  ;;  %3680 = vmatprep.mubr.bf16.mxu0 %v6297_v0  ;;  %v7002_v53 = vrot.slane %v4624_v47, %v349_v46 }
 0xa30   : > { %6075 = vrcp.f32 %v3445_v29  ;;  %v4604_v55 = vmul.f32 -1.442695, %v3374_v26  ;;  %v3377_v62 = vadd.f32 %v6964_v7, %v3376_v61  ;;  %v7006_v23 = vrot.slane %v4624_v47, %v353_v48 }
 0xa31   : > { %6077 = vpow2.f32 %v4606_v16  ;;  %v4607_v63 = vmul.f32 -1.442695, %v3385_v13  ;;  %4892 = vmatpush3.bf16.msra.mxu1 %v5380_v35 }
 0xa32   : > { %6079 = vpow2.f32 %v4604_v55  ;;  %v4605_v5 = vmul.f32 -1.442695, %v3377_v62  ;;  %4893 = vmatprep.subr.bf16.mxu1 %v5381_v40 }
 0xa33   : > { %6081 = vpow2.f32 %v4607_v63 }
 0xa34   : > { %6083 = vpow2.f32 %v4605_v5 }
 0xa35   : > { %4894 = vmatpush3.bf16.msra.mxu1 %v5382_v34 }
 0xa36   : > { %3681 = vmatmul.mubr.bf16.gmra.mrb[108].mxu0 %v3503_v43  ;;  %v5387_v43 = vld [vmem:[#allocation2 + $0xf8] sm:$0xff]  }
 0xa37   : > { %v6070_v2 = vpop.eup %6069  ;;  %3690 = vmatprep.mubr.bf16.mxu0 %v6297_v0 }
 0xa38   : > { %v6072_v11 = vpop.eup %6071  ;;  %v3494_v10 = vmul.f32 %v6070_v2, %v6975_v54 }
 0xa39   : > { %v6074_v8 = vpop.eup %6073  ;;  %v3492_v4 = vmul.f32 %v6072_v11, %v6979_v24 }
 0xa3a   : > { %v6076_v28 = vpop.eup %6075  ;;  %v3495_v3 = vmul.f32 %v6074_v8, %v3369_v37 }
 0xa3b   : > { %v6078_v51 = vpop.eup %6077  ;;  %v3493_v7 = vmul.f32 %v6076_v28, %v3361_v52 }
 0xa3c   : > { %v6080_v12 = vpop.eup %6079  ;;  %v3450_v15 = vadd.f32 1.0, %v6078_v51  ;;  %v3505_v19 = vpack.c.bf16 %v3495_v3, %v3494_v10 }
 0xa3d   : > { %v6082_v21 = vpop.eup %6081  ;;  %v3448_v18 = vadd.f32 1.0, %v6080_v12  ;;  %v3504_v17 = vpack.c.bf16 %v3493_v7, %v3492_v4 }
 0xa3e   : > { %v6084_v38 = vpop.eup %6083  ;;  %6085 = vrcp.f32 %v3450_v15  ;;  %v3451_v20 = vadd.f32 1.0, %v6082_v21 }
 0xa3f   : > { %6087 = vrcp.f32 %v3448_v18  ;;  %v3449_v6 = vadd.f32 1.0, %v6084_v38  ;;  %3691 = vmatmul.mubr.bf16.gmra.mrb[112].mxu0 %v3504_v17 }
 0xa40   : > { %6089 = vrcp.f32 %v3451_v20  ;;  %3700 = vmatprep.mubr.bf16.mxu0 %v6297_v0 }
 0xa41   : > { %6091 = vrcp.f32 %v3449_v6 }
 0xa47   : > { %3701 = vmatmul.mubr.bf16.gmra.mrb[116].mxu0 %v3505_v19 }
 0xa48   : > { %v6086_v54 = vpop.eup %6085  ;;  %3710 = vmatprep.mubr.bf16.mxu0 %v6297_v0 }
 0xa49   : > { %v6088_v60 = vpop.eup %6087  ;;  %v3498_v9 = vmul.f32 %v6086_v54, %v3382_v59 }
 0xa4a   : > { %v6090_v33 = vpop.eup %6089  ;;  %v3496_v37 = vmul.f32 %v6088_v60, %v3374_v26 }
 0xa4b   : > { %v6092_v24 = vpop.eup %6091  ;;  %v3499_v41 = vmul.f32 %v6090_v33, %v3385_v13 }
 0xa4c   : > { %v3497_v58 = vmul.f32 %v6092_v24, %v3377_v62 }
 0xa4d   : > { %v3507_v25 = vpack.c.bf16 %v3499_v41, %v3498_v9 }
 0xa4e   : > { %v3506_v52 = vpack.c.bf16 %v3497_v58, %v3496_v37 }
 0xa50   : > { %3711 = vmatmul.mubr.bf16.gmra.mrb[120].mxu0 %v3506_v52 }
 0xa51   : > { %3720 = vmatprep.mubr.bf16.mxu0 %v6297_v0  ;;  %v5383_v0 = vld [vmem:[#allocation2 + $0xe8] sm:$0xff]  }
 0xa52   : > { %4895 = vmatprep.subr.bf16.mxu1 %v5383_v0 }
 0xa53   : > { %4896 = vmatpush3.bf16.msra.mxu1 %v5384_v42 }
 0xa54   : > { %4897 = vmatprep.subr.bf16.mxu1 %v5385_v49 }
 0xa57   : > { %4898 = vmatpush3.bf16.msra.mxu1 %v5386_v14 }
 0xa58   : > { %3721 = vmatmul.mubr.bf16.gmra.mrb[124].mxu0 %v3507_v25  ;;  %4899 = vmatprep.subr.bf16.mxu1 %v5387_v43 }
 0xa5b   : > { %4900 = vmatpush3.bf16.msra.mxu1 %v5388_v44 }
 0xaee   : > { %v3652_v56 = vpop.f32.mrb[96].mxu0 }
 0xaef   : > { %v7009_v57 = vadd.f32 %v3652_v56, %v7002_v53  ;;  %v3654_v59 = vpop.f32.mrb[97].mxu0 }
 0xaf0   : > { %v7012_v30 = vadd.f32 %v3654_v59, %v7006_v23  ;;  %v3656_v29 = vpop.f32.mrb[98].mxu0 }
 0xaf1   : > { %v4641_v26 = vmul.f32 -1.442695, %v7009_v57  ;;  %v7016_v39 = vadd.f32 %v3656_v29, %v7002_v53  ;;  %v3658_v46 = vpop.f32.mrb[99].mxu0 }
 0xaf2   : > { %v4642_v16 = vmul.f32 -1.442695, %v7012_v30  ;;  %v7020_v45 = vadd.f32 %v3658_v46, %v7006_v23 }
 0xaf3   : > { %6093 = vpow2.f32 %v4641_v26  ;;  %v4643_v48 = vmul.f32 -1.442695, %v7016_v39 }
 0xaf4   : > { %6095 = vpow2.f32 %v4642_v16  ;;  %v4644_v13 = vmul.f32 -1.442695, %v7020_v45 }
 0xaf5   : > { %6097 = vpow2.f32 %v4643_v48 }
 0xaf6   : > { %6099 = vpow2.f32 %v4644_v13  ;;  %v3662_v61 = vpop.f32.mrb[100].mxu0 }
 0xaf7   : > { %v7025_v55 = vadd.f32 %v3662_v61, %v7002_v53  ;;  %v3664_v62 = vpop.f32.mrb[101].mxu0 }
 0xaf8   : > { %v7028_v63 = vadd.f32 %v3664_v62, %v7006_v23  ;;  %v3666_v5 = vpop.f32.mrb[102].mxu0 }
 0xaf9   : > { %v4645_v2 = vmul.f32 -1.442695, %v7025_v55  ;;  %v7032_v11 = vadd.f32 %v3666_v5, %v7002_v53  ;;  %v3668_v8 = vpop.f32.mrb[103].mxu0 }
 0xafa   : > { %v4646_v28 = vmul.f32 -1.442695, %v7028_v63  ;;  %v7036_v10 = vadd.f32 %v3668_v8, %v7006_v23 }
 0xafb   : > { %6101 = vpow2.f32 %v4645_v2  ;;  %v4647_v3 = vmul.f32 -1.442695, %v7032_v11 }
 0xafc   : > { %6103 = vpow2.f32 %v4646_v28  ;;  %v4648_v51 = vmul.f32 -1.442695, %v7036_v10 }
 0xafd   : > { %v6094_v4 = vpop.eup %6093  ;;  %6105 = vpow2.f32 %v4647_v3 }
 0xafe   : > { %v6096_v7 = vpop.eup %6095  ;;  %v3827_v12 = vadd.f32 1.0, %v6094_v4  ;;  %6107 = vpow2.f32 %v4648_v51 }
 0xaff   : > { %v6098_v15 = vpop.eup %6097  ;;  %v3828_v19 = vadd.f32 1.0, %v6096_v7 }
 0xb00   : > { %v6100_v21 = vpop.eup %6099  ;;  %6109 = vrcp.f32 %v3827_v12  ;;  %v3829_v18 = vadd.f32 1.0, %v6098_v15 }
 0xb01   : > { %6111 = vrcp.f32 %v3828_v19  ;;  %v3830_v17 = vadd.f32 1.0, %v6100_v21  ;;  %v3672_v38 = vpop.f32.mrb[104].mxu0 }
 0xb02   : > { %6113 = vrcp.f32 %v3829_v18  ;;  %v7041_v20 = vadd.f32 %v3672_v38, %v7002_v53  ;;  %v3674_v6 = vpop.f32.mrb[105].mxu0 }
 0xb03   : > { %6115 = vrcp.f32 %v3830_v17  ;;  %v7044_v54 = vadd.f32 %v3674_v6, %v7006_v23  ;;  %v3676_v60 = vpop.f32.mrb[106].mxu0 }
 0xb04   : > { %v4649_v33 = vmul.f32 -1.442695, %v7041_v20  ;;  %v7048_v24 = vadd.f32 %v3676_v60, %v7002_v53  ;;  %v3678_v9 = vpop.f32.mrb[107].mxu0 }
 0xb05   : > { %v6102_v41 = vpop.eup %6101  ;;  %v4650_v37 = vmul.f32 -1.442695, %v7044_v54  ;;  %v7052_v58 = vadd.f32 %v3678_v9, %v7006_v23 }
 0xb06   : > { %v6104_v25 = vpop.eup %6103  ;;  %v3831_v52 = vadd.f32 1.0, %v6102_v41  ;;  %6117 = vpow2.f32 %v4649_v33  ;;  %v4651_v1 = vmul.f32 -1.442695, %v7048_v24 }
 0xb07   : > { %v6106_v27 = vpop.eup %6105  ;;  %v3832_v50 = vadd.f32 1.0, %v6104_v25  ;;  %6119 = vpow2.f32 %v4650_v37  ;;  %v4652_v32 = vmul.f32 -1.442695, %v7052_v58 }
 0xb08   : > { %v6108_v22 = vpop.eup %6107  ;;  %6121 = vrcp.f32 %v3831_v52  ;;  %v3833_v36 = vadd.f32 1.0, %v6106_v27 }
 0xb09   : > { %6123 = vrcp.f32 %v3832_v50  ;;  %v3834_v31 = vadd.f32 1.0, %v6108_v22  ;;  %v3682_v35 = vpop.f32.mrb[108].mxu0 }
 0xb0a   : > { %v6110_v40 = vpop.eup %6109  ;;  %6125 = vrcp.f32 %v3833_v36  ;;  %v7057_v34 = vadd.f32 %v3682_v35, %v7002_v53  ;;  %v3684_v0 = vpop.f32.mrb[109].mxu0 }
 0xb0b   : > { %v6112_v42 = vpop.eup %6111  ;;  %6127 = vrcp.f32 %v3834_v31  ;;  %v7060_v49 = vadd.f32 %v3684_v0, %v7006_v23  ;;  %v3686_v14 = vpop.f32.mrb[110].mxu0  ;;  %v3923_v44 = vmul.f32 %v6110_v40, %v7009_v57 }
 0xb0c   : > { %v6114_v43 = vpop.eup %6113  ;;  %6129 = vpow2.f32 %v4651_v1  ;;  %v4653_v47 = vmul.f32 -1.442695, %v7057_v34  ;;  %v7065_v56 = vadd.f32 %v3686_v14, %v7002_v53  ;;  %v3688_v59 = vpop.f32.mrb[111].mxu0  ;;  %v3924_v48 = vmul.f32 %v6112_v42, %v7012_v30 }
 0xb0d   : > { %v6116_v29 = vpop.eup %6115  ;;  %v3925_v26 = vmul.f32 %v6114_v43, %v7016_v39  ;;  %6131 = vpow2.f32 %v4652_v32  ;;  %v4654_v46 = vmul.f32 -1.442695, %v7060_v49  ;;  %v7070_v16 = vadd.f32 %v3688_v59, %v7006_v23 }
 0xb0e   : > { %v3926_v57 = vmul.f32 %v6116_v29, %v7020_v45  ;;  %6133 = vpow2.f32 %v4653_v47  ;;  %v4655_v13 = vmul.f32 -1.442695, %v7065_v56 }
 0xb0f   : > { %v3955_v61 = vpack.c.bf16 %v3925_v26, %v3923_v44  ;;  %6135 = vpow2.f32 %v4654_v46  ;;  %v4656_v62 = vmul.f32 -1.442695, %v7070_v16 }
 0xb10   : > { %v6118_v5 = vpop.eup %6117  ;;  %6137 = vpow2.f32 %v4655_v13  ;;  %v3956_v39 = vpack.c.bf16 %v3926_v57, %v3924_v48 }
 0xb11   : > { %v6120_v2 = vpop.eup %6119  ;;  %v3835_v8 = vadd.f32 1.0, %v6118_v5  ;;  %6139 = vpow2.f32 %v4656_v62 }
 0xb12   : > { %v6122_v28 = vpop.eup %6121  ;;  %v3836_v3 = vadd.f32 1.0, %v6120_v2  ;;  %v3692_v51 = vpop.f32.mrb[112].mxu0  ;;  %4140 = vmatprep.mubr.bf16.mxu1 %v3956_v39 }
 0xb13   : > { %v6124_v30 = vpop.eup %6123  ;;  %v7077_v45 = vadd.f32 %v3692_v51, %v7002_v53  ;;  %v3694_v4 = vpop.f32.mrb[113].mxu0  ;;  %4141 = vmatmul.mubr.bf16.vlgmr.msra.gmra.mrb[96].mxu1 %v3955_v61  ;;  %v3927_v21 = vmul.f32 %v6122_v28, %v7025_v55  ;;  %6141 = vrcp.f32 %v3835_v8 }
 0xb14   : > { %v6126_v7 = vpop.eup %6125  ;;  %v7080_v12 = vadd.f32 %v3694_v4, %v7006_v23  ;;  %v3696_v15 = vpop.f32.mrb[114].mxu0  ;;  %v3928_v60 = vmul.f32 %v6124_v30, %v7028_v63  ;;  %6143 = vrcp.f32 %v3836_v3 }
 0xb15   : > { %v6128_v19 = vpop.eup %6127  ;;  %v3929_v18 = vmul.f32 %v6126_v7, %v7032_v11  ;;  %v4657_v17 = vmul.f32 -1.442695, %v7077_v45  ;;  %v3698_v38 = vpop.f32.mrb[115].mxu0  ;;  %v7089_v25 = vadd.f32 %v3696_v15, %v7002_v53 }
 0xb16   : > { %v6130_v6 = vpop.eup %6129  ;;  %v3930_v33 = vmul.f32 %v6128_v19, %v7036_v10  ;;  %v4658_v9 = vmul.f32 -1.442695, %v7080_v12  ;;  %v7092_v27 = vadd.f32 %v3698_v38, %v7006_v23 }
 0xb17   : > { %v6132_v41 = vpop.eup %6131  ;;  %v3837_v37 = vadd.f32 1.0, %v6130_v6  ;;  %6145 = vpow2.f32 %v4657_v17  ;;  %v3957_v55 = vpack.c.bf16 %v3929_v18, %v3927_v21  ;;  %v4659_v35 = vmul.f32 -1.442695, %v7089_v25 }
 0xb18   : > { %v6134_v11 = vpop.eup %6133  ;;  %v3838_v52 = vadd.f32 1.0, %v6132_v41  ;;  %6147 = vpow2.f32 %v4658_v9  ;;  %v3958_v50 = vpack.c.bf16 %v3930_v33, %v3928_v60  ;;  %v4660_v14 = vmul.f32 -1.442695, %v7092_v27 }
 0xb19   : > { %v6136_v63 = vpop.eup %6135  ;;  %6149 = vrcp.f32 %v3837_v37  ;;  %v3839_v10 = vadd.f32 1.0, %v6134_v11 }
 0xb1a   : > { %v6138_v22 = vpop.eup %6137  ;;  %6151 = vrcp.f32 %v3838_v52  ;;  %v3840_v36 = vadd.f32 1.0, %v6136_v63  ;;  %v3702_v1 = vpop.f32.mrb[116].mxu0  ;;  %4148 = vmatprep.mubr.bf16.mxu1 %v3958_v50 }
 0xb1b   : > { %v6140_v31 = vpop.eup %6139  ;;  %6153 = vrcp.f32 %v3839_v10  ;;  %v3841_v32 = vadd.f32 1.0, %v6138_v22  ;;  %v7096_v40 = vadd.f32 %v3702_v1, %v7002_v53  ;;  %v3704_v0 = vpop.f32.mrb[117].mxu0  ;;  %4149 = vmatmul.mubr.bf16.gmra.mrb[100].mxu1 %v3957_v55 }
 0xb1c   : > { %6155 = vrcp.f32 %v3840_v36  ;;  %v3842_v42 = vadd.f32 1.0, %v6140_v31  ;;  %v7100_v43 = vadd.f32 %v3704_v0, %v7006_v23  ;;  %v3706_v44 = vpop.f32.mrb[118].mxu0 }
 0xb1d   : > { %6157 = vrcp.f32 %v3841_v32  ;;  %v4661_v47 = vmul.f32 -1.442695, %v7096_v40  ;;  %v7104_v59 = vadd.f32 %v3706_v44, %v7002_v53  ;;  %v3708_v29 = vpop.f32.mrb[119].mxu0  ;;  %v6142_v48 = vpop.eup %6141 }
 0xb1e   : > { %6159 = vrcp.f32 %v3842_v42  ;;  %v4662_v26 = vmul.f32 -1.442695, %v7100_v43  ;;  %v7108_v46 = vadd.f32 %v3708_v29, %v7006_v23  ;;  %v6144_v13 = vpop.eup %6143  ;;  %v3931_v38 = vmul.f32 %v6142_v48, %v7041_v20 }
 0xb1f   : > { %6161 = vpow2.f32 %v4659_v35  ;;  %v4663_v57 = vmul.f32 -1.442695, %v7104_v59  ;;  %v3932_v15 = vmul.f32 %v6144_v13, %v7044_v54 }
 0xb20   : > { %6163 = vpow2.f32 %v4660_v14  ;;  %v4664_v39 = vmul.f32 -1.442695, %v7108_v46 }
 0xb21   : > { %v6146_v61 = vpop.eup %6145  ;;  %6165 = vpow2.f32 %v4661_v47 }
 0xb22   : > { %v6148_v62 = vpop.eup %6147  ;;  %v3843_v5 = vadd.f32 1.0, %v6146_v61  ;;  %6167 = vpow2.f32 %v4662_v26 }
 0xb23   : > { %v6150_v2 = vpop.eup %6149  ;;  %v3844_v8 = vadd.f32 1.0, %v6148_v62  ;;  %6169 = vpow2.f32 %v4663_v57  ;;  %v3712_v28 = vpop.f32.mrb[120].mxu0 }
 0xb24   : > { %v6152_v3 = vpop.eup %6151  ;;  %v3933_v51 = vmul.f32 %v6150_v2, %v7048_v24  ;;  %6171 = vrcp.f32 %v3843_v5  ;;  %v7114_v30 = vadd.f32 %v3712_v28, %v7002_v53  ;;  %v3714_v4 = vpop.f32.mrb[121].mxu0 }
 0xb25   : > { %v6154_v7 = vpop.eup %6153  ;;  %v3934_v19 = vmul.f32 %v6152_v3, %v7052_v58  ;;  %6173 = vrcp.f32 %v3844_v8  ;;  %v7119_v21 = vadd.f32 %v3714_v4, %v7006_v23  ;;  %v3716_v18 = vpop.f32.mrb[122].mxu0 }
 0xb26   : > { %v6156_v17 = vpop.eup %6155  ;;  %6175 = vpow2.f32 %v4664_v39  ;;  %v4665_v24 = vmul.f32 -1.442695, %v7114_v30  ;;  %v7124_v6 = vadd.f32 %v3716_v18, %v7002_v53  ;;  %v3718_v60 = vpop.f32.mrb[123].mxu0  ;;  %v3935_v54 = vmul.f32 %v6154_v7, %v7057_v34 }
 0xb27   : > { %v6158_v33 = vpop.eup %6157  ;;  %v4666_v58 = vmul.f32 -1.442695, %v7119_v21  ;;  %v7129_v9 = vadd.f32 %v3718_v60, %v7006_v23  ;;  %v3960_v41 = vpack.c.bf16 %v3934_v19, %v3932_v15  ;;  %v3959_v11 = vpack.c.bf16 %v3933_v51, %v3931_v38 }
 0xb28   : > { %v6160_v37 = vpop.eup %6159  ;;  %v3937_v55 = vmul.f32 %v6158_v33, %v7065_v56  ;;  %6177 = vpow2.f32 %v4665_v24  ;;  %v4667_v20 = vmul.f32 -1.442695, %v7124_v6  ;;  %v3936_v50 = vmul.f32 %v6156_v17, %v7060_v49 }
 0xb29   : > { %v6162_v52 = vpop.eup %6161  ;;  %v3938_v63 = vmul.f32 %v6160_v37, %v7070_v16  ;;  %6179 = vpow2.f32 %v4666_v58  ;;  %v4668_v34 = vmul.f32 -1.442695, %v7129_v9  ;;  %4156 = vmatprep.mubr.bf16.mxu1 %v3960_v41 }
 0xb2a   : > { %v6164_v10 = vpop.eup %6163  ;;  %v3845_v22 = vadd.f32 1.0, %v6162_v52  ;;  %6181 = vpow2.f32 %v4667_v20  ;;  %4157 = vmatmul.mubr.bf16.gmra.mrb[104].mxu1 %v3959_v11  ;;  %v3961_v36 = vpack.c.bf16 %v3937_v55, %v3935_v54 }
 0xb2b   : > { %v6166_v1 = vpop.eup %6165  ;;  %v3846_v56 = vadd.f32 1.0, %v6164_v10  ;;  %6183 = vpow2.f32 %v4668_v34  ;;  %v3722_v31 = vpop.f32.mrb[124].mxu0  ;;  %v3962_v32 = vpack.c.bf16 %v3938_v63, %v3936_v50 }
 0xb2c   : > { %v6168_v35 = vpop.eup %6167  ;;  %6185 = vrcp.f32 %v3845_v22  ;;  %v3847_v0 = vadd.f32 1.0, %v6166_v1  ;;  %v7137_v49 = vadd.f32 %v3722_v31, %v7002_v53  ;;  %v3724_v16 = vpop.f32.mrb[125].mxu0 }
 0xb2d   : > { %v6170_v42 = vpop.eup %6169  ;;  %6187 = vrcp.f32 %v3846_v56  ;;  %v3848_v14 = vadd.f32 1.0, %v6168_v35  ;;  %v7140_v44 = vadd.f32 %v3724_v16, %v7006_v23  ;;  %v3726_v47 = vpop.f32.mrb[126].mxu0  ;;  %4164 = vmatprep.mubr.bf16.mxu1 %v3962_v32 }
 0xb2e   : > { %v6172_v29 = vpop.eup %6171  ;;  %6189 = vrcp.f32 %v3847_v0  ;;  %v3849_v26 = vadd.f32 1.0, %v6170_v42  ;;  %v4669_v48 = vmul.f32 -1.442695, %v7137_v49  ;;  %v7144_v57 = vadd.f32 %v3726_v47, %v7002_v53  ;;  %v3728_v13 = vpop.f32.mrb[127].mxu0 }
 0xb2f   : > { %v6174_v61 = vpop.eup %6173  ;;  %6191 = vrcp.f32 %v3848_v14  ;;  %v4670_v62 = vmul.f32 -1.442695, %v7140_v44  ;;  %v7148_v5 = vadd.f32 %v3728_v13, %v7006_v23  ;;  %v3939_v38 = vmul.f32 %v6172_v29, %v7077_v45 }
 0xb30   : > { %v6176_v39 = vpop.eup %6175  ;;  %6193 = vrcp.f32 %v3849_v26  ;;  %v4671_v2 = vmul.f32 -1.442695, %v7144_v57  ;;  %v3940_v33 = vmul.f32 %v6174_v61, %v7080_v12 }
 0xb31   : > { %v3850_v8 = vadd.f32 1.0, %v6176_v39  ;;  %6195 = vpow2.f32 %v4669_v48  ;;  %v4672_v23 = vmul.f32 -1.442695, %v7148_v5 }
 0xb32   : > { %v6178_v28 = vpop.eup %6177  ;;  %6197 = vpow2.f32 %v4670_v62  ;;  %4165 = vmatmul.mubr.bf16.gmra.mrb[108].mxu1 %v3961_v36  ;;  %v7172_v62 = vld [vmem:[%s7219_s5 + $0x1] ss:$0 sm:$0xff] }
 0xb33   : > { %v6180_v3 = vpop.eup %6179  ;;  %6199 = vrcp.f32 %v3850_v8  ;;  %v3851_v53 = vadd.f32 1.0, %v6178_v28 }
 0xb34   : > { %v6182_v51 = vpop.eup %6181  ;;  %v3852_v4 = vadd.f32 1.0, %v6180_v3  ;;  %6201 = vpow2.f32 %v4671_v2 }
 0xb35   : > { %v6184_v7 = vpop.eup %6183  ;;  %6203 = vrcp.f32 %v3851_v53  ;;  %v3853_v15 = vadd.f32 1.0, %v6182_v51 }
 0xb36   : > { %v6186_v19 = vpop.eup %6185  ;;  %6205 = vrcp.f32 %v3852_v4  ;;  %v3854_v18 = vadd.f32 1.0, %v6184_v7 }
 0xb37   : > { %v6188_v17 = vpop.eup %6187  ;;  %v3941_v24 = vmul.f32 %v6186_v19, %v7089_v25  ;;  %6207 = vrcp.f32 %v3853_v15 }
 0xb38   : > { %v6190_v60 = vpop.eup %6189  ;;  %v3942_v54 = vmul.f32 %v6188_v17, %v7092_v27  ;;  %6209 = vrcp.f32 %v3854_v18 }
 0xb39   : > { %v6192_v58 = vpop.eup %6191  ;;  %6211 = vpow2.f32 %v4672_v23  ;;  %v3963_v41 = vpack.c.bf16 %v3941_v24, %v3939_v38  ;;  %v3943_v11 = vmul.f32 %v6190_v60, %v7096_v40 }
 0xb3a   : > { %v6194_v37 = vpop.eup %6193  ;;  %v3964_v55 = vpack.c.bf16 %v3942_v54, %v3940_v33  ;;  %v3944_v27 = vmul.f32 %v6192_v58, %v7100_v43 }
 0xb3b   : > { %v6196_v20 = vpop.eup %6195  ;;  %v3945_v52 = vmul.f32 %v6194_v37, %v7104_v59 }
 0xb3c   : > { %v6198_v45 = vpop.eup %6197  ;;  %v3855_v50 = vadd.f32 1.0, %v6196_v20  ;;  %4172 = vmatprep.mubr.bf16.mxu1 %v3964_v55 }
 0xb3d   : > { %v6200_v25 = vpop.eup %6199  ;;  %4173 = vmatmul.mubr.bf16.gmra.mrb[112].mxu1 %v3963_v41  ;;  %v3965_v63 = vpack.c.bf16 %v3945_v52, %v3943_v11  ;;  %v3856_v1 = vadd.f32 1.0, %v6198_v45 }
 0xb3e   : > { %v6202_v12 = vpop.eup %6201  ;;  %v3946_v34 = vmul.f32 %v6200_v25, %v7108_v46  ;;  %6213 = vrcp.f32 %v3855_v50 }
 0xb3f   : > { %v6204_v10 = vpop.eup %6203  ;;  %v3857_v22 = vadd.f32 1.0, %v6202_v12 }
 0xb40   : > { %v6206_v36 = vpop.eup %6205  ;;  %v3966_v56 = vpack.c.bf16 %v3946_v34, %v3944_v27  ;;  %v3947_v31 = vmul.f32 %v6204_v10, %v7114_v30 }
 0xb41   : > { %v6208_v40 = vpop.eup %6207  ;;  %6215 = vrcp.f32 %v3857_v22  ;;  %v3948_v0 = vmul.f32 %v6206_v36, %v7119_v21 }
 0xb42   : > { %v6210_v59 = vpop.eup %6209  ;;  %v3949_v32 = vmul.f32 %v6208_v40, %v7124_v6  ;;  %4180 = vmatprep.mubr.bf16.mxu1 %v3966_v56  ;;  %6217 = vrcp.f32 %v3856_v1 }
 0xb43   : > { %v6212_v35 = vpop.eup %6211  ;;  %v3950_v43 = vmul.f32 %v6210_v59, %v7129_v9 }
 0xb44   : > { %v3858_v46 = vadd.f32 1.0, %v6212_v35  ;;  %v3967_v16 = vpack.c.bf16 %v3949_v32, %v3947_v31 }
 0xb45   : > { %4181 = vmatmul.mubr.bf16.gmra.mrb[116].mxu1 %v3965_v63  ;;  %v3968_v42 = vpack.c.bf16 %v3950_v43, %v3948_v0 }
 0xb46   : > { %6219 = vrcp.f32 %v3858_v46 }
 0xb47   : > { %4188 = vmatprep.mubr.bf16.mxu1 %v3968_v42 }
 0xb48   : > { %v6214_v14 = vpop.eup %6213 }
 0xb49   : > { %v3951_v30 = vmul.f32 %v6214_v14, %v7137_v49 }
 0xb4b   : > { %v6216_v47 = vpop.eup %6215 }
 0xb4c   : > { %v3953_v6 = vmul.f32 %v6216_v47, %v7144_v57  ;;  %v6218_v29 = vpop.eup %6217 }
 0xb4d   : > { %4189 = vmatmul.mubr.bf16.gmra.mrb[120].mxu1 %v3967_v16  ;;  %v3952_v9 = vmul.f32 %v6218_v29, %v7140_v44 }
 0xb4e   : > { %v3969_v26 = vpack.c.bf16 %v3953_v6, %v3951_v30 }
 0xb50   : > { %v6220_v21 = vpop.eup %6219 }
 0xb51   : > { %v3954_v48 = vmul.f32 %v6220_v21, %v7148_v5 }
 0xb53   : > { %v3970_v13 = vpack.c.bf16 %v3954_v48, %v3952_v9 }
 0xb55   : > { %4196 = vmatprep.mubr.bf16.mxu1 %v3970_v13 }
 0xb56   : > { %4197 = vmatmul.mubr.bf16.gmra.mrb[124].mxu1 %v3969_v26 }
 0xbe6   : > { %v4901_v61 = vpop.f32.mrb[96].mxu1 }
 0xbe7   : > { %v4902_v49 = vpop.f32.mrb[97].mxu1 }
 0xbe8   : > { %v4903_v57 = vadd.f32 %v4902_v49, %v4901_v61  ;;  %v4904_v39 = vpop.f32.mrb[98].mxu1 }
 0xbe9   : > { %v4905_v44 = vpop.f32.mrb[99].mxu1 }
 0xbea   : > { %v4143_v5 = vadd.f32 %v4903_v57, %v7172_v62  ;;  %v4906_v2 = vadd.f32 %v4905_v44, %v4904_v39 }
 0xbec   : > { %4205 = vst [vmem:[%s7177_s22] sm:$0xff] %v4143_v5  ;;  %v4146_v8 = vadd.f32 %v4906_v2, %v7172_v62 }
 0xbee   : > { %4206 = vst [vmem:[%s7177_s22 + $0x8] sm:$0xff] %v4146_v8  ;;  %v4907_v28 = vpop.f32.mrb[100].mxu1 }
 0xbef   : > { %v4908_v3 = vpop.f32.mrb[101].mxu1 }
 0xbf0   : > { %v4909_v53 = vadd.f32 %v4908_v3, %v4907_v28  ;;  %v4910_v51 = vpop.f32.mrb[102].mxu1 }
 0xbf1   : > { %v4911_v4 = vpop.f32.mrb[103].mxu1 }
 0xbf2   : > { %v4151_v7 = vadd.f32 %v4909_v53, %v7172_v62  ;;  %v4912_v15 = vadd.f32 %v4911_v4, %v4910_v51 }
 0xbf4   : > { %4207 = vst [vmem:[%s7177_s22 + $0x10] sm:$0xff] %v4151_v7  ;;  %v4154_v23 = vadd.f32 %v4912_v15, %v7172_v62 }
 0xbf6   : > { %4208 = vst [vmem:[%s7177_s22 + $0x18] sm:$0xff] %v4154_v23 }
 0xbfd   : > { %v4913_v19 = vpop.f32.mrb[104].mxu1 }
 0xbfe   : > { %v4914_v18 = vpop.f32.mrb[105].mxu1 }
 0xbff   : > { %v4915_v17 = vadd.f32 %v4914_v18, %v4913_v19  ;;  %v4916_v38 = vpop.f32.mrb[106].mxu1 }
 0xc00   : > { %v4917_v24 = vpop.f32.mrb[107].mxu1 }
 0xc01   : > { %v4159_v60 = vadd.f32 %v4915_v17, %v7172_v62  ;;  %v4918_v33 = vadd.f32 %v4917_v24, %v4916_v38 }
 0xc03   : > { %4209 = vst [vmem:[%s7177_s22 + $0x20] sm:$0xff] %v4159_v60  ;;  %v4162_v54 = vadd.f32 %v4918_v33, %v7172_v62 }
 0xc05   : > { %4210 = vst [vmem:[%s7177_s22 + $0x28] sm:$0xff] %v4162_v54  ;;  %v4919_v58 = vpop.f32.mrb[108].mxu1 }
 0xc06   : > { %v4920_v41 = vpop.f32.mrb[109].mxu1 }
 0xc07   : > { %v4921_v37 = vadd.f32 %v4920_v41, %v4919_v58  ;;  %v4922_v55 = vpop.f32.mrb[110].mxu1 }
 0xc08   : > { %v4923_v20 = vpop.f32.mrb[111].mxu1 }
 0xc09   : > { %v4167_v11 = vadd.f32 %v4921_v37, %v7172_v62  ;;  %v4924_v52 = vadd.f32 %v4923_v20, %v4922_v55 }
 0xc0b   : > { %4211 = vst [vmem:[%s7177_s22 + $0x30] sm:$0xff] %v4167_v11  ;;  %v4170_v45 = vadd.f32 %v4924_v52, %v7172_v62 }
 0xc0d   : > { %4212 = vst [vmem:[%s7177_s22 + $0x38] sm:$0xff] %v4170_v45 }
 0xc10   : > { %v4925_v50 = vpop.f32.mrb[112].mxu1 }
 0xc11   : > { %v4926_v25 = vpop.f32.mrb[113].mxu1 }
 0xc12   : > { %v4927_v63 = vadd.f32 %v4926_v25, %v4925_v50  ;;  %v4928_v12 = vpop.f32.mrb[114].mxu1 }
 0xc13   : > { %v4929_v27 = vpop.f32.mrb[115].mxu1 }
 0xc14   : > { %v4175_v34 = vadd.f32 %v4927_v63, %v7172_v62  ;;  %v4930_v10 = vadd.f32 %v4929_v27, %v4928_v12 }
 0xc16   : > { %4213 = vst [vmem:[%s7177_s22 + $0x40] sm:$0xff] %v4175_v34  ;;  %v4178_v22 = vadd.f32 %v4930_v10, %v7172_v62 }
 0xc18   : > { %4214 = vst [vmem:[%s7177_s22 + $0x48] sm:$0xff] %v4178_v22  ;;  %v4931_v36 = vpop.f32.mrb[116].mxu1 }
 0xc19   : > { %v4932_v1 = vpop.f32.mrb[117].mxu1 }
 0xc1a   : > { %v4933_v56 = vadd.f32 %v4932_v1, %v4931_v36  ;;  %v4934_v40 = vpop.f32.mrb[118].mxu1 }
 0xc1b   : > { %v4935_v59 = vpop.f32.mrb[119].mxu1 }
 0xc1c   : > { %v4183_v31 = vadd.f32 %v4933_v56, %v7172_v62  ;;  %v4936_v32 = vadd.f32 %v4935_v59, %v4934_v40 }
 0xc1e   : > { %4215 = vst [vmem:[%s7177_s22 + $0x50] sm:$0xff] %v4183_v31  ;;  %v4186_v35 = vadd.f32 %v4936_v32, %v7172_v62 }
 0xc20   : > { %4216 = vst [vmem:[%s7177_s22 + $0x58] sm:$0xff] %v4186_v35  ;;  %v4937_v0 = vpop.f32.mrb[120].mxu1 }
 0xc21   : > { %v4938_v43 = vpop.f32.mrb[121].mxu1 }
 0xc22   : > { %v4939_v46 = vadd.f32 %v4938_v43, %v4937_v0  ;;  %v4940_v16 = vpop.f32.mrb[122].mxu1 }
 0xc23   : > { %v4941_v42 = vpop.f32.mrb[123].mxu1 }
 0xc24   : > { %v4191_v14 = vadd.f32 %v4939_v46, %v7172_v62  ;;  %v4942_v47 = vadd.f32 %v4941_v42, %v4940_v16 }
 0xc26   : > { %4217 = vst [vmem:[%s7177_s22 + $0x60] sm:$0xff] %v4191_v14  ;;  %v4194_v30 = vadd.f32 %v4942_v47, %v7172_v62 }
 0xc28   : > { %4218 = vst [vmem:[%s7177_s22 + $0x68] sm:$0xff] %v4194_v30 }
 0xc29   : > { %v4943_v6 = vpop.f32.mrb[124].mxu1 }
 0xc2a   : > { %v4944_v29 = vpop.f32.mrb[125].mxu1 }
 0xc2b   : > { %v4945_v26 = vadd.f32 %v4944_v29, %v4943_v6  ;;  %v4946_v21 = vpop.f32.mrb[126].mxu1 }
 0xc2c   : > { %v4947_v9 = vpop.f32.mrb[127].mxu1 }
 0xc2d   : > { %v4199_v48 = vadd.f32 %v4945_v26, %v7172_v62  ;;  %v4948_v13 = vadd.f32 %v4947_v9, %v4946_v21 }
 0xc2f   : > { %4219 = vst [vmem:[%s7177_s22 + $0x70] sm:$0xff] %v4199_v48  ;;  %v4202_v61 = vadd.f32 %v4948_v13, %v7172_v62 }
 0xc31   : > { %4220 = vst [vmem:[%s7177_s22 + $0x78] sm:$0xff] %v4202_v61 }
 0xc32 PF: > { %s19_s24 = sadd.s32 1, %s6291_s24  }
 0xc33   : > { %p16_p7 = scmp.ge.s32.totalorder %s19_s24, 4  }
 0xc35   :  { %18 = sbr.rel (!%p16_p7) target bundleno = 2 (0x2), region = 105 }
 0xc3c   :  { %4243 = vsyncpa [#allocation3], 1 }
 0xc3d   :  { %4245 = vsyncpa [#allocation3 + $0x1], 1 }
 0xc3e   :  { %4246 = vsyncpa [#allocation5], 1 }

</bundles_post_ra>
